<compile_context>
chip_gen: v7x
topology: tpu7x:2x2x1
jax: 0.10.0
libtpu: 0.0.40
codegen_flags: <defaults>
</compile_context>

<pallas_src>
import functools

import numpy as np

import jax
import jax.numpy as jnp
from jax.experimental import pallas as pl
from jax.experimental.pallas import tpu as pltpu


# ---------------------------------------------------------------------------
# Fused kernel.
# ---------------------------------------------------------------------------
def _disc_fused_kernel(p1t_ref, w1t_ref, b1_ref,
                       sel2_ref, w2s_ref, g2_ref, bb2_ref,
                       sel3_ref, w3s_ref, g3_ref, bb3_ref,
                       w4_ref, b4_ref, o_ref):
    f32 = jnp.float32

    def leaky(v):                       # LeakyReLU(0.2)
        return jnp.where(v >= 0.0, v, 0.2 * v)

    def batchnorm(v, g, b):             # training-mode BN over the lane axis
        mean = jnp.mean(v, axis=1, keepdims=True)
        var = jnp.mean((v - mean) ** 2, axis=1, keepdims=True)   # biased var
        return (v - mean) * jax.lax.rsqrt(var + 1e-5) * g + b

    def conv_from_taps(act, sel_ref, wsplit_ref):
        # conv(act) = sum over kernel taps kk of  W_kk @ (act @ select_kk)
        # select_kk is an exact 0/1 matrix picking the spatial columns that
        # tap reads, so this is bit-equivalent to im2col + one big matmul.
        acc = None
        for kk in range(sel_ref.shape[0]):
            t = jnp.dot(act, sel_ref[kk], preferred_element_type=f32)
            t = jnp.dot(wsplit_ref[kk], t, preferred_element_type=f32)
            acc = t if acc is None else acc + t
        return acc

    # layer 1: Conv(image_nc -> 8, k4 s2) + bias + LeakyReLU
    a1 = leaky(jnp.dot(w1t_ref[...], p1t_ref[...],
                       preferred_element_type=f32) + b1_ref[...])     # (8, N*13*13)

    # layer 2: Conv(8 -> 16, k4 s2) + BatchNorm + LeakyReLU
    # (conv bias omitted: exactly cancelled by the BN mean subtraction)
    a2 = leaky(batchnorm(conv_from_taps(a1, sel2_ref, w2s_ref),
                         g2_ref[...], bb2_ref[...]))                  # (16, N*5*5)

    # layer 3: Conv(16 -> 32, k4 s2) + BatchNorm + LeakyReLU
    a3 = leaky(batchnorm(conv_from_taps(a2, sel3_ref, w3s_ref),
                         g3_ref[...], bb3_ref[...]))                  # (32, N)

    # layer 4: 1x1 Conv(32 -> 1) + bias + Sigmoid (approx reciprocal -> EUP)
    y4 = jnp.sum(a3 * w4_ref[...], axis=0, keepdims=True) + b4_ref[...]   # (1, N)
    o_ref[...] = pl.reciprocal(1.0 + jnp.exp(-y4), approx=True)


# ---------------------------------------------------------------------------
# Host-side helpers (layout plumbing + compile-time constants).
# ---------------------------------------------------------------------------
@functools.lru_cache(maxsize=None)
def _tap_selectors(n, ih, iw, k, s):
    """0/1 matrices mapping a (C, n*ih*iw) activation to the source columns of
    each of the k*k kernel taps of a valid stride-s conv.
    Shape: (k*k, n*ih*iw, n*oh*ow)."""
    oh = (ih - k) // s + 1
    ow = (iw - k) // s + 1
    sel = np.zeros((k * k, n * ih * iw, n * oh * ow), np.float32)
    for kh in range(k):
        for kw in range(k):
            kk = kh * k + kw
            for b in range(n):
                for yy in range(oh):
                    for xx in range(ow):
                        src = (b * ih + (s * yy + kh)) * iw + (s * xx + kw)
                        dst = (b * oh + yy) * ow + xx
                        sel[kk, src, dst] = 1.0
    return sel


def _patches_T(x_nchw, k, s):
    """Transposed im2col: NCHW -> ((k*k*C, N*OH*OW), OH, OW).
    Row order (kh, kw, ic), column order (n, oh, ow)."""
    n, c, h, w = x_nchw.shape
    oh = (h - k) // s + 1
    ow = (w - k) // s + 1
    cols = []
    for kh in range(k):
        for kw in range(k):
            cols.append(x_nchw[:, :, kh:kh + s * oh:s, kw:kw + s * ow:s])  # (N,C,OH,OW)
    p = jnp.stack(cols, axis=0)                 # (k*k, N, C, OH, OW)
    p = jnp.transpose(p, (0, 2, 1, 3, 4))       # (k*k, C, N, OH, OW)
    return p.reshape(k * k * c, n * oh * ow), oh, ow


def _split_weight(w):
    """PyTorch conv weight (OC, IC, KH, KW) -> per-tap matrices (KH*KW, OC, IC)."""
    oc, ic, kh, kw = w.shape
    return jnp.transpose(w, (2, 3, 0, 1)).reshape(kh * kw, oc, ic)


def init_params(key, image_nc):
    ks = jax.random.split(key, 8)
    scale = 0.1
    # b2 / b3 are kept for parity with the PyTorch module's parameters, but
    # they are not used in the forward: training-mode BatchNorm cancels them.
    return {
        "w1": scale * jax.random.normal(ks[0], (8, image_nc, 4, 4), jnp.float32),
        "b1": scale * jax.random.normal(ks[1], (8,), jnp.float32),
        "w2": scale * jax.random.normal(ks[2], (16, 8, 4, 4), jnp.float32),
        "b2": scale * jax.random.normal(ks[3], (16,), jnp.float32),
        "g2": jnp.ones((16,), jnp.float32),
        "bn_b2": jnp.zeros((16,), jnp.float32),
        "w3": scale * jax.random.normal(ks[4], (32, 16, 4, 4), jnp.float32),
        "b3": scale * jax.random.normal(ks[5], (32,), jnp.float32),
        "g3": jnp.ones((32,), jnp.float32),
        "bn_b3": jnp.zeros((32,), jnp.float32),
        "w4": scale * jax.random.normal(ks[6], (1, 32, 1, 1), jnp.float32),
        "b4": scale * jax.random.normal(ks[7], (1,), jnp.float32),
    }


@jax.jit
def discriminator_forward(params, x_nchw):
    x = x_nchw.astype(jnp.float32)
    n, c, _, _ = x.shape

    # Layer-1 transposed im2col (input-prep glue; runs once per call).
    p1t, oh1, ow1 = _patches_T(x, 4, 2)                    # (16*c, N*13*13)
    oh2, ow2 = (oh1 - 4) // 2 + 1, (ow1 - 4) // 2 + 1      # 5, 5
    oh3, ow3 = (oh2 - 4) // 2 + 1, (ow2 - 4) // 2 + 1      # 1, 1

    # Weights in the layouts the kernel wants.
    w1t = jnp.transpose(params["w1"], (0, 2, 3, 1)).reshape(8, 4 * 4 * c)
    w2s = _split_weight(params["w2"])                      # (16, 16, 8)
    w3s = _split_weight(params["w3"])                      # (16, 32, 16)
    w4c = params["w4"].reshape(1, 32).T                    # (32, 1)

    # Compile-time 0/1 tap-selection constants (exact, tiny).
    sel2 = jnp.asarray(_tap_selectors(n, oh1, ow1, 4, 2))  # (16, N*169, N*25)
    sel3 = jnp.asarray(_tap_selectors(n, oh2, ow2, 4, 2))  # (16, N*25,  N)

    col = lambda v: v.reshape(-1, 1)   # per-channel params as (C, 1) columns

    args = (p1t, w1t, col(params["b1"]),
            sel2, w2s, col(params["g2"]), col(params["bn_b2"]),
            sel3, w3s, col(params["g3"]), col(params["bn_b3"]),
            w4c, col(params["b4"]))

    m1, m2, m3 = p1t.shape[1], sel2.shape[2], sel3.shape[2]
    flops = 2 * (8 * (4 * 4 * c) * m1
                 + 16 * (8 * m1 * m2 + 16 * 8 * m2)
                 + 16 * (16 * m2 * m3 + 32 * 16 * m3)
                 + 32 * m3)
    bytes_accessed = sum(int(a.size) * 4 for a in args) + 4 * m3

    vmem = pl.BlockSpec(memory_space=pltpu.MemorySpace.VMEM)
    out = pl.pallas_call(
        _disc_fused_kernel,
        out_shape=jax.ShapeDtypeStruct((1, m3), jnp.float32),
        in_specs=[vmem] * len(args),
        out_specs=vmem,
        cost_estimate=pl.CostEstimate(
            flops=flops, transcendentals=64 + m3, bytes_accessed=bytes_accessed),
    )(*args)

    # Back to PyTorch's (N, 1, OH, OW).squeeze().
    return jnp.squeeze(out.reshape(n, 1, oh3, ow3))


if __name__ == "__main__":
    key = jax.random.PRNGKey(0)
    k_params, k_x = jax.random.split(key)

    image_nc = 3
    # 28x28 input -> conv chain spatial sizes 28 -> 13 -> 5 -> 1
    x = jax.random.normal(k_x, (2, image_nc, 28, 28), jnp.float32)
    params = init_params(k_params, image_nc)

    out = discriminator_forward(params, x)
    out = jax.block_until_ready(out)

    assert out.shape == (2,), f"unexpected output shape {out.shape}"
    assert bool(jnp.all(jnp.isfinite(out)))
    # sigmoid range (tiny slack for the approx-reciprocal EUP path)
    assert bool(jnp.all((out >= 0.0) & (out <= 1.0 + 1e-3)))
    print("KERNEL_OK")
</pallas_src>

<mosaic_0001>
module attributes {stable_mosaic.version = 11 : i64} {
  func.func @_disc_fused_kernel(%arg0: memref<48x338xf32, #tpu.memory_space<vmem>>, %arg1: memref<8x48xf32, #tpu.memory_space<vmem>>, %arg2: memref<8x1xf32, #tpu.memory_space<vmem>>, %arg3: memref<16x338x50xf32, #tpu.memory_space<vmem>>, %arg4: memref<16x16x8xf32, #tpu.memory_space<vmem>>, %arg5: memref<16x1xf32, #tpu.memory_space<vmem>>, %arg6: memref<16x1xf32, #tpu.memory_space<vmem>>, %arg7: memref<16x50x2xf32, #tpu.memory_space<vmem>>, %arg8: memref<16x32x16xf32, #tpu.memory_space<vmem>>, %arg9: memref<32x1xf32, #tpu.memory_space<vmem>>, %arg10: memref<32x1xf32, #tpu.memory_space<vmem>>, %arg11: memref<32x1xf32, #tpu.memory_space<vmem>>, %arg12: memref<1x1xf32, #tpu.memory_space<vmem>>, %arg13: memref<1x2xf32, #tpu.memory_space<vmem>>) attributes {dimension_semantics = [], scalar_prefetch = 0 : i64, scratch_operands = 0 : i64, tpu.core_type = #tpu.core_type<tc>} {
    %c0 = arith.constant 0 : index
    %c0_0 = arith.constant 0 : index
    %0 = vector.load %arg1[%c0, %c0_0] : memref<8x48xf32, #tpu.memory_space<vmem>>, vector<8x48xf32>
    %c0_1 = arith.constant 0 : index
    %c0_2 = arith.constant 0 : index
    %1 = vector.load %arg0[%c0_1, %c0_2] : memref<48x338xf32, #tpu.memory_space<vmem>>, vector<48x338xf32>
    %cst = arith.constant dense<0.000000e+00> : vector<8x338xf32>
    %2 = tpu.matmul %0, %1, %cst {dimension_numbers = #tpu.dot_dimension_numbers<[1], [0], [0], [1], [0, 0, 1, 1], [], []>} : vector<8x48xf32>, vector<48x338xf32>, vector<8x338xf32> -> vector<8x338xf32>
    %c0_3 = arith.constant 0 : index
    %c0_4 = arith.constant 0 : index
    %3 = vector.load %arg2[%c0_3, %c0_4] : memref<8x1xf32, #tpu.memory_space<vmem>>, vector<8x1xf32>
    %4 = vector.broadcast %3 : vector<8x1xf32> to vector<8x338xf32>
    %5 = arith.addf %2, %4 : vector<8x338xf32>
    %cst_5 = arith.constant 0.000000e+00 : f32
    %6 = vector.broadcast %cst_5 : f32 to vector<8x338xf32>
    %7 = arith.cmpf oge, %5, %6 : vector<8x338xf32>
    %cst_6 = arith.constant 2.000000e-01 : f32
    %8 = vector.broadcast %cst_6 : f32 to vector<8x338xf32>
    %9 = arith.mulf %8, %5 : vector<8x338xf32>
    %10 = arith.select %7, %5, %9 : vector<8x338xi1>, vector<8x338xf32>
    %c0_7 = arith.constant 0 : index
    %c0_8 = arith.constant 0 : index
    %c0_9 = arith.constant 0 : index
    %11 = vector.load %arg3[%c0_7, %c0_8, %c0_9] : memref<16x338x50xf32, #tpu.memory_space<vmem>>, vector<1x338x50xf32>
    %12 = vector.shape_cast %11 : vector<1x338x50xf32> to vector<338x50xf32>
    %cst_10 = arith.constant dense<0.000000e+00> : vector<8x50xf32>
    %13 = tpu.matmul %10, %12, %cst_10 {dimension_numbers = #tpu.dot_dimension_numbers<[1], [0], [0], [1], [0, 0, 1, 1], [], []>} : vector<8x338xf32>, vector<338x50xf32>, vector<8x50xf32> -> vector<8x50xf32>
    %c0_11 = arith.constant 0 : index
    %c0_12 = arith.constant 0 : index
    %c0_13 = arith.constant 0 : index
    %14 = vector.load %arg4[%c0_11, %c0_12, %c0_13] : memref<16x16x8xf32, #tpu.memory_space<vmem>>, vector<1x16x8xf32>
    %15 = vector.shape_cast %14 : vector<1x16x8xf32> to vector<16x8xf32>
    %cst_14 = arith.constant dense<0.000000e+00> : vector<16x50xf32>
    %16 = tpu.matmul %15, %13, %cst_14 {dimension_numbers = #tpu.dot_dimension_numbers<[1], [0], [0], [1], [0, 0, 1, 1], [], []>} : vector<16x8xf32>, vector<8x50xf32>, vector<16x50xf32> -> vector<16x50xf32>
    %c1 = arith.constant 1 : index
    %c0_15 = arith.constant 0 : index
    %c0_16 = arith.constant 0 : index
    %17 = vector.load %arg3[%c1, %c0_15, %c0_16] : memref<16x338x50xf32, #tpu.memory_space<vmem>>, vector<1x338x50xf32>
    %18 = vector.shape_cast %17 : vector<1x338x50xf32> to vector<338x50xf32>
    %cst_17 = arith.constant dense<0.000000e+00> : vector<8x50xf32>
    %19 = tpu.matmul %10, %18, %cst_17 {dimension_numbers = #tpu.dot_dimension_numbers<[1], [0], [0], [1], [0, 0, 1, 1], [], []>} : vector<8x338xf32>, vector<338x50xf32>, vector<8x50xf32> -> vector<8x50xf32>
    %c1_18 = arith.constant 1 : index
    %c0_19 = arith.constant 0 : index
    %c0_20 = arith.constant 0 : index
    %20 = vector.load %arg4[%c1_18, %c0_19, %c0_20] : memref<16x16x8xf32, #tpu.memory_space<vmem>>, vector<1x16x8xf32>
    %21 = vector.shape_cast %20 : vector<1x16x8xf32> to vector<16x8xf32>
    %cst_21 = arith.constant dense<0.000000e+00> : vector<16x50xf32>
    %22 = tpu.matmul %21, %19, %cst_21 {dimension_numbers = #tpu.dot_dimension_numbers<[1], [0], [0], [1], [0, 0, 1, 1], [], []>} : vector<16x8xf32>, vector<8x50xf32>, vector<16x50xf32> -> vector<16x50xf32>
    %23 = arith.addf %16, %22 : vector<16x50xf32>
    %c2 = arith.constant 2 : index
    %c0_22 = arith.constant 0 : index
    %c0_23 = arith.constant 0 : index
    %24 = vector.load %arg3[%c2, %c0_22, %c0_23] : memref<16x338x50xf32, #tpu.memory_space<vmem>>, vector<1x338x50xf32>
    %25 = vector.shape_cast %24 : vector<1x338x50xf32> to vector<338x50xf32>
    %cst_24 = arith.constant dense<0.000000e+00> : vector<8x50xf32>
    %26 = tpu.matmul %10, %25, %cst_24 {dimension_numbers = #tpu.dot_dimension_numbers<[1], [0], [0], [1], [0, 0, 1, 1], [], []>} : vector<8x338xf32>, vector<338x50xf32>, vector<8x50xf32> -> vector<8x50xf32>
    %c2_25 = arith.constant 2 : index
    %c0_26 = arith.constant 0 : index
    %c0_27 = arith.constant 0 : index
    %27 = vector.load %arg4[%c2_25, %c0_26, %c0_27] : memref<16x16x8xf32, #tpu.memory_space<vmem>>, vector<1x16x8xf32>
    %28 = vector.shape_cast %27 : vector<1x16x8xf32> to vector<16x8xf32>
    %cst_28 = arith.constant dense<0.000000e+00> : vector<16x50xf32>
    %29 = tpu.matmul %28, %26, %cst_28 {dimension_numbers = #tpu.dot_dimension_numbers<[1], [0], [0], [1], [0, 0, 1, 1], [], []>} : vector<16x8xf32>, vector<8x50xf32>, vector<16x50xf32> -> vector<16x50xf32>
    %30 = arith.addf %23, %29 : vector<16x50xf32>
    %c3 = arith.constant 3 : index
    %c0_29 = arith.constant 0 : index
    %c0_30 = arith.constant 0 : index
    %31 = vector.load %arg3[%c3, %c0_29, %c0_30] : memref<16x338x50xf32, #tpu.memory_space<vmem>>, vector<1x338x50xf32>
    %32 = vector.shape_cast %31 : vector<1x338x50xf32> to vector<338x50xf32>
    %cst_31 = arith.constant dense<0.000000e+00> : vector<8x50xf32>
    %33 = tpu.matmul %10, %32, %cst_31 {dimension_numbers = #tpu.dot_dimension_numbers<[1], [0], [0], [1], [0, 0, 1, 1], [], []>} : vector<8x338xf32>, vector<338x50xf32>, vector<8x50xf32> -> vector<8x50xf32>
    %c3_32 = arith.constant 3 : index
    %c0_33 = arith.constant 0 : index
    %c0_34 = arith.constant 0 : index
    %34 = vector.load %arg4[%c3_32, %c0_33, %c0_34] : memref<16x16x8xf32, #tpu.memory_space<vmem>>, vector<1x16x8xf32>
    %35 = vector.shape_cast %34 : vector<1x16x8xf32> to vector<16x8xf32>
    %cst_35 = arith.constant dense<0.000000e+00> : vector<16x50xf32>
    %36 = tpu.matmul %35, %33, %cst_35 {dimension_numbers = #tpu.dot_dimension_numbers<[1], [0], [0], [1], [0, 0, 1, 1], [], []>} : vector<16x8xf32>, vector<8x50xf32>, vector<16x50xf32> -> vector<16x50xf32>
    %37 = arith.addf %30, %36 : vector<16x50xf32>
    %c4 = arith.constant 4 : index
    %c0_36 = arith.constant 0 : index
    %c0_37 = arith.constant 0 : index
    %38 = vector.load %arg3[%c4, %c0_36, %c0_37] : memref<16x338x50xf32, #tpu.memory_space<vmem>>, vector<1x338x50xf32>
    %39 = vector.shape_cast %38 : vector<1x338x50xf32> to vector<338x50xf32>
    %cst_38 = arith.constant dense<0.000000e+00> : vector<8x50xf32>
    %40 = tpu.matmul %10, %39, %cst_38 {dimension_numbers = #tpu.dot_dimension_numbers<[1], [0], [0], [1], [0, 0, 1, 1], [], []>} : vector<8x338xf32>, vector<338x50xf32>, vector<8x50xf32> -> vector<8x50xf32>
    %c4_39 = arith.constant 4 : index
    %c0_40 = arith.constant 0 : index
    %c0_41 = arith.constant 0 : index
    %41 = vector.load %arg4[%c4_39, %c0_40, %c0_41] : memref<16x16x8xf32, #tpu.memory_space<vmem>>, vector<1x16x8xf32>
    %42 = vector.shape_cast %41 : vector<1x16x8xf32> to vector<16x8xf32>
    %cst_42 = arith.constant dense<0.000000e+00> : vector<16x50xf32>
    %43 = tpu.matmul %42, %40, %cst_42 {dimension_numbers = #tpu.dot_dimension_numbers<[1], [0], [0], [1], [0, 0, 1, 1], [], []>} : vector<16x8xf32>, vector<8x50xf32>, vector<16x50xf32> -> vector<16x50xf32>
    %44 = arith.addf %37, %43 : vector<16x50xf32>
    %c5 = arith.constant 5 : index
    %c0_43 = arith.constant 0 : index
    %c0_44 = arith.constant 0 : index
    %45 = vector.load %arg3[%c5, %c0_43, %c0_44] : memref<16x338x50xf32, #tpu.memory_space<vmem>>, vector<1x338x50xf32>
    %46 = vector.shape_cast %45 : vector<1x338x50xf32> to vector<338x50xf32>
    %cst_45 = arith.constant dense<0.000000e+00> : vector<8x50xf32>
    %47 = tpu.matmul %10, %46, %cst_45 {dimension_numbers = #tpu.dot_dimension_numbers<[1], [0], [0], [1], [0, 0, 1, 1], [], []>} : vector<8x338xf32>, vector<338x50xf32>, vector<8x50xf32> -> vector<8x50xf32>
    %c5_46 = arith.constant 5 : index
    %c0_47 = arith.constant 0 : index
    %c0_48 = arith.constant 0 : index
    %48 = vector.load %arg4[%c5_46, %c0_47, %c0_48] : memref<16x16x8xf32, #tpu.memory_space<vmem>>, vector<1x16x8xf32>
    %49 = vector.shape_cast %48 : vector<1x16x8xf32> to vector<16x8xf32>
    %cst_49 = arith.constant dense<0.000000e+00> : vector<16x50xf32>
    %50 = tpu.matmul %49, %47, %cst_49 {dimension_numbers = #tpu.dot_dimension_numbers<[1], [0], [0], [1], [0, 0, 1, 1], [], []>} : vector<16x8xf32>, vector<8x50xf32>, vector<16x50xf32> -> vector<16x50xf32>
    %51 = arith.addf %44, %50 : vector<16x50xf32>
    %c6 = arith.constant 6 : index
    %c0_50 = arith.constant 0 : index
    %c0_51 = arith.constant 0 : index
    %52 = vector.load %arg3[%c6, %c0_50, %c0_51] : memref<16x338x50xf32, #tpu.memory_space<vmem>>, vector<1x338x50xf32>
    %53 = vector.shape_cast %52 : vector<1x338x50xf32> to vector<338x50xf32>
    %cst_52 = arith.constant dense<0.000000e+00> : vector<8x50xf32>
    %54 = tpu.matmul %10, %53, %cst_52 {dimension_numbers = #tpu.dot_dimension_numbers<[1], [0], [0], [1], [0, 0, 1, 1], [], []>} : vector<8x338xf32>, vector<338x50xf32>, vector<8x50xf32> -> vector<8x50xf32>
    %c6_53 = arith.constant 6 : index
    %c0_54 = arith.constant 0 : index
    %c0_55 = arith.constant 0 : index
    %55 = vector.load %arg4[%c6_53, %c0_54, %c0_55] : memref<16x16x8xf32, #tpu.memory_space<vmem>>, vector<1x16x8xf32>
    %56 = vector.shape_cast %55 : vector<1x16x8xf32> to vector<16x8xf32>
    %cst_56 = arith.constant dense<0.000000e+00> : vector<16x50xf32>
    %57 = tpu.matmul %56, %54, %cst_56 {dimension_numbers = #tpu.dot_dimension_numbers<[1], [0], [0], [1], [0, 0, 1, 1], [], []>} : vector<16x8xf32>, vector<8x50xf32>, vector<16x50xf32> -> vector<16x50xf32>
    %58 = arith.addf %51, %57 : vector<16x50xf32>
    %c7 = arith.constant 7 : index
    %c0_57 = arith.constant 0 : index
    %c0_58 = arith.constant 0 : index
    %59 = vector.load %arg3[%c7, %c0_57, %c0_58] : memref<16x338x50xf32, #tpu.memory_space<vmem>>, vector<1x338x50xf32>
    %60 = vector.shape_cast %59 : vector<1x338x50xf32> to vector<338x50xf32>
    %cst_59 = arith.constant dense<0.000000e+00> : vector<8x50xf32>
    %61 = tpu.matmul %10, %60, %cst_59 {dimension_numbers = #tpu.dot_dimension_numbers<[1], [0], [0], [1], [0, 0, 1, 1], [], []>} : vector<8x338xf32>, vector<338x50xf32>, vector<8x50xf32> -> vector<8x50xf32>
    %c7_60 = arith.constant 7 : index
    %c0_61 = arith.constant 0 : index
    %c0_62 = arith.constant 0 : index
    %62 = vector.load %arg4[%c7_60, %c0_61, %c0_62] : memref<16x16x8xf32, #tpu.memory_space<vmem>>, vector<1x16x8xf32>
    %63 = vector.shape_cast %62 : vector<1x16x8xf32> to vector<16x8xf32>
    %cst_63 = arith.constant dense<0.000000e+00> : vector<16x50xf32>
    %64 = tpu.matmul %63, %61, %cst_63 {dimension_numbers = #tpu.dot_dimension_numbers<[1], [0], [0], [1], [0, 0, 1, 1], [], []>} : vector<16x8xf32>, vector<8x50xf32>, vector<16x50xf32> -> vector<16x50xf32>
    %65 = arith.addf %58, %64 : vector<16x50xf32>
    %c8 = arith.constant 8 : index
    %c0_64 = arith.constant 0 : index
    %c0_65 = arith.constant 0 : index
    %66 = vector.load %arg3[%c8, %c0_64, %c0_65] : memref<16x338x50xf32, #tpu.memory_space<vmem>>, vector<1x338x50xf32>
    %67 = vector.shape_cast %66 : vector<1x338x50xf32> to vector<338x50xf32>
    %cst_66 = arith.constant dense<0.000000e+00> : vector<8x50xf32>
    %68 = tpu.matmul %10, %67, %cst_66 {dimension_numbers = #tpu.dot_dimension_numbers<[1], [0], [0], [1], [0, 0, 1, 1], [], []>} : vector<8x338xf32>, vector<338x50xf32>, vector<8x50xf32> -> vector<8x50xf32>
    %c8_67 = arith.constant 8 : index
    %c0_68 = arith.constant 0 : index
    %c0_69 = arith.constant 0 : index
    %69 = vector.load %arg4[%c8_67, %c0_68, %c0_69] : memref<16x16x8xf32, #tpu.memory_space<vmem>>, vector<1x16x8xf32>
    %70 = vector.shape_cast %69 : vector<1x16x8xf32> to vector<16x8xf32>
    %cst_70 = arith.constant dense<0.000000e+00> : vector<16x50xf32>
    %71 = tpu.matmul %70, %68, %cst_70 {dimension_numbers = #tpu.dot_dimension_numbers<[1], [0], [0], [1], [0, 0, 1, 1], [], []>} : vector<16x8xf32>, vector<8x50xf32>, vector<16x50xf32> -> vector<16x50xf32>
    %72 = arith.addf %65, %71 : vector<16x50xf32>
    %c9 = arith.constant 9 : index
    %c0_71 = arith.constant 0 : index
    %c0_72 = arith.constant 0 : index
    %73 = vector.load %arg3[%c9, %c0_71, %c0_72] : memref<16x338x50xf32, #tpu.memory_space<vmem>>, vector<1x338x50xf32>
    %74 = vector.shape_cast %73 : vector<1x338x50xf32> to vector<338x50xf32>
    %cst_73 = arith.constant dense<0.000000e+00> : vector<8x50xf32>
    %75 = tpu.matmul %10, %74, %cst_73 {dimension_numbers = #tpu.dot_dimension_numbers<[1], [0], [0], [1], [0, 0, 1, 1], [], []>} : vector<8x338xf32>, vector<338x50xf32>, vector<8x50xf32> -> vector<8x50xf32>
    %c9_74 = arith.constant 9 : index
    %c0_75 = arith.constant 0 : index
    %c0_76 = arith.constant 0 : index
    %76 = vector.load %arg4[%c9_74, %c0_75, %c0_76] : memref<16x16x8xf32, #tpu.memory_space<vmem>>, vector<1x16x8xf32>
    %77 = vector.shape_cast %76 : vector<1x16x8xf32> to vector<16x8xf32>
    %cst_77 = arith.constant dense<0.000000e+00> : vector<16x50xf32>
    %78 = tpu.matmul %77, %75, %cst_77 {dimension_numbers = #tpu.dot_dimension_numbers<[1], [0], [0], [1], [0, 0, 1, 1], [], []>} : vector<16x8xf32>, vector<8x50xf32>, vector<16x50xf32> -> vector<16x50xf32>
    %79 = arith.addf %72, %78 : vector<16x50xf32>
    %c10 = arith.constant 10 : index
    %c0_78 = arith.constant 0 : index
    %c0_79 = arith.constant 0 : index
    %80 = vector.load %arg3[%c10, %c0_78, %c0_79] : memref<16x338x50xf32, #tpu.memory_space<vmem>>, vector<1x338x50xf32>
    %81 = vector.shape_cast %80 : vector<1x338x50xf32> to vector<338x50xf32>
    %cst_80 = arith.constant dense<0.000000e+00> : vector<8x50xf32>
    %82 = tpu.matmul %10, %81, %cst_80 {dimension_numbers = #tpu.dot_dimension_numbers<[1], [0], [0], [1], [0, 0, 1, 1], [], []>} : vector<8x338xf32>, vector<338x50xf32>, vector<8x50xf32> -> vector<8x50xf32>
    %c10_81 = arith.constant 10 : index
    %c0_82 = arith.constant 0 : index
    %c0_83 = arith.constant 0 : index
    %83 = vector.load %arg4[%c10_81, %c0_82, %c0_83] : memref<16x16x8xf32, #tpu.memory_space<vmem>>, vector<1x16x8xf32>
    %84 = vector.shape_cast %83 : vector<1x16x8xf32> to vector<16x8xf32>
    %cst_84 = arith.constant dense<0.000000e+00> : vector<16x50xf32>
    %85 = tpu.matmul %84, %82, %cst_84 {dimension_numbers = #tpu.dot_dimension_numbers<[1], [0], [0], [1], [0, 0, 1, 1], [], []>} : vector<16x8xf32>, vector<8x50xf32>, vector<16x50xf32> -> vector<16x50xf32>
    %86 = arith.addf %79, %85 : vector<16x50xf32>
    %c11 = arith.constant 11 : index
    %c0_85 = arith.constant 0 : index
    %c0_86 = arith.constant 0 : index
    %87 = vector.load %arg3[%c11, %c0_85, %c0_86] : memref<16x338x50xf32, #tpu.memory_space<vmem>>, vector<1x338x50xf32>
    %88 = vector.shape_cast %87 : vector<1x338x50xf32> to vector<338x50xf32>
    %cst_87 = arith.constant dense<0.000000e+00> : vector<8x50xf32>
    %89 = tpu.matmul %10, %88, %cst_87 {dimension_numbers = #tpu.dot_dimension_numbers<[1], [0], [0], [1], [0, 0, 1, 1], [], []>} : vector<8x338xf32>, vector<338x50xf32>, vector<8x50xf32> -> vector<8x50xf32>
    %c11_88 = arith.constant 11 : index
    %c0_89 = arith.constant 0 : index
    %c0_90 = arith.constant 0 : index
    %90 = vector.load %arg4[%c11_88, %c0_89, %c0_90] : memref<16x16x8xf32, #tpu.memory_space<vmem>>, vector<1x16x8xf32>
    %91 = vector.shape_cast %90 : vector<1x16x8xf32> to vector<16x8xf32>
    %cst_91 = arith.constant dense<0.000000e+00> : vector<16x50xf32>
    %92 = tpu.matmul %91, %89, %cst_91 {dimension_numbers = #tpu.dot_dimension_numbers<[1], [0], [0], [1], [0, 0, 1, 1], [], []>} : vector<16x8xf32>, vector<8x50xf32>, vector<16x50xf32> -> vector<16x50xf32>
    %93 = arith.addf %86, %92 : vector<16x50xf32>
    %c12 = arith.constant 12 : index
    %c0_92 = arith.constant 0 : index
    %c0_93 = arith.constant 0 : index
    %94 = vector.load %arg3[%c12, %c0_92, %c0_93] : memref<16x338x50xf32, #tpu.memory_space<vmem>>, vector<1x338x50xf32>
    %95 = vector.shape_cast %94 : vector<1x338x50xf32> to vector<338x50xf32>
    %cst_94 = arith.constant dense<0.000000e+00> : vector<8x50xf32>
    %96 = tpu.matmul %10, %95, %cst_94 {dimension_numbers = #tpu.dot_dimension_numbers<[1], [0], [0], [1], [0, 0, 1, 1], [], []>} : vector<8x338xf32>, vector<338x50xf32>, vector<8x50xf32> -> vector<8x50xf32>
    %c12_95 = arith.constant 12 : index
    %c0_96 = arith.constant 0 : index
    %c0_97 = arith.constant 0 : index
    %97 = vector.load %arg4[%c12_95, %c0_96, %c0_97] : memref<16x16x8xf32, #tpu.memory_space<vmem>>, vector<1x16x8xf32>
    %98 = vector.shape_cast %97 : vector<1x16x8xf32> to vector<16x8xf32>
    %cst_98 = arith.constant dense<0.000000e+00> : vector<16x50xf32>
    %99 = tpu.matmul %98, %96, %cst_98 {dimension_numbers = #tpu.dot_dimension_numbers<[1], [0], [0], [1], [0, 0, 1, 1], [], []>} : vector<16x8xf32>, vector<8x50xf32>, vector<16x50xf32> -> vector<16x50xf32>
    %100 = arith.addf %93, %99 : vector<16x50xf32>
    %c13 = arith.constant 13 : index
    %c0_99 = arith.constant 0 : index
    %c0_100 = arith.constant 0 : index
    %101 = vector.load %arg3[%c13, %c0_99, %c0_100] : memref<16x338x50xf32, #tpu.memory_space<vmem>>, vector<1x338x50xf32>
    %102 = vector.shape_cast %101 : vector<1x338x50xf32> to vector<338x50xf32>
    %cst_101 = arith.constant dense<0.000000e+00> : vector<8x50xf32>
    %103 = tpu.matmul %10, %102, %cst_101 {dimension_numbers = #tpu.dot_dimension_numbers<[1], [0], [0], [1], [0, 0, 1, 1], [], []>} : vector<8x338xf32>, vector<338x50xf32>, vector<8x50xf32> -> vector<8x50xf32>
    %c13_102 = arith.constant 13 : index
    %c0_103 = arith.constant 0 : index
    %c0_104 = arith.constant 0 : index
    %104 = vector.load %arg4[%c13_102, %c0_103, %c0_104] : memref<16x16x8xf32, #tpu.memory_space<vmem>>, vector<1x16x8xf32>
    %105 = vector.shape_cast %104 : vector<1x16x8xf32> to vector<16x8xf32>
    %cst_105 = arith.constant dense<0.000000e+00> : vector<16x50xf32>
    %106 = tpu.matmul %105, %103, %cst_105 {dimension_numbers = #tpu.dot_dimension_numbers<[1], [0], [0], [1], [0, 0, 1, 1], [], []>} : vector<16x8xf32>, vector<8x50xf32>, vector<16x50xf32> -> vector<16x50xf32>
    %107 = arith.addf %100, %106 : vector<16x50xf32>
    %c14 = arith.constant 14 : index
    %c0_106 = arith.constant 0 : index
    %c0_107 = arith.constant 0 : index
    %108 = vector.load %arg3[%c14, %c0_106, %c0_107] : memref<16x338x50xf32, #tpu.memory_space<vmem>>, vector<1x338x50xf32>
    %109 = vector.shape_cast %108 : vector<1x338x50xf32> to vector<338x50xf32>
    %cst_108 = arith.constant dense<0.000000e+00> : vector<8x50xf32>
    %110 = tpu.matmul %10, %109, %cst_108 {dimension_numbers = #tpu.dot_dimension_numbers<[1], [0], [0], [1], [0, 0, 1, 1], [], []>} : vector<8x338xf32>, vector<338x50xf32>, vector<8x50xf32> -> vector<8x50xf32>
    %c14_109 = arith.constant 14 : index
    %c0_110 = arith.constant 0 : index
    %c0_111 = arith.constant 0 : index
    %111 = vector.load %arg4[%c14_109, %c0_110, %c0_111] : memref<16x16x8xf32, #tpu.memory_space<vmem>>, vector<1x16x8xf32>
    %112 = vector.shape_cast %111 : vector<1x16x8xf32> to vector<16x8xf32>
    %cst_112 = arith.constant dense<0.000000e+00> : vector<16x50xf32>
    %113 = tpu.matmul %112, %110, %cst_112 {dimension_numbers = #tpu.dot_dimension_numbers<[1], [0], [0], [1], [0, 0, 1, 1], [], []>} : vector<16x8xf32>, vector<8x50xf32>, vector<16x50xf32> -> vector<16x50xf32>
    %114 = arith.addf %107, %113 : vector<16x50xf32>
    %c15 = arith.constant 15 : index
    %c0_113 = arith.constant 0 : index
    %c0_114 = arith.constant 0 : index
    %115 = vector.load %arg3[%c15, %c0_113, %c0_114] : memref<16x338x50xf32, #tpu.memory_space<vmem>>, vector<1x338x50xf32>
    %116 = vector.shape_cast %115 : vector<1x338x50xf32> to vector<338x50xf32>
    %cst_115 = arith.constant dense<0.000000e+00> : vector<8x50xf32>
    %117 = tpu.matmul %10, %116, %cst_115 {dimension_numbers = #tpu.dot_dimension_numbers<[1], [0], [0], [1], [0, 0, 1, 1], [], []>} : vector<8x338xf32>, vector<338x50xf32>, vector<8x50xf32> -> vector<8x50xf32>
    %c15_116 = arith.constant 15 : index
    %c0_117 = arith.constant 0 : index
    %c0_118 = arith.constant 0 : index
    %118 = vector.load %arg4[%c15_116, %c0_117, %c0_118] : memref<16x16x8xf32, #tpu.memory_space<vmem>>, vector<1x16x8xf32>
    %119 = vector.shape_cast %118 : vector<1x16x8xf32> to vector<16x8xf32>
    %cst_119 = arith.constant dense<0.000000e+00> : vector<16x50xf32>
    %120 = tpu.matmul %119, %117, %cst_119 {dimension_numbers = #tpu.dot_dimension_numbers<[1], [0], [0], [1], [0, 0, 1, 1], [], []>} : vector<16x8xf32>, vector<8x50xf32>, vector<16x50xf32> -> vector<16x50xf32>
    %121 = arith.addf %114, %120 : vector<16x50xf32>
    %c0_120 = arith.constant 0 : index
    %c0_121 = arith.constant 0 : index
    %122 = vector.load %arg5[%c0_120, %c0_121] : memref<16x1xf32, #tpu.memory_space<vmem>>, vector<16x1xf32>
    %c0_122 = arith.constant 0 : index
    %c0_123 = arith.constant 0 : index
    %123 = vector.load %arg6[%c0_122, %c0_123] : memref<16x1xf32, #tpu.memory_space<vmem>>, vector<16x1xf32>
    %cst_124 = arith.constant dense<0.000000e+00> : vector<16xf32>
    %124 = vector.multi_reduction <add>, %121, %cst_124 [1] : vector<16x50xf32> to vector<16xf32>
    %125 = vector.shape_cast %124 : vector<16xf32> to vector<16x1xf32>
    %cst_125 = arith.constant 5.000000e+01 : f32
    %126 = vector.broadcast %cst_125 : f32 to vector<16x1xf32>
    %127 = arith.divf %125, %126 : vector<16x1xf32>
    %128 = vector.broadcast %127 : vector<16x1xf32> to vector<16x50xf32>
    %129 = arith.subf %121, %128 : vector<16x50xf32>
    %130 = arith.mulf %129, %129 : vector<16x50xf32>
    %cst_126 = arith.constant dense<0.000000e+00> : vector<16xf32>
    %131 = vector.multi_reduction <add>, %130, %cst_126 [1] : vector<16x50xf32> to vector<16xf32>
    %132 = vector.shape_cast %131 : vector<16xf32> to vector<16x1xf32>
    %cst_127 = arith.constant 5.000000e+01 : f32
    %133 = vector.broadcast %cst_127 : f32 to vector<16x1xf32>
    %134 = arith.divf %132, %133 : vector<16x1xf32>
    %135 = vector.broadcast %127 : vector<16x1xf32> to vector<16x50xf32>
    %136 = arith.subf %121, %135 : vector<16x50xf32>
    %cst_128 = arith.constant 9.99999974E-6 : f32
    %137 = vector.broadcast %cst_128 : f32 to vector<16x1xf32>
    %138 = arith.addf %134, %137 : vector<16x1xf32>
    %139 = math.rsqrt %138 : vector<16x1xf32>
    %140 = vector.broadcast %139 : vector<16x1xf32> to vector<16x50xf32>
    %141 = arith.mulf %136, %140 : vector<16x50xf32>
    %142 = vector.broadcast %122 : vector<16x1xf32> to vector<16x50xf32>
    %143 = arith.mulf %141, %142 : vector<16x50xf32>
    %144 = vector.broadcast %123 : vector<16x1xf32> to vector<16x50xf32>
    %145 = arith.addf %143, %144 : vector<16x50xf32>
    %cst_129 = arith.constant 0.000000e+00 : f32
    %146 = vector.broadcast %cst_129 : f32 to vector<16x50xf32>
    %147 = arith.cmpf oge, %145, %146 : vector<16x50xf32>
    %cst_130 = arith.constant 2.000000e-01 : f32
    %148 = vector.broadcast %cst_130 : f32 to vector<16x50xf32>
    %149 = arith.mulf %148, %145 : vector<16x50xf32>
    %150 = arith.select %147, %145, %149 : vector<16x50xi1>, vector<16x50xf32>
    %c0_131 = arith.constant 0 : index
    %c0_132 = arith.constant 0 : index
    %c0_133 = arith.constant 0 : index
    %151 = vector.load %arg7[%c0_131, %c0_132, %c0_133] : memref<16x50x2xf32, #tpu.memory_space<vmem>>, vector<1x50x2xf32>
    %152 = vector.shape_cast %151 : vector<1x50x2xf32> to vector<50x2xf32>
    %cst_134 = arith.constant dense<0.000000e+00> : vector<16x2xf32>
    %153 = tpu.matmul %150, %152, %cst_134 {dimension_numbers = #tpu.dot_dimension_numbers<[1], [0], [0], [1], [0, 0, 1, 1], [], []>} : vector<16x50xf32>, vector<50x2xf32>, vector<16x2xf32> -> vector<16x2xf32>
    %c0_135 = arith.constant 0 : index
    %c0_136 = arith.constant 0 : index
    %c0_137 = arith.constant 0 : index
    %154 = vector.load %arg8[%c0_135, %c0_136, %c0_137] : memref<16x32x16xf32, #tpu.memory_space<vmem>>, vector<1x32x16xf32>
    %155 = vector.shape_cast %154 : vector<1x32x16xf32> to vector<32x16xf32>
    %cst_138 = arith.constant dense<0.000000e+00> : vector<32x2xf32>
    %156 = tpu.matmul %155, %153, %cst_138 {dimension_numbers = #tpu.dot_dimension_numbers<[1], [0], [0], [1], [0, 0, 1, 1], [], []>} : vector<32x16xf32>, vector<16x2xf32>, vector<32x2xf32> -> vector<32x2xf32>
    %c1_139 = arith.constant 1 : index
    %c0_140 = arith.constant 0 : index
    %c0_141 = arith.constant 0 : index
    %157 = vector.load %arg7[%c1_139, %c0_140, %c0_141] : memref<16x50x2xf32, #tpu.memory_space<vmem>>, vector<1x50x2xf32>
    %158 = vector.shape_cast %157 : vector<1x50x2xf32> to vector<50x2xf32>
    %cst_142 = arith.constant dense<0.000000e+00> : vector<16x2xf32>
    %159 = tpu.matmul %150, %158, %cst_142 {dimension_numbers = #tpu.dot_dimension_numbers<[1], [0], [0], [1], [0, 0, 1, 1], [], []>} : vector<16x50xf32>, vector<50x2xf32>, vector<16x2xf32> -> vector<16x2xf32>
    %c1_143 = arith.constant 1 : index
    %c0_144 = arith.constant 0 : index
    %c0_145 = arith.constant 0 : index
    %160 = vector.load %arg8[%c1_143, %c0_144, %c0_145] : memref<16x32x16xf32, #tpu.memory_space<vmem>>, vector<1x32x16xf32>
    %161 = vector.shape_cast %160 : vector<1x32x16xf32> to vector<32x16xf32>
    %cst_146 = arith.constant dense<0.000000e+00> : vector<32x2xf32>
    %162 = tpu.matmul %161, %159, %cst_146 {dimension_numbers = #tpu.dot_dimension_numbers<[1], [0], [0], [1], [0, 0, 1, 1], [], []>} : vector<32x16xf32>, vector<16x2xf32>, vector<32x2xf32> -> vector<32x2xf32>
    %163 = arith.addf %156, %162 : vector<32x2xf32>
    %c2_147 = arith.constant 2 : index
    %c0_148 = arith.constant 0 : index
    %c0_149 = arith.constant 0 : index
    %164 = vector.load %arg7[%c2_147, %c0_148, %c0_149] : memref<16x50x2xf32, #tpu.memory_space<vmem>>, vector<1x50x2xf32>
    %165 = vector.shape_cast %164 : vector<1x50x2xf32> to vector<50x2xf32>
    %cst_150 = arith.constant dense<0.000000e+00> : vector<16x2xf32>
    %166 = tpu.matmul %150, %165, %cst_150 {dimension_numbers = #tpu.dot_dimension_numbers<[1], [0], [0], [1], [0, 0, 1, 1], [], []>} : vector<16x50xf32>, vector<50x2xf32>, vector<16x2xf32> -> vector<16x2xf32>
    %c2_151 = arith.constant 2 : index
    %c0_152 = arith.constant 0 : index
    %c0_153 = arith.constant 0 : index
    %167 = vector.load %arg8[%c2_151, %c0_152, %c0_153] : memref<16x32x16xf32, #tpu.memory_space<vmem>>, vector<1x32x16xf32>
    %168 = vector.shape_cast %167 : vector<1x32x16xf32> to vector<32x16xf32>
    %cst_154 = arith.constant dense<0.000000e+00> : vector<32x2xf32>
    %169 = tpu.matmul %168, %166, %cst_154 {dimension_numbers = #tpu.dot_dimension_numbers<[1], [0], [0], [1], [0, 0, 1, 1], [], []>} : vector<32x16xf32>, vector<16x2xf32>, vector<32x2xf32> -> vector<32x2xf32>
    %170 = arith.addf %163, %169 : vector<32x2xf32>
    %c3_155 = arith.constant 3 : index
    %c0_156 = arith.constant 0 : index
    %c0_157 = arith.constant 0 : index
    %171 = vector.load %arg7[%c3_155, %c0_156, %c0_157] : memref<16x50x2xf32, #tpu.memory_space<vmem>>, vector<1x50x2xf32>
    %172 = vector.shape_cast %171 : vector<1x50x2xf32> to vector<50x2xf32>
    %cst_158 = arith.constant dense<0.000000e+00> : vector<16x2xf32>
    %173 = tpu.matmul %150, %172, %cst_158 {dimension_numbers = #tpu.dot_dimension_numbers<[1], [0], [0], [1], [0, 0, 1, 1], [], []>} : vector<16x50xf32>, vector<50x2xf32>, vector<16x2xf32> -> vector<16x2xf32>
    %c3_159 = arith.constant 3 : index
    %c0_160 = arith.constant 0 : index
    %c0_161 = arith.constant 0 : index
    %174 = vector.load %arg8[%c3_159, %c0_160, %c0_161] : memref<16x32x16xf32, #tpu.memory_space<vmem>>, vector<1x32x16xf32>
    %175 = vector.shape_cast %174 : vector<1x32x16xf32> to vector<32x16xf32>
    %cst_162 = arith.constant dense<0.000000e+00> : vector<32x2xf32>
    %176 = tpu.matmul %175, %173, %cst_162 {dimension_numbers = #tpu.dot_dimension_numbers<[1], [0], [0], [1], [0, 0, 1, 1], [], []>} : vector<32x16xf32>, vector<16x2xf32>, vector<32x2xf32> -> vector<32x2xf32>
    %177 = arith.addf %170, %176 : vector<32x2xf32>
    %c4_163 = arith.constant 4 : index
    %c0_164 = arith.constant 0 : index
    %c0_165 = arith.constant 0 : index
    %178 = vector.load %arg7[%c4_163, %c0_164, %c0_165] : memref<16x50x2xf32, #tpu.memory_space<vmem>>, vector<1x50x2xf32>
    %179 = vector.shape_cast %178 : vector<1x50x2xf32> to vector<50x2xf32>
    %cst_166 = arith.constant dense<0.000000e+00> : vector<16x2xf32>
    %180 = tpu.matmul %150, %179, %cst_166 {dimension_numbers = #tpu.dot_dimension_numbers<[1], [0], [0], [1], [0, 0, 1, 1], [], []>} : vector<16x50xf32>, vector<50x2xf32>, vector<16x2xf32> -> vector<16x2xf32>
    %c4_167 = arith.constant 4 : index
    %c0_168 = arith.constant 0 : index
    %c0_169 = arith.constant 0 : index
    %181 = vector.load %arg8[%c4_167, %c0_168, %c0_169] : memref<16x32x16xf32, #tpu.memory_space<vmem>>, vector<1x32x16xf32>
    %182 = vector.shape_cast %181 : vector<1x32x16xf32> to vector<32x16xf32>
    %cst_170 = arith.constant dense<0.000000e+00> : vector<32x2xf32>
    %183 = tpu.matmul %182, %180, %cst_170 {dimension_numbers = #tpu.dot_dimension_numbers<[1], [0], [0], [1], [0, 0, 1, 1], [], []>} : vector<32x16xf32>, vector<16x2xf32>, vector<32x2xf32> -> vector<32x2xf32>
    %184 = arith.addf %177, %183 : vector<32x2xf32>
    %c5_171 = arith.constant 5 : index
    %c0_172 = arith.constant 0 : index
    %c0_173 = arith.constant 0 : index
    %185 = vector.load %arg7[%c5_171, %c0_172, %c0_173] : memref<16x50x2xf32, #tpu.memory_space<vmem>>, vector<1x50x2xf32>
    %186 = vector.shape_cast %185 : vector<1x50x2xf32> to vector<50x2xf32>
    %cst_174 = arith.constant dense<0.000000e+00> : vector<16x2xf32>
    %187 = tpu.matmul %150, %186, %cst_174 {dimension_numbers = #tpu.dot_dimension_numbers<[1], [0], [0], [1], [0, 0, 1, 1], [], []>} : vector<16x50xf32>, vector<50x2xf32>, vector<16x2xf32> -> vector<16x2xf32>
    %c5_175 = arith.constant 5 : index
    %c0_176 = arith.constant 0 : index
    %c0_177 = arith.constant 0 : index
    %188 = vector.load %arg8[%c5_175, %c0_176, %c0_177] : memref<16x32x16xf32, #tpu.memory_space<vmem>>, vector<1x32x16xf32>
    %189 = vector.shape_cast %188 : vector<1x32x16xf32> to vector<32x16xf32>
    %cst_178 = arith.constant dense<0.000000e+00> : vector<32x2xf32>
    %190 = tpu.matmul %189, %187, %cst_178 {dimension_numbers = #tpu.dot_dimension_numbers<[1], [0], [0], [1], [0, 0, 1, 1], [], []>} : vector<32x16xf32>, vector<16x2xf32>, vector<32x2xf32> -> vector<32x2xf32>
    %191 = arith.addf %184, %190 : vector<32x2xf32>
    %c6_179 = arith.constant 6 : index
    %c0_180 = arith.constant 0 : index
    %c0_181 = arith.constant 0 : index
    %192 = vector.load %arg7[%c6_179, %c0_180, %c0_181] : memref<16x50x2xf32, #tpu.memory_space<vmem>>, vector<1x50x2xf32>
    %193 = vector.shape_cast %192 : vector<1x50x2xf32> to vector<50x2xf32>
    %cst_182 = arith.constant dense<0.000000e+00> : vector<16x2xf32>
    %194 = tpu.matmul %150, %193, %cst_182 {dimension_numbers = #tpu.dot_dimension_numbers<[1], [0], [0], [1], [0, 0, 1, 1], [], []>} : vector<16x50xf32>, vector<50x2xf32>, vector<16x2xf32> -> vector<16x2xf32>
    %c6_183 = arith.constant 6 : index
    %c0_184 = arith.constant 0 : index
    %c0_185 = arith.constant 0 : index
    %195 = vector.load %arg8[%c6_183, %c0_184, %c0_185] : memref<16x32x16xf32, #tpu.memory_space<vmem>>, vector<1x32x16xf32>
    %196 = vector.shape_cast %195 : vector<1x32x16xf32> to vector<32x16xf32>
    %cst_186 = arith.constant dense<0.000000e+00> : vector<32x2xf32>
    %197 = tpu.matmul %196, %194, %cst_186 {dimension_numbers = #tpu.dot_dimension_numbers<[1], [0], [0], [1], [0, 0, 1, 1], [], []>} : vector<32x16xf32>, vector<16x2xf32>, vector<32x2xf32> -> vector<32x2xf32>
    %198 = arith.addf %191, %197 : vector<32x2xf32>
    %c7_187 = arith.constant 7 : index
    %c0_188 = arith.constant 0 : index
    %c0_189 = arith.constant 0 : index
    %199 = vector.load %arg7[%c7_187, %c0_188, %c0_189] : memref<16x50x2xf32, #tpu.memory_space<vmem>>, vector<1x50x2xf32>
    %200 = vector.shape_cast %199 : vector<1x50x2xf32> to vector<50x2xf32>
    %cst_190 = arith.constant dense<0.000000e+00> : vector<16x2xf32>
    %201 = tpu.matmul %150, %200, %cst_190 {dimension_numbers = #tpu.dot_dimension_numbers<[1], [0], [0], [1], [0, 0, 1, 1], [], []>} : vector<16x50xf32>, vector<50x2xf32>, vector<16x2xf32> -> vector<16x2xf32>
    %c7_191 = arith.constant 7 : index
    %c0_192 = arith.constant 0 : index
    %c0_193 = arith.constant 0 : index
    %202 = vector.load %arg8[%c7_191, %c0_192, %c0_193] : memref<16x32x16xf32, #tpu.memory_space<vmem>>, vector<1x32x16xf32>
    %203 = vector.shape_cast %202 : vector<1x32x16xf32> to vector<32x16xf32>
    %cst_194 = arith.constant dense<0.000000e+00> : vector<32x2xf32>
    %204 = tpu.matmul %203, %201, %cst_194 {dimension_numbers = #tpu.dot_dimension_numbers<[1], [0], [0], [1], [0, 0, 1, 1], [], []>} : vector<32x16xf32>, vector<16x2xf32>, vector<32x2xf32> -> vector<32x2xf32>
    %205 = arith.addf %198, %204 : vector<32x2xf32>
    %c8_195 = arith.constant 8 : index
    %c0_196 = arith.constant 0 : index
    %c0_197 = arith.constant 0 : index
    %206 = vector.load %arg7[%c8_195, %c0_196, %c0_197] : memref<16x50x2xf32, #tpu.memory_space<vmem>>, vector<1x50x2xf32>
    %207 = vector.shape_cast %206 : vector<1x50x2xf32> to vector<50x2xf32>
    %cst_198 = arith.constant dense<0.000000e+00> : vector<16x2xf32>
    %208 = tpu.matmul %150, %207, %cst_198 {dimension_numbers = #tpu.dot_dimension_numbers<[1], [0], [0], [1], [0, 0, 1, 1], [], []>} : vector<16x50xf32>, vector<50x2xf32>, vector<16x2xf32> -> vector<16x2xf32>
    %c8_199 = arith.constant 8 : index
    %c0_200 = arith.constant 0 : index
    %c0_201 = arith.constant 0 : index
    %209 = vector.load %arg8[%c8_199, %c0_200, %c0_201] : memref<16x32x16xf32, #tpu.memory_space<vmem>>, vector<1x32x16xf32>
    %210 = vector.shape_cast %209 : vector<1x32x16xf32> to vector<32x16xf32>
    %cst_202 = arith.constant dense<0.000000e+00> : vector<32x2xf32>
    %211 = tpu.matmul %210, %208, %cst_202 {dimension_numbers = #tpu.dot_dimension_numbers<[1], [0], [0], [1], [0, 0, 1, 1], [], []>} : vector<32x16xf32>, vector<16x2xf32>, vector<32x2xf32> -> vector<32x2xf32>
    %212 = arith.addf %205, %211 : vector<32x2xf32>
    %c9_203 = arith.constant 9 : index
    %c0_204 = arith.constant 0 : index
    %c0_205 = arith.constant 0 : index
    %213 = vector.load %arg7[%c9_203, %c0_204, %c0_205] : memref<16x50x2xf32, #tpu.memory_space<vmem>>, vector<1x50x2xf32>
    %214 = vector.shape_cast %213 : vector<1x50x2xf32> to vector<50x2xf32>
    %cst_206 = arith.constant dense<0.000000e+00> : vector<16x2xf32>
    %215 = tpu.matmul %150, %214, %cst_206 {dimension_numbers = #tpu.dot_dimension_numbers<[1], [0], [0], [1], [0, 0, 1, 1], [], []>} : vector<16x50xf32>, vector<50x2xf32>, vector<16x2xf32> -> vector<16x2xf32>
    %c9_207 = arith.constant 9 : index
    %c0_208 = arith.constant 0 : index
    %c0_209 = arith.constant 0 : index
    %216 = vector.load %arg8[%c9_207, %c0_208, %c0_209] : memref<16x32x16xf32, #tpu.memory_space<vmem>>, vector<1x32x16xf32>
    %217 = vector.shape_cast %216 : vector<1x32x16xf32> to vector<32x16xf32>
    %cst_210 = arith.constant dense<0.000000e+00> : vector<32x2xf32>
    %218 = tpu.matmul %217, %215, %cst_210 {dimension_numbers = #tpu.dot_dimension_numbers<[1], [0], [0], [1], [0, 0, 1, 1], [], []>} : vector<32x16xf32>, vector<16x2xf32>, vector<32x2xf32> -> vector<32x2xf32>
    %219 = arith.addf %212, %218 : vector<32x2xf32>
    %c10_211 = arith.constant 10 : index
    %c0_212 = arith.constant 0 : index
    %c0_213 = arith.constant 0 : index
    %220 = vector.load %arg7[%c10_211, %c0_212, %c0_213] : memref<16x50x2xf32, #tpu.memory_space<vmem>>, vector<1x50x2xf32>
    %221 = vector.shape_cast %220 : vector<1x50x2xf32> to vector<50x2xf32>
    %cst_214 = arith.constant dense<0.000000e+00> : vector<16x2xf32>
    %222 = tpu.matmul %150, %221, %cst_214 {dimension_numbers = #tpu.dot_dimension_numbers<[1], [0], [0], [1], [0, 0, 1, 1], [], []>} : vector<16x50xf32>, vector<50x2xf32>, vector<16x2xf32> -> vector<16x2xf32>
    %c10_215 = arith.constant 10 : index
    %c0_216 = arith.constant 0 : index
    %c0_217 = arith.constant 0 : index
    %223 = vector.load %arg8[%c10_215, %c0_216, %c0_217] : memref<16x32x16xf32, #tpu.memory_space<vmem>>, vector<1x32x16xf32>
    %224 = vector.shape_cast %223 : vector<1x32x16xf32> to vector<32x16xf32>
    %cst_218 = arith.constant dense<0.000000e+00> : vector<32x2xf32>
    %225 = tpu.matmul %224, %222, %cst_218 {dimension_numbers = #tpu.dot_dimension_numbers<[1], [0], [0], [1], [0, 0, 1, 1], [], []>} : vector<32x16xf32>, vector<16x2xf32>, vector<32x2xf32> -> vector<32x2xf32>
    %226 = arith.addf %219, %225 : vector<32x2xf32>
    %c11_219 = arith.constant 11 : index
    %c0_220 = arith.constant 0 : index
    %c0_221 = arith.constant 0 : index
    %227 = vector.load %arg7[%c11_219, %c0_220, %c0_221] : memref<16x50x2xf32, #tpu.memory_space<vmem>>, vector<1x50x2xf32>
    %228 = vector.shape_cast %227 : vector<1x50x2xf32> to vector<50x2xf32>
    %cst_222 = arith.constant dense<0.000000e+00> : vector<16x2xf32>
    %229 = tpu.matmul %150, %228, %cst_222 {dimension_numbers = #tpu.dot_dimension_numbers<[1], [0], [0], [1], [0, 0, 1, 1], [], []>} : vector<16x50xf32>, vector<50x2xf32>, vector<16x2xf32> -> vector<16x2xf32>
    %c11_223 = arith.constant 11 : index
    %c0_224 = arith.constant 0 : index
    %c0_225 = arith.constant 0 : index
    %230 = vector.load %arg8[%c11_223, %c0_224, %c0_225] : memref<16x32x16xf32, #tpu.memory_space<vmem>>, vector<1x32x16xf32>
    %231 = vector.shape_cast %230 : vector<1x32x16xf32> to vector<32x16xf32>
    %cst_226 = arith.constant dense<0.000000e+00> : vector<32x2xf32>
    %232 = tpu.matmul %231, %229, %cst_226 {dimension_numbers = #tpu.dot_dimension_numbers<[1], [0], [0], [1], [0, 0, 1, 1], [], []>} : vector<32x16xf32>, vector<16x2xf32>, vector<32x2xf32> -> vector<32x2xf32>
    %233 = arith.addf %226, %232 : vector<32x2xf32>
    %c12_227 = arith.constant 12 : index
    %c0_228 = arith.constant 0 : index
    %c0_229 = arith.constant 0 : index
    %234 = vector.load %arg7[%c12_227, %c0_228, %c0_229] : memref<16x50x2xf32, #tpu.memory_space<vmem>>, vector<1x50x2xf32>
    %235 = vector.shape_cast %234 : vector<1x50x2xf32> to vector<50x2xf32>
    %cst_230 = arith.constant dense<0.000000e+00> : vector<16x2xf32>
    %236 = tpu.matmul %150, %235, %cst_230 {dimension_numbers = #tpu.dot_dimension_numbers<[1], [0], [0], [1], [0, 0, 1, 1], [], []>} : vector<16x50xf32>, vector<50x2xf32>, vector<16x2xf32> -> vector<16x2xf32>
    %c12_231 = arith.constant 12 : index
    %c0_232 = arith.constant 0 : index
    %c0_233 = arith.constant 0 : index
    %237 = vector.load %arg8[%c12_231, %c0_232, %c0_233] : memref<16x32x16xf32, #tpu.memory_space<vmem>>, vector<1x32x16xf32>
    %238 = vector.shape_cast %237 : vector<1x32x16xf32> to vector<32x16xf32>
    %cst_234 = arith.constant dense<0.000000e+00> : vector<32x2xf32>
    %239 = tpu.matmul %238, %236, %cst_234 {dimension_numbers = #tpu.dot_dimension_numbers<[1], [0], [0], [1], [0, 0, 1, 1], [], []>} : vector<32x16xf32>, vector<16x2xf32>, vector<32x2xf32> -> vector<32x2xf32>
    %240 = arith.addf %233, %239 : vector<32x2xf32>
    %c13_235 = arith.constant 13 : index
    %c0_236 = arith.constant 0 : index
    %c0_237 = arith.constant 0 : index
    %241 = vector.load %arg7[%c13_235, %c0_236, %c0_237] : memref<16x50x2xf32, #tpu.memory_space<vmem>>, vector<1x50x2xf32>
    %242 = vector.shape_cast %241 : vector<1x50x2xf32> to vector<50x2xf32>
    %cst_238 = arith.constant dense<0.000000e+00> : vector<16x2xf32>
    %243 = tpu.matmul %150, %242, %cst_238 {dimension_numbers = #tpu.dot_dimension_numbers<[1], [0], [0], [1], [0, 0, 1, 1], [], []>} : vector<16x50xf32>, vector<50x2xf32>, vector<16x2xf32> -> vector<16x2xf32>
    %c13_239 = arith.constant 13 : index
    %c0_240 = arith.constant 0 : index
    %c0_241 = arith.constant 0 : index
    %244 = vector.load %arg8[%c13_239, %c0_240, %c0_241] : memref<16x32x16xf32, #tpu.memory_space<vmem>>, vector<1x32x16xf32>
    %245 = vector.shape_cast %244 : vector<1x32x16xf32> to vector<32x16xf32>
    %cst_242 = arith.constant dense<0.000000e+00> : vector<32x2xf32>
    %246 = tpu.matmul %245, %243, %cst_242 {dimension_numbers = #tpu.dot_dimension_numbers<[1], [0], [0], [1], [0, 0, 1, 1], [], []>} : vector<32x16xf32>, vector<16x2xf32>, vector<32x2xf32> -> vector<32x2xf32>
    %247 = arith.addf %240, %246 : vector<32x2xf32>
    %c14_243 = arith.constant 14 : index
    %c0_244 = arith.constant 0 : index
    %c0_245 = arith.constant 0 : index
    %248 = vector.load %arg7[%c14_243, %c0_244, %c0_245] : memref<16x50x2xf32, #tpu.memory_space<vmem>>, vector<1x50x2xf32>
    %249 = vector.shape_cast %248 : vector<1x50x2xf32> to vector<50x2xf32>
    %cst_246 = arith.constant dense<0.000000e+00> : vector<16x2xf32>
    %250 = tpu.matmul %150, %249, %cst_246 {dimension_numbers = #tpu.dot_dimension_numbers<[1], [0], [0], [1], [0, 0, 1, 1], [], []>} : vector<16x50xf32>, vector<50x2xf32>, vector<16x2xf32> -> vector<16x2xf32>
    %c14_247 = arith.constant 14 : index
    %c0_248 = arith.constant 0 : index
    %c0_249 = arith.constant 0 : index
    %251 = vector.load %arg8[%c14_247, %c0_248, %c0_249] : memref<16x32x16xf32, #tpu.memory_space<vmem>>, vector<1x32x16xf32>
    %252 = vector.shape_cast %251 : vector<1x32x16xf32> to vector<32x16xf32>
    %cst_250 = arith.constant dense<0.000000e+00> : vector<32x2xf32>
    %253 = tpu.matmul %252, %250, %cst_250 {dimension_numbers = #tpu.dot_dimension_numbers<[1], [0], [0], [1], [0, 0, 1, 1], [], []>} : vector<32x16xf32>, vector<16x2xf32>, vector<32x2xf32> -> vector<32x2xf32>
    %254 = arith.addf %247, %253 : vector<32x2xf32>
    %c15_251 = arith.constant 15 : index
    %c0_252 = arith.constant 0 : index
    %c0_253 = arith.constant 0 : index
    %255 = vector.load %arg7[%c15_251, %c0_252, %c0_253] : memref<16x50x2xf32, #tpu.memory_space<vmem>>, vector<1x50x2xf32>
    %256 = vector.shape_cast %255 : vector<1x50x2xf32> to vector<50x2xf32>
    %cst_254 = arith.constant dense<0.000000e+00> : vector<16x2xf32>
    %257 = tpu.matmul %150, %256, %cst_254 {dimension_numbers = #tpu.dot_dimension_numbers<[1], [0], [0], [1], [0, 0, 1, 1], [], []>} : vector<16x50xf32>, vector<50x2xf32>, vector<16x2xf32> -> vector<16x2xf32>
    %c15_255 = arith.constant 15 : index
    %c0_256 = arith.constant 0 : index
    %c0_257 = arith.constant 0 : index
    %258 = vector.load %arg8[%c15_255, %c0_256, %c0_257] : memref<16x32x16xf32, #tpu.memory_space<vmem>>, vector<1x32x16xf32>
    %259 = vector.shape_cast %258 : vector<1x32x16xf32> to vector<32x16xf32>
    %cst_258 = arith.constant dense<0.000000e+00> : vector<32x2xf32>
    %260 = tpu.matmul %259, %257, %cst_258 {dimension_numbers = #tpu.dot_dimension_numbers<[1], [0], [0], [1], [0, 0, 1, 1], [], []>} : vector<32x16xf32>, vector<16x2xf32>, vector<32x2xf32> -> vector<32x2xf32>
    %261 = arith.addf %254, %260 : vector<32x2xf32>
    %c0_259 = arith.constant 0 : index
    %c0_260 = arith.constant 0 : index
    %262 = vector.load %arg9[%c0_259, %c0_260] : memref<32x1xf32, #tpu.memory_space<vmem>>, vector<32x1xf32>
    %c0_261 = arith.constant 0 : index
    %c0_262 = arith.constant 0 : index
    %263 = vector.load %arg10[%c0_261, %c0_262] : memref<32x1xf32, #tpu.memory_space<vmem>>, vector<32x1xf32>
    %cst_263 = arith.constant dense<0.000000e+00> : vector<32xf32>
    %264 = vector.multi_reduction <add>, %261, %cst_263 [1] : vector<32x2xf32> to vector<32xf32>
    %265 = vector.shape_cast %264 : vector<32xf32> to vector<32x1xf32>
    %cst_264 = arith.constant 2.000000e+00 : f32
    %266 = vector.broadcast %cst_264 : f32 to vector<32x1xf32>
    %267 = arith.divf %265, %266 : vector<32x1xf32>
    %268 = vector.broadcast %267 : vector<32x1xf32> to vector<32x2xf32>
    %269 = arith.subf %261, %268 : vector<32x2xf32>
    %270 = arith.mulf %269, %269 : vector<32x2xf32>
    %cst_265 = arith.constant dense<0.000000e+00> : vector<32xf32>
    %271 = vector.multi_reduction <add>, %270, %cst_265 [1] : vector<32x2xf32> to vector<32xf32>
    %272 = vector.shape_cast %271 : vector<32xf32> to vector<32x1xf32>
    %cst_266 = arith.constant 2.000000e+00 : f32
    %273 = vector.broadcast %cst_266 : f32 to vector<32x1xf32>
    %274 = arith.divf %272, %273 : vector<32x1xf32>
    %275 = vector.broadcast %267 : vector<32x1xf32> to vector<32x2xf32>
    %276 = arith.subf %261, %275 : vector<32x2xf32>
    %cst_267 = arith.constant 9.99999974E-6 : f32
    %277 = vector.broadcast %cst_267 : f32 to vector<32x1xf32>
    %278 = arith.addf %274, %277 : vector<32x1xf32>
    %279 = math.rsqrt %278 : vector<32x1xf32>
    %280 = vector.broadcast %279 : vector<32x1xf32> to vector<32x2xf32>
    %281 = arith.mulf %276, %280 : vector<32x2xf32>
    %282 = vector.broadcast %262 : vector<32x1xf32> to vector<32x2xf32>
    %283 = arith.mulf %281, %282 : vector<32x2xf32>
    %284 = vector.broadcast %263 : vector<32x1xf32> to vector<32x2xf32>
    %285 = arith.addf %283, %284 : vector<32x2xf32>
    %cst_268 = arith.constant 0.000000e+00 : f32
    %286 = vector.broadcast %cst_268 : f32 to vector<32x2xf32>
    %287 = arith.cmpf oge, %285, %286 : vector<32x2xf32>
    %cst_269 = arith.constant 2.000000e-01 : f32
    %288 = vector.broadcast %cst_269 : f32 to vector<32x2xf32>
    %289 = arith.mulf %288, %285 : vector<32x2xf32>
    %290 = arith.select %287, %285, %289 : vector<32x2xi1>, vector<32x2xf32>
    %c0_270 = arith.constant 0 : index
    %c0_271 = arith.constant 0 : index
    %291 = vector.load %arg11[%c0_270, %c0_271] : memref<32x1xf32, #tpu.memory_space<vmem>>, vector<32x1xf32>
    %292 = vector.broadcast %291 : vector<32x1xf32> to vector<32x2xf32>
    %293 = arith.mulf %290, %292 : vector<32x2xf32>
    %cst_272 = arith.constant dense<0.000000e+00> : vector<2xf32>
    %294 = vector.multi_reduction <add>, %293, %cst_272 [0] : vector<32x2xf32> to vector<2xf32>
    %295 = vector.shape_cast %294 : vector<2xf32> to vector<1x2xf32>
    %c0_273 = arith.constant 0 : index
    %c0_274 = arith.constant 0 : index
    %296 = vector.load %arg12[%c0_273, %c0_274] : memref<1x1xf32, #tpu.memory_space<vmem>>, vector<1x1xf32>
    %297 = vector.broadcast %296 : vector<1x1xf32> to vector<1x2xf32>
    %298 = arith.addf %295, %297 : vector<1x2xf32>
    %cst_275 = arith.constant 0.000000e+00 : f32
    %299 = vector.broadcast %cst_275 : f32 to vector<1x2xf32>
    %300 = arith.subf %299, %298 : vector<1x2xf32>
    %301 = math.exp %300 : vector<1x2xf32>
    %cst_276 = arith.constant 1.000000e+00 : f32
    %302 = vector.broadcast %cst_276 : f32 to vector<1x2xf32>
    %303 = arith.addf %302, %301 : vector<1x2xf32>
    %304 = tpu.reciprocal %303 {approx = true} : vector<1x2xf32> -> vector<1x2xf32>
    %c0_277 = arith.constant 0 : index
    %c0_278 = arith.constant 0 : index
    %305 = vector.load %arg13[%c0_277, %c0_278] : memref<1x2xf32, #tpu.memory_space<vmem>>, vector<1x2xf32>
    tpu.vector_store %arg13[%c0_277, %c0_278], %304 {strides = array<i32>} : memref<1x2xf32, #tpu.memory_space<vmem>>, vector<1x2xf32>,
    return
  }
}

</mosaic_0001>

<bundles_post_ra>
// kernel: discriminator_forward.1
= control target key start
LH: loop header
LB: loop body
LE: loop exit
PB: predicated region body
PF: predicated region fallthrough
CT: control target
= control target key end

     0   :  { %s15471_s0 = inlined_call_operand.vmem [shape: f32[48,338], index: 0, kind: input, shape index: {}]   ;;  %s15472_s1 = inlined_call_operand.vmem [shape: f32[8,48], index: 1, kind: input, shape index: {}]   ;;  %s15473_s2 = inlined_call_operand.vmem [shape: f32[8,1], index: 2, kind: input, shape index: {}]   ;;  %s15474_s3 = inlined_call_operand.vmem [shape: f32[16,338,50], index: 3, kind: input, shape index: {}]   ;;  %s15475_s4 = inlined_call_operand.vmem [shape: f32[16,16,8], index: 4, kind: input, shape index: {}]   ;;  %s15476_s5 = inlined_call_operand.vmem [shape: f32[16,1], index: 5, kind: input, shape index: {}]   ;;  %s15477_s6 = inlined_call_operand.vmem [shape: f32[16,1], index: 6, kind: input, shape index: {}]   ;;  %s15478_s7 = inlined_call_operand.vmem [shape: f32[16,50,2], index: 7, kind: input, shape index: {}]   ;;  %s15479_s8 = inlined_call_operand.vmem [shape: f32[16,32,16], index: 8, kind: input, shape index: {}]   ;;  %s15480_s9 = inlined_call_operand.vmem [shape: f32[32,1], index: 9, kind: input, shape index: {}]   ;;  %s15481_s10 = inlined_call_operand.vmem [shape: f32[32,1], index: 10, kind: input, shape index: {}]   ;;  %s15482_s11 = inlined_call_operand.vmem [shape: f32[32,1], index: 11, kind: input, shape index: {}]   ;;  %s15483_s12 = inlined_call_operand.<no memory space> [shape: f32[1,1], index: 12, kind: input, shape index: {}]   ;;  %s15484_s13 = inlined_call_operand.hbm [shape: f32[1,2], index: 13, kind: output, shape index: {}]  }
   0x1   :  { %v18_v0 = vstv %s15483_s12 }
   0x2   :  { %19 = vst [vmem:[#allocation2] sm:$0x1] %v18_v0 }
   0x3   :  { %v49_v1 = vld [vmem:[%s15471_s0 + $0x8] sm:$0xff]  ;;  %v52_v2 = vld [vmem:[%s15471_s0 + $0x20] sm:$0xff]  ;;  %v50_v3 = vld [vmem:[%s15471_s0 + $0x10] sm:$0xff]  ;;  %v12078_v4 = vmov 0.0|0.0   ;;  %vm12079_vm0 = vmmov 0   ;;  %v12080_v9 = vmov 0.0  }
   0x4   :  { %10924 = vmatprep.subr.bf16.mxu1 %v12078_v4  ;;  %v10912_v5 = vpack.c.bf16 %v52_v2, %v49_v1  ;;  %v53_v6 = vld [vmem:[%s15471_s0 + $0x28] sm:$0xff]  ;;  %v48_v7 = vld [vmem:[%s15471_s0] sm:$0xff]  ;;  %v51_v8 = vld [vmem:[%s15471_s0 + $0x18] sm:$0xff]  ;;  %9997 = vmatprep.mubr.msk.f32.mxu1 %vm12079_vm0, %v12080_v9  ;;  %v12081_v15 = vmov 0   ;;  %vm72_vm1 = vcmask 392192  }
   0x5   :  { %v10925_v10 = vpack.c.bf16 %v53_v6, %v50_v3  ;;  %v10914_v11 = vpack.c.bf16 %v51_v8, %v48_v7  ;;  %v55_v12 = vld [vmem:[%s15471_s0 + $0x38] sm:$0xff]  ;;  %v58_v13 = vld [vmem:[%s15471_s0 + $0x50] sm:$0xff]  ;;  %v56_v14 = vld [vmem:[%s15471_s0 + $0x40] sm:$0xff]  ;;  %140 = vmatprep.mubr.f32.mxu0 %v12080_v9  ;;  %12036 = vset.pattern.permute.xlu0 %v12081_v15 }
   0x6   :  { %10913 = vmatprep.subr.bf16.mxu0 %v10912_v5  ;;  %v10916_v16 = vpack.c.bf16 %v58_v13, %v55_v12  ;;  %v59_v17 = vld [vmem:[%s15471_s0 + $0x58] sm:$0xff]  ;;  %v54_v18 = vld [vmem:[%s15471_s0 + $0x30] sm:$0xff]  ;;  %v57_v19 = vld [vmem:[%s15471_s0 + $0x48] sm:$0xff]  ;;  %12037 = vset.pattern.permute.xlu1 %v12081_v15 }
   0x7   :  { %10926 = vmatpush3.bf16.msra.mxu1 %v10925_v10  ;;  %10915 = vmatpush1.bf16.msra.mxu0 %v10914_v11  ;;  %v10928_v20 = vpack.c.bf16 %v59_v17, %v56_v14  ;;  %v10918_v21 = vpack.c.bf16 %v57_v19, %v54_v18  ;;  %v61_v22 = vld [vmem:[%s15471_s0 + $0x68] sm:$0xff]  ;;  %v64_v23 = vld [vmem:[%s15471_s0 + $0x80] sm:$0xff]  ;;  %v62_v24 = vld [vmem:[%s15471_s0 + $0x70] sm:$0xff] }
   0x8   :  { %10927 = vmatprep.subr.bf16.mxu1 %v12078_v4  ;;  %10917 = vmatprep.subr.bf16.mxu0 %v10916_v16  ;;  %v10920_v25 = vpack.c.bf16 %v64_v23, %v61_v22  ;;  %v65_v26 = vld [vmem:[%s15471_s0 + $0x88] sm:$0xff]  ;;  %v60_v27 = vld [vmem:[%s15471_s0 + $0x60] sm:$0xff]  ;;  %v63_v28 = vld [vmem:[%s15471_s0 + $0x78] sm:$0xff] }
   0x9   :  { %v66_v29 = vld [vmem:[%s15473_s2] sm:$0xff]  ;;  %v243_v31 = vld [vmem:[%s15474_s3 + $0x88] sm:$0xff]  ;;  %v10931_v32 = vpack.c.bf16 %v65_v26, %v62_v24  ;;  %v10922_v33 = vpack.c.bf16 %v63_v28, %v60_v27  ;;  %v244_v37 = vld [vmem:[%s15474_s3 + $0x90] sm:$0xff] }
   0xa   :  { %v242_v30 = vld [vmem:[%s15474_s3 + $0x80] sm:$0xff]  ;;  %69 = vperm.xlu0 %12036, %v66_v29   ;;  %v227_v36 = vld [vmem:[%s15474_s3 + $0x8] sm:$0xff]  ;;  %v245_v38 = vld [vmem:[%s15474_s3 + $0x98] sm:$0xff] }
   0xb   :  { %10929 = vmatpush3.bf16.msra.mxu1 %v10928_v20  ;;  %10919 = vmatpush1.bf16.msra.mxu0 %v10918_v21  ;;  %v10933_v34 = vpack.c.bf16 %v243_v31, %v242_v30  ;;  %v226_v35 = vld [vmem:[%s15474_s3] sm:$0xff]  ;;  %v259_v40 = vld [vmem:[%s15474_s3 + $0x108] sm:$0xff]  ;;  %v228_v43 = vld [vmem:[%s15474_s3 + $0x10] sm:$0xff]  ;;  %v10937_v45 = vpack.c.bf16 %v245_v38, %v244_v37 }
   0xc   :  { %10930 = vmatprep.subr.bf16.mxu1 %v12078_v4  ;;  %10921 = vmatprep.subr.bf16.mxu0 %v10920_v25  ;;  %v258_v39 = vld [vmem:[%s15474_s3 + $0x100] sm:$0xff]  ;;  %v10935_v42 = vpack.c.bf16 %v227_v36, %v226_v35  ;;  %v229_v46 = vld [vmem:[%s15474_s3 + $0x18] sm:$0xff]  ;;  %v260_v47 = vld [vmem:[%s15474_s3 + $0x110] sm:$0xff] }
   0xd   :  { %v47_v41 = vld [vmem:[%s15472_s1] sm:$0xff]  ;;  %v10966_v44 = vpack.c.bf16 %v259_v40, %v258_v39  ;;  %v261_v48 = vld [vmem:[%s15474_s3 + $0x118] sm:$0xff]  ;;  %v247_v50 = vld [vmem:[%s15474_s3 + $0xa8] sm:$0xff]  ;;  %v10939_v51 = vpack.c.bf16 %v229_v46, %v228_v43 }
   0xe   :  { %v246_v49 = vld [vmem:[%s15474_s3 + $0xa0] sm:$0xff]  ;;  %v231_v53 = vld [vmem:[%s15474_s3 + $0x28] sm:$0xff]  ;;  %v10969_v54 = vpack.c.bf16 %v261_v48, %v260_v47 }
   0xf   :  { %10932 = vmatpush3.bf16.msra.mxu1 %v10931_v32  ;;  %10923 = vmatpush1.bf16.msra.mxu0 %v10922_v33  ;;  %v230_v52 = vld [vmem:[%s15474_s3 + $0x20] sm:$0xff]  ;;  %v10941_v55 = vpack.c.bf16 %v247_v50, %v246_v49  ;;  %v263_v57 = vld [vmem:[%s15474_s3 + $0x128] sm:$0xff] }
  0x10   :  { %10934 = vmatprep.subr.bf16.mxu0 %v10933_v34  ;;  %10965 = vmatprep.subr.bf16.mxu1 %v12078_v4  ;;  %v262_v56 = vld [vmem:[%s15474_s3 + $0x120] sm:$0xff] }
  0x12   :  { %9998 = vmatmul.mubr.msk.f32.vlgmr.msra.gmra.mrb[0].mxu1 %vm72_vm1, %v47_v41  ;;  %7920 = vmatmul.mubr.msk.f32.vlgmr.msra.gmra.mrb[0].mxu0 %vm72_vm1, %v47_v41 }
  0x13   :  { %10936 = vmatpush3.bf16.msra.mxu0 %v10935_v42  ;;  %10967 = vmatpush3.bf16.msra.mxu1 %v10966_v44 }
  0x14   :  { %10938 = vmatprep.subr.bf16.mxu0 %v10937_v45  ;;  %10968 = vmatprep.subr.bf16.mxu1 %v12078_v4 }
  0x15   :  { %20 = vsyncpa [#allocation4], 0  ;;  %v248_v58 = vld [vmem:[%s15474_s3 + $0xb0] sm:$0xff]  ;;  %v249_v59 = vld [vmem:[%s15474_s3 + $0xb8] sm:$0xff]  ;;  %10022 = vmatprep.mubr.msk.f32.mxu1 %vm12079_vm0, %v12080_v9  ;;  %v10943_v60 = vpack.c.bf16 %v231_v53, %v230_v52  ;;  %v10972_v62 = vpack.c.bf16 %v263_v57, %v262_v56  ;;  %vm273_vm2 = vcmask 1041408   ;;  %vm269_vm3 = vcmask 670720  }
  0x16   :  { %v232_v61 = vld [vmem:[%s15474_s3 + $0x30] sm:$0xff]  ;;  %v10945_v63 = vpack.c.bf16 %v249_v59, %v248_v58  ;;  %v233_v0 = vld [vmem:[%s15474_s3 + $0x38] sm:$0xff]  ;;  %v250_v3 = vld [vmem:[%s15474_s3 + $0xc0] sm:$0xff]  ;;  %vm609_vm7 = vcmask 64512   ;;  %vm4598_vm8 = vcmask 408576   ;;  %vm4842_vm11 = vcmask 130048  }
  0x17   :  { %10940 = vmatpush3.bf16.msra.mxu0 %v10939_v51  ;;  %10970 = vmatpush3.bf16.msra.mxu1 %v10969_v54  ;;  %v264_v1 = vld [vmem:[%s15474_s3 + $0x130] sm:$0xff]  ;;  %v265_v2 = vld [vmem:[%s15474_s3 + $0x138] sm:$0xff]  ;;  %v251_v5 = vld [vmem:[%s15474_s3 + $0xc8] sm:$0xff]  ;;  %v10947_v6 = vpack.c.bf16 %v233_v0, %v232_v61  ;;  %vm7733_vm12 = vcmask 15360   ;;  %vm7904_vm1 = vcmask 8192  }
  0x18   :  { %10942 = vmatprep.subr.bf16.mxu0 %v10941_v55  ;;  %10971 = vmatprep.subr.bf16.mxu1 %v12078_v4  ;;  %v10975_v7 = vpack.c.bf16 %v265_v2, %v264_v1  ;;  %v10949_v8 = vpack.c.bf16 %v251_v5, %v250_v3  ;;  %v234_v10 = vld [vmem:[%s15474_s3 + $0x40] sm:$0xff]  ;;  %v235_v11 = vld [vmem:[%s15474_s3 + $0x48] sm:$0xff]  ;;  %v252_v12 = vld [vmem:[%s15474_s3 + $0xd0] sm:$0xff] }
  0x19   :  { %v253_v13 = vld [vmem:[%s15474_s3 + $0xd8] sm:$0xff]  ;;  %v10951_v14 = vpack.c.bf16 %v235_v11, %v234_v10  ;;  %v236_v16 = vld [vmem:[%s15474_s3 + $0x50] sm:$0xff]  ;;  %v254_v19 = vld [vmem:[%s15474_s3 + $0xe0] sm:$0xff] }
  0x1a   :  { %v10953_v15 = vpack.c.bf16 %v253_v13, %v252_v12  ;;  %v237_v17 = vld [vmem:[%s15474_s3 + $0x58] sm:$0xff]  ;;  %v255_v20 = vld [vmem:[%s15474_s3 + $0xe8] sm:$0xff]  ;;  %v266_v21 = vld [vmem:[%s15474_s3 + $0x140] sm:$0xff] }
  0x1b   :  { %10944 = vmatpush3.bf16.msra.mxu0 %v10943_v60  ;;  %10973 = vmatpush3.bf16.msra.mxu1 %v10972_v62  ;;  %v10955_v18 = vpack.c.bf16 %v237_v17, %v236_v16  ;;  %v10957_v22 = vpack.c.bf16 %v255_v20, %v254_v19  ;;  %v267_v23 = vld [vmem:[%s15474_s3 + $0x148] sm:$0xff]  ;;  %v238_v24 = vld [vmem:[%s15474_s3 + $0x60] sm:$0xff]  ;;  %v256_v28 = vld [vmem:[%s15474_s3 + $0xf0] sm:$0xff] }
  0x1c   :  { %10946 = vmatprep.subr.bf16.mxu0 %v10945_v63  ;;  %10974 = vmatprep.subr.bf16.mxu1 %v12078_v4  ;;  %v239_v25 = vld [vmem:[%s15474_s3 + $0x68] sm:$0xff]  ;;  %v10978_v26 = vpack.c.bf16 %v267_v23, %v266_v21  ;;  %v257_v29 = vld [vmem:[%s15474_s3 + $0xf8] sm:$0xff]  ;;  %v240_v31 = vld [vmem:[%s15474_s3 + $0x70] sm:$0xff] }
  0x1d   :  { %v10959_v27 = vpack.c.bf16 %v239_v25, %v238_v24  ;;  %v10961_v30 = vpack.c.bf16 %v257_v29, %v256_v28  ;;  %v241_v32 = vld [vmem:[%s15474_s3 + $0x78] sm:$0xff]  ;;  %v268_v34 = vld [vmem:[%s15474_s3 + $0x150] sm:$0x3]  ;;  %v7941_v36 = vld [vmem:[%s15474_s3 + $0x1e0] sm:$0xff] }
  0x1e   :  { %v7940_v33 = vld [vmem:[%s15474_s3 + $0x1d8] sm:$0xff]  ;;  %v10963_v35 = vpack.c.bf16 %v241_v32, %v240_v31  ;;  %v7925_v42 = vld [vmem:[%s15474_s3 + $0x160] sm:$0xff]  ;;  %v7942_v47 = vld [vmem:[%s15474_s3 + $0x1e8] sm:$0xff] }
  0x1f   :  { %10948 = vmatpush3.bf16.msra.mxu0 %v10947_v6  ;;  %10976 = vmatpush3.bf16.msra.mxu1 %v10975_v7  ;;  %v10980_v37 = vpack.c.bf16 %v7941_v36, %v7940_v33  ;;  %v7924_v41 = vld [vmem:[%s15474_s3 + $0x158] sm:$0xff]  ;;  %v7943_v49 = vld [vmem:[%s15474_s3 + $0x1f0] sm:$0xff]  ;;  %v7957_v51 = vld [vmem:[%s15474_s3 + $0x260] sm:$0xff] }
  0x20   :  { %10950 = vmatprep.subr.bf16.mxu0 %v10949_v8  ;;  %10977 = vmatprep.subr.bf16.mxu1 %v12078_v4  ;;  %v7956_v50 = vld [vmem:[%s15474_s3 + $0x258] sm:$0xff]  ;;  %v10982_v54 = vpack.c.bf16 %v7925_v42, %v7924_v41  ;;  %v7926_v56 = vld [vmem:[%s15474_s3 + $0x168] sm:$0xff]  ;;  %v7927_v57 = vld [vmem:[%s15474_s3 + $0x170] sm:$0xff]  ;;  %v10984_v59 = vpack.c.bf16 %v7943_v49, %v7942_v47 }
  0x21   :  { %v11013_v60 = vpack.c.bf16 %v7957_v51, %v7956_v50  ;;  %v7944_v61 = vld [vmem:[%s15474_s3 + $0x1f8] sm:$0xff]  ;;  %v7945_v62 = vld [vmem:[%s15474_s3 + $0x200] sm:$0xff]  ;;  %v7958_v0 = vld [vmem:[%s15474_s3 + $0x268] sm:$0xff]  ;;  %v10986_v3 = vpack.c.bf16 %v7927_v57, %v7926_v56 }
  0x22   :  { %v7959_v1 = vld [vmem:[%s15474_s3 + $0x270] sm:$0xff]  ;;  %v10988_v5 = vpack.c.bf16 %v7945_v62, %v7944_v61  ;;  %v7928_v6 = vld [vmem:[%s15474_s3 + $0x178] sm:$0xff]  ;;  %v7929_v7 = vld [vmem:[%s15474_s3 + $0x180] sm:$0xff] }
  0x23   :  { %10952 = vmatpush3.bf16.msra.mxu0 %v10951_v14  ;;  %10979 = vmatpush3.bf16.msra.mxu1 %v10978_v26  ;;  %v11016_v8 = vpack.c.bf16 %v7959_v1, %v7958_v0  ;;  %v7946_v10 = vld [vmem:[%s15474_s3 + $0x208] sm:$0xff]  ;;  %v7947_v11 = vld [vmem:[%s15474_s3 + $0x210] sm:$0xff]  ;;  %v7960_v12 = vld [vmem:[%s15474_s3 + $0x278] sm:$0xff]  ;;  %v10990_v14 = vpack.c.bf16 %v7929_v7, %v7928_v6 }
  0x24   :  { %10954 = vmatprep.subr.bf16.mxu0 %v10953_v15  ;;  %10020 = vmatprep.subr.mxu1 %v12080_v9  ;;  %v7961_v13 = vld [vmem:[%s15474_s3 + $0x280] sm:$0xff]  ;;  %v10992_v15 = vpack.c.bf16 %v7947_v11, %v7946_v10  ;;  %v7930_v16 = vld [vmem:[%s15474_s3 + $0x188] sm:$0xff]  ;;  %v7931_v17 = vld [vmem:[%s15474_s3 + $0x190] sm:$0xff] }
  0x25   :  { %v7948_v19 = vld [vmem:[%s15474_s3 + $0x218] sm:$0xff]  ;;  %v7949_v20 = vld [vmem:[%s15474_s3 + $0x220] sm:$0xff]  ;;  %v7962_v21 = vld [vmem:[%s15474_s3 + $0x288] sm:$0xff]  ;;  %v10994_v23 = vpack.c.bf16 %v7931_v17, %v7930_v16 }
  0x26   :  { %v10996_v24 = vpack.c.bf16 %v7949_v20, %v7948_v19  ;;  %v7932_v25 = vld [vmem:[%s15474_s3 + $0x198] sm:$0xff]  ;;  %v7933_v26 = vld [vmem:[%s15474_s3 + $0x1a0] sm:$0xff]  ;;  %v7950_v28 = vld [vmem:[%s15474_s3 + $0x228] sm:$0xff] }
  0x27   :  { %10956 = vmatpush3.bf16.msra.mxu0 %v10955_v18  ;;  %10021 = vmatpush3.msk.msra.mxu1 %vm273_vm2, %v268_v34  ;;  %v11019_v18 = vpack.c.bf16 %v7961_v13, %v7960_v12  ;;  %v7951_v29 = vld [vmem:[%s15474_s3 + $0x230] sm:$0xff]  ;;  %v7965_v31 = vld [vmem:[%s15474_s3 + $0x2a0] sm:$0xff]  ;;  %v10998_v32 = vpack.c.bf16 %v7933_v26, %v7932_v25  ;;  %v7934_v34 = vld [vmem:[%s15474_s3 + $0x1a8] sm:$0xff] }
  0x28   :  { %10958 = vmatprep.subr.bf16.mxu0 %v10957_v22  ;;  %10981 = vmatprep.subr.bf16.mxu1 %v10980_v37  ;;  %v7963_v22 = vld [vmem:[%s15474_s3 + $0x290] sm:$0xff]  ;;  %v11000_v33 = vpack.c.bf16 %v7951_v29, %v7950_v28  ;;  %v7952_v37 = vld [vmem:[%s15474_s3 + $0x238] sm:$0xff]  ;;  %v7937_v42 = vld [vmem:[%s15474_s3 + $0x1c0] sm:$0xff] }
  0x29   :  { %v7936_v41 = vld [vmem:[%s15474_s3 + $0x1b8] sm:$0xff]  ;;  %v7939_v49 = vld [vmem:[%s15474_s3 + $0x1d0] sm:$0xff]  ;;  %v7993_v56 = vld [vmem:[%s15474_s3 + $0x340] sm:$0xff] }
  0x2a   :  { %v7991_v50 = vld [vmem:[%s15474_s3 + $0x330] sm:$0xff]  ;;  %v7992_v51 = vld [vmem:[%s15474_s3 + $0x338] sm:$0xff]  ;;  %v7994_v57 = vld [vmem:[%s15474_s3 + $0x348] sm:$0xff] }
  0x2b   :  { %10960 = vmatpush3.bf16.msra.mxu0 %v10959_v27  ;;  %v11022_v27 = vpack.c.bf16 %v7963_v22, %v7962_v21  ;;  %v7977_v61 = vld [vmem:[%s15474_s3 + $0x2c0] sm:$0xff]  ;;  %v7978_v62 = vld [vmem:[%s15474_s3 + $0x2c8] sm:$0xff]  ;;  %v7995_v0 = vld [vmem:[%s15474_s3 + $0x350] sm:$0xff] }
  0x2c   :  { %10962 = vmatprep.subr.bf16.mxu0 %v10961_v30  ;;  %v7964_v30 = vld [vmem:[%s15474_s3 + $0x298] sm:$0xff]  ;;  %v7979_v6 = vld [vmem:[%s15474_s3 + $0x2d0] sm:$0xff]  ;;  %v7998_v10 = vld [vmem:[%s15474_s3 + $0x368] sm:$0xff] }
  0x2d   :  { %v11025_v36 = vpack.c.bf16 %v7965_v31, %v7964_v30  ;;  %v7996_v1 = vld [vmem:[%s15474_s3 + $0x358] sm:$0xff]  ;;  %v7981_v13 = vld [vmem:[%s15474_s3 + $0x2e0] sm:$0xff]  ;;  %v7983_v19 = vld [vmem:[%s15474_s3 + $0x2f0] sm:$0xff] }
  0x2e   :  { %v7980_v7 = vld [vmem:[%s15474_s3 + $0x2d8] sm:$0xff]  ;;  %v8001_v21 = vld [vmem:[%s15474_s3 + $0x380] sm:$0xff]  ;;  %v8002_v22 = vld [vmem:[%s15474_s3 + $0x388] sm:$0xff] }
  0x2f   :  { %10964 = vmatpush3.bf16.msra.mxu0 %v10963_v35  ;;  %v7935_v35 = vld [vmem:[%s15474_s3 + $0x1b0] sm:$0xff]  ;;  %v11037_v11 = vpack.c.bf16 %v7980_v7, %v7979_v6  ;;  %v8000_v16 = vld [vmem:[%s15474_s3 + $0x378] sm:$0xff]  ;;  %v7985_v25 = vld [vmem:[%s15474_s3 + $0x300] sm:$0xff] }
  0x30   :  { %11012 = vmatprep.subr.bf16.mxu0 %v12078_v4  ;;  %v7984_v20 = vld [vmem:[%s15474_s3 + $0x2f8] sm:$0xff]  ;;  %v7986_v26 = vld [vmem:[%s15474_s3 + $0x308] sm:$0xff]  ;;  %v7987_v31 = vld [vmem:[%s15474_s3 + $0x310] sm:$0xff] }
  0x31   :  { %v8004_v28 = vld [vmem:[%s15474_s3 + $0x398] sm:$0xff]  ;;  %v11049_v29 = vpack.c.bf16 %v7986_v26, %v7985_v25  ;;  %v8032_v7 = vld [vmem:[%s15474_s3 + $0x448] sm:$0xff] }
  0x32   :  { %v8038_v26 = vld [vmem:[%s15474_s3 + $0x478] sm:$0xff] }
  0x89   :  { %v70_v38 = vpop.permute.xlu0 %69 }
  0xe5   :  { %v213_v39 = vpop.f32.mrb[0].mxu1  ;;  %v142_v40 = vpop.f32.mrb[0].mxu0 }
  0xe6   :  { %v214_v43 = vadd.f32 %v213_v39, %v70_v38  ;;  %v143_v44 = vadd.f32 %v142_v40, %v70_v38  ;;  %v9999_v45 = vpop.f32.mrb[1].mxu1  ;;  %v144_v46 = vpop.f32.mrb[1].mxu0  ;;  %v11002_v39 = vpack.c.bf16 %v7935_v35, %v7934_v34  ;;  %v8006_v34 = vld [vmem:[%s15474_s3 + $0x3a8] sm:$0xff] }
  0xe7   :  { %v145_v48 = vadd.f32 %v144_v46, %v70_v38  ;;  %v7953_v38 = vld [vmem:[%s15474_s3 + $0x240] sm:$0xff]  ;;  %v7966_v45 = vld [vmem:[%s15474_s3 + $0x2a8] sm:$0x3]  ;;  %v11006_v46 = vpack.c.bf16 %v7937_v42, %v7936_v41 }
  0xe8   :  { %vm219_vm4 = vcmp.ge.f32.partialorder %v214_v43, 0.0  ;;  %v222_v52 = vmul.f32 0.2, %v214_v43  ;;  %v220_v53 = vmul.f32 0.2, %v143_v44  ;;  %vm217_vm5 = vcmp.ge.f32.partialorder %v143_v44, 0.0 }
  0xe9   :  { %vm218_vm6 = vcmp.ge.f32.partialorder %v145_v48, 0.0  ;;  %v221_v55 = vmul.f32 0.2, %v145_v48  ;;  %v11004_v40 = vpack.c.bf16 %v7953_v38, %v7952_v37  ;;  %v7989_v37 = vld [vmem:[%s15474_s3 + $0x320] sm:$0xff]  ;;  %v7990_v38 = vld [vmem:[%s15474_s3 + $0x328] sm:$0xff] }
  0xea   :  { %v12391_v58 = vsel %vm219_vm4, %v214_v43, %v222_v52  ;;  %v12409_v2 = vsel %vm217_vm5, %v143_v44, %v220_v53  ;;  %v7954_v43 = vld [vmem:[%s15474_s3 + $0x248] sm:$0xff]  ;;  %v7955_v44 = vld [vmem:[%s15474_s3 + $0x250] sm:$0xff]  ;;  %v11027_v53 = vpack.c.bf16 %v7992_v51, %v7991_v50  ;;  %v11057_v41 = vpack.c.bf16 %v7990_v38, %v7989_v37  ;;  %v8027_v50 = vld [vmem:[%s15474_s3 + $0x420] sm:$0xff] }
  0xeb   :  { %v12399_v63 = vsel %vm218_vm6, %v145_v48, %v221_v55  ;;  %10023 = vmatmul.mubr.msk.f32.vlgmr.msra.gmra.mrb[2].mxu1 %vm269_vm3, %v12391_v58  ;;  %v11008_v47 = vpack.c.bf16 %v7955_v44, %v7954_v43  ;;  %v7938_v48 = vld [vmem:[%s15474_s3 + $0x1c8] sm:$0xff]  ;;  %v7976_v55 = vld [vmem:[%s15474_s3 + $0x2b8] sm:$0xff]  ;;  %v8025_v44 = vld [vmem:[%s15474_s3 + $0x410] sm:$0xff] }
  0xec   :  { %10983 = vmatpush3.bf16.msra.mxu1 %v10982_v54  ;;  %341 = vmatprep.mubr.f32.mxu0 %v12399_v63  ;;  %v11010_v52 = vpack.c.bf16 %v7939_v49, %v7938_v48  ;;  %v7975_v54 = vld [vmem:[%s15474_s3 + $0x2b0] sm:$0xff]  ;;  %v8024_v43 = vld [vmem:[%s15474_s3 + $0x408] sm:$0xff]  ;;  %v8026_v49 = vld [vmem:[%s15474_s3 + $0x418] sm:$0xff] }
  0xed   :  { %530 = vmatprep.mubr.f32.mxu1 %v12399_v63  ;;  %342 = vmatmul.mubr.f32.vlgmr.msra.gmra.mrb[2].mxu0 %v12409_v2  ;;  %v8044_v51 = vld [vmem:[%s15474_s3 + $0x4a8] sm:$0xff]  ;;  %v8111_v38 = vld [vmem:[%s15474_s3 + $0x690] sm:$0xff] }
  0xee   :  { %10985 = vmatprep.subr.bf16.mxu1 %v10984_v59  ;;  %11014 = vmatpush3.bf16.msra.mxu0 %v11013_v60  ;;  %v11029_v59 = vpack.c.bf16 %v7976_v55, %v7975_v54  ;;  %v11031_v60 = vpack.c.bf16 %v7994_v57, %v7993_v56  ;;  %v8028_v55 = vld [vmem:[%s15474_s3 + $0x428] sm:$0xff]  ;;  %v8029_v56 = vld [vmem:[%s15474_s3 + $0x430] sm:$0xff]  ;;  %v8046_v57 = vld [vmem:[%s15474_s3 + $0x4b8] sm:$0xff] }
  0xef   :  { %11015 = vmatprep.subr.bf16.mxu0 %v12078_v4  ;;  %10047 = vmatprep.mubr.msk.f32.mxu0 %vm12079_vm0, %v12080_v9 }
  0xf0   :  { %10987 = vmatpush3.bf16.msra.mxu1 %v10986_v3  ;;  %v11033_v3 = vpack.c.bf16 %v7978_v62, %v7977_v61  ;;  %v8030_v62 = vld [vmem:[%s15474_s3 + $0x438] sm:$0xff] }
  0xf1   :  { %10989 = vmatprep.subr.bf16.mxu1 %v10988_v5  ;;  %v11035_v5 = vpack.c.bf16 %v7996_v1, %v7995_v0  ;;  %v8031_v0 = vld [vmem:[%s15474_s3 + $0x440] sm:$0xff]  ;;  %v8048_v1 = vld [vmem:[%s15474_s3 + $0x4c8] sm:$0xff] }
  0xf2   :  { %11017 = vmatpush3.bf16.msra.mxu0 %v11016_v8  ;;  %v7997_v8 = vld [vmem:[%s15474_s3 + $0x360] sm:$0xff] }
  0xf3   :  { %11018 = vmatprep.subr.bf16.mxu0 %v12078_v4  ;;  %v11039_v12 = vpack.c.bf16 %v7998_v10, %v7997_v8  ;;  %v8033_v8 = vld [vmem:[%s15474_s3 + $0x450] sm:$0xff]  ;;  %v8050_v10 = vld [vmem:[%s15474_s3 + $0x4d8] sm:$0xff] }
  0xf4   :  { %10991 = vmatpush3.bf16.msra.mxu1 %v10990_v14  ;;  %v7982_v14 = vld [vmem:[%s15474_s3 + $0x2e8] sm:$0xff] }
  0xf5   :  { %10993 = vmatprep.subr.bf16.mxu1 %v10992_v15  ;;  %v7999_v15 = vld [vmem:[%s15474_s3 + $0x370] sm:$0xff]  ;;  %v11041_v17 = vpack.c.bf16 %v7982_v14, %v7981_v13  ;;  %v8034_v14 = vld [vmem:[%s15474_s3 + $0x458] sm:$0xff] }
  0xf6   :  { %11020 = vmatpush3.bf16.msra.mxu0 %v11019_v18  ;;  %v11043_v18 = vpack.c.bf16 %v8000_v16, %v7999_v15  ;;  %v8035_v15 = vld [vmem:[%s15474_s3 + $0x460] sm:$0xff]  ;;  %v8052_v16 = vld [vmem:[%s15474_s3 + $0x4e8] sm:$0xff] }
  0xf7   :  { %11021 = vmatprep.subr.bf16.mxu0 %v12078_v4 }
  0xf8   :  { %10995 = vmatpush3.bf16.msra.mxu1 %v10994_v23  ;;  %v11045_v23 = vpack.c.bf16 %v7984_v20, %v7983_v19  ;;  %v8036_v20 = vld [vmem:[%s15474_s3 + $0x468] sm:$0xff] }
  0xf9   :  { %10997 = vmatprep.subr.bf16.mxu1 %v10996_v24  ;;  %v11047_v24 = vpack.c.bf16 %v8002_v22, %v8001_v21  ;;  %v8037_v21 = vld [vmem:[%s15474_s3 + $0x470] sm:$0xff]  ;;  %v8054_v22 = vld [vmem:[%s15474_s3 + $0x4f8] sm:$0xff] }
  0xfa   :  { %11023 = vmatpush3.bf16.msra.mxu0 %v11022_v27  ;;  %v8003_v27 = vld [vmem:[%s15474_s3 + $0x390] sm:$0xff] }
  0xfb   :  { %11024 = vmatprep.subr.bf16.mxu0 %v12078_v4  ;;  %v11051_v30 = vpack.c.bf16 %v8004_v28, %v8003_v27  ;;  %v8039_v27 = vld [vmem:[%s15474_s3 + $0x480] sm:$0xff] }
  0xfc   :  { %10999 = vmatpush3.bf16.msra.mxu1 %v10998_v32  ;;  %v7988_v32 = vld [vmem:[%s15474_s3 + $0x318] sm:$0xff]  ;;  %v11104_v28 = vpack.c.bf16 %v8039_v27, %v8038_v26  ;;  %v8135_v27 = vld [vmem:[%s15474_s3 + $0x720] sm:$0xff] }
  0xfd   :  { %11001 = vmatprep.subr.bf16.mxu1 %v11000_v33  ;;  %v8005_v33 = vld [vmem:[%s15474_s3 + $0x3a0] sm:$0xff]  ;;  %v11053_v35 = vpack.c.bf16 %v7988_v32, %v7987_v31  ;;  %v8107_v32 = vld [vmem:[%s15474_s3 + $0x670] sm:$0xff]  ;;  %v8134_v26 = vld [vmem:[%s15474_s3 + $0x718] sm:$0xff] }
  0xfe   :  { %11026 = vmatpush3.bf16.msra.mxu0 %v11025_v36  ;;  %v11055_v36 = vpack.c.bf16 %v8006_v34, %v8005_v33  ;;  %v8108_v33 = vld [vmem:[%s15474_s3 + $0x678] sm:$0xff] }
  0xff   :  { %10045 = vmatprep.subr.mxu0 %v12080_v9  ;;  %v11157_v34 = vpack.c.bf16 %v8108_v33, %v8107_v32  ;;  %v8136_v32 = vld [vmem:[%s15474_s3 + $0x728] sm:$0xff]  ;;  %v8137_v33 = vld [vmem:[%s15474_s3 + $0x730] sm:$0xff] }
 0x100   :  { %11003 = vmatpush3.bf16.msra.mxu1 %v11002_v39  ;;  %v8040_v39 = vld [vmem:[%s15474_s3 + $0x488] sm:$0xff] }
 0x101   :  { %11005 = vmatprep.subr.bf16.mxu1 %v11004_v40  ;;  %v8041_v40 = vld [vmem:[%s15474_s3 + $0x490] sm:$0xff] }
 0x102   :  { %10046 = vmatpush3.msk.msra.mxu0 %vm273_vm2, %v7966_v45  ;;  %v11074_v42 = vpack.c.bf16 %v8041_v40, %v8040_v39  ;;  %v8042_v45 = vld [vmem:[%s15474_s3 + $0x498] sm:$0xff] }
 0x103   :  { %10048 = vmatmul.mubr.msk.f32.vlgmr.msra.gmra.mrb[4].mxu0 %vm269_vm3, %v12391_v58  ;;  %v8112_v39 = vld [vmem:[%s15474_s3 + $0x698] sm:$0xff] }
 0x104   :  { %11007 = vmatpush3.bf16.msra.mxu1 %v11006_v46  ;;  %v8043_v46 = vld [vmem:[%s15474_s3 + $0x4a0] sm:$0xff]  ;;  %v11163_v40 = vpack.c.bf16 %v8112_v39, %v8111_v38  ;;  %v8171_v38 = vld [vmem:[%s15474_s3 + $0x810] sm:$0xff]  ;;  %v8172_v39 = vld [vmem:[%s15474_s3 + $0x818] sm:$0xff] }
 0x105   :  { %11009 = vmatprep.subr.bf16.mxu1 %v11008_v47  ;;  %v11076_v47 = vpack.c.bf16 %v8025_v44, %v8024_v43  ;;  %v11078_v48 = vpack.c.bf16 %v8043_v46, %v8042_v45  ;;  %v8138_v44 = vld [vmem:[%s15474_s3 + $0x738] sm:$0xff]  ;;  %v8139_v45 = vld [vmem:[%s15474_s3 + $0x740] sm:$0xff] }
 0x106   :  { %v8122_v46 = vld [vmem:[%s15474_s3 + $0x6b8] sm:$0xff] }
 0x108   :  { %11011 = vmatpush3.bf16.msra.mxu1 %v11010_v52  ;;  %v8045_v52 = vld [vmem:[%s15474_s3 + $0x4b0] sm:$0xff] }
 0x109   :  { %11028 = vmatprep.subr.bf16.mxu1 %v11027_v53  ;;  %v11080_v53 = vpack.c.bf16 %v8027_v50, %v8026_v49  ;;  %v11082_v54 = vpack.c.bf16 %v8045_v52, %v8044_v51  ;;  %v8141_v49 = vld [vmem:[%s15474_s3 + $0x750] sm:$0xff]  ;;  %v11168_v51 = vpack.c.bf16 %v8139_v45, %v8138_v44  ;;  %v8173_v44 = vld [vmem:[%s15474_s3 + $0x820] sm:$0xff]  ;;  %v8174_v45 = vld [vmem:[%s15474_s3 + $0x828] sm:$0xff] }
 0x10a   :  { %v8115_v50 = vld [vmem:[%s15474_s3 + $0x6b0] sm:$0x3] }
 0x10b   :  { %531 = vmatmul.mubr.f32.vlgmr.msra.gmra.mrb[4].mxu1 %v12409_v2 }
 0x10c   :  { %11030 = vmatpush3.bf16.msra.mxu1 %v11029_v59  ;;  %883 = vmatprep.mubr.f32.mxu1 %v12399_v63  ;;  %v8047_v59 = vld [vmem:[%s15474_s3 + $0x4c0] sm:$0xff] }
 0x10d   :  { %11032 = vmatprep.subr.bf16.mxu1 %v11031_v60  ;;  %v11084_v60 = vpack.c.bf16 %v8029_v56, %v8028_v55  ;;  %v11086_v61 = vpack.c.bf16 %v8047_v59, %v8046_v57  ;;  %v8125_v55 = vld [vmem:[%s15474_s3 + $0x6d0] sm:$0xff]  ;;  %v8142_v56 = vld [vmem:[%s15474_s3 + $0x758] sm:$0xff]  ;;  %v8143_v57 = vld [vmem:[%s15474_s3 + $0x760] sm:$0xff] }
 0x110   :  { %11034 = vmatpush3.bf16.msra.mxu1 %v11033_v3  ;;  %v8049_v3 = vld [vmem:[%s15474_s3 + $0x4d0] sm:$0xff] }
 0x111   :  { %11036 = vmatprep.subr.bf16.mxu1 %v11035_v5  ;;  %v11088_v5 = vpack.c.bf16 %v8031_v0, %v8030_v62  ;;  %v11090_v6 = vpack.c.bf16 %v8049_v3, %v8048_v1  ;;  %v8127_v62 = vld [vmem:[%s15474_s3 + $0x6e0] sm:$0xff]  ;;  %v8144_v0 = vld [vmem:[%s15474_s3 + $0x768] sm:$0xff]  ;;  %v8145_v1 = vld [vmem:[%s15474_s3 + $0x770] sm:$0xff] }
 0x112   :  { %v7969_v3 = vld [vmem:[%s15475_s4 + $0x10] sm:$0xff] }
 0x113   :  { %10052 = vmatprep.mubr.msk.f32.mxu0 %vm609_vm7, %v7969_v3  ;;  %v8197_v3 = vld [vmem:[%s15474_s3 + $0x8e0] sm:$0xff] }
 0x114   :  { %11038 = vmatpush3.bf16.msra.mxu1 %v11037_v11  ;;  %v8051_v11 = vld [vmem:[%s15474_s3 + $0x4e0] sm:$0xff] }
 0x115   :  { %11040 = vmatprep.subr.bf16.mxu1 %v11039_v12  ;;  %v11092_v12 = vpack.c.bf16 %v8033_v8, %v8032_v7  ;;  %v11094_v13 = vpack.c.bf16 %v8051_v11, %v8050_v10  ;;  %v8128_v7 = vld [vmem:[%s15474_s3 + $0x6e8] sm:$0xff]  ;;  %v8129_v8 = vld [vmem:[%s15474_s3 + $0x6f0] sm:$0xff]  ;;  %v8146_v10 = vld [vmem:[%s15474_s3 + $0x778] sm:$0xff] }
 0x116   :  { %v8147_v11 = vld [vmem:[%s15474_s3 + $0x780] sm:$0xff] }
 0x118   :  { %11042 = vmatpush3.bf16.msra.mxu1 %v11041_v17  ;;  %v8053_v17 = vld [vmem:[%s15474_s3 + $0x4f0] sm:$0xff] }
 0x119   :  { %11044 = vmatprep.subr.bf16.mxu1 %v11043_v18  ;;  %v11096_v18 = vpack.c.bf16 %v8035_v15, %v8034_v14  ;;  %v11098_v19 = vpack.c.bf16 %v8053_v17, %v8052_v16  ;;  %v8130_v14 = vld [vmem:[%s15474_s3 + $0x6f8] sm:$0xff]  ;;  %v8131_v15 = vld [vmem:[%s15474_s3 + $0x700] sm:$0xff]  ;;  %v8148_v16 = vld [vmem:[%s15474_s3 + $0x788] sm:$0xff] }
 0x11a   :  { %v8149_v17 = vld [vmem:[%s15474_s3 + $0x790] sm:$0xff] }
 0x11c   :  { %11046 = vmatpush3.bf16.msra.mxu1 %v11045_v23  ;;  %v8055_v23 = vld [vmem:[%s15474_s3 + $0x500] sm:$0xff] }
 0x11d   :  { %11048 = vmatprep.subr.bf16.mxu1 %v11047_v24  ;;  %v11100_v24 = vpack.c.bf16 %v8037_v21, %v8036_v20  ;;  %v11102_v25 = vpack.c.bf16 %v8055_v23, %v8054_v22  ;;  %v8132_v20 = vld [vmem:[%s15474_s3 + $0x708] sm:$0xff]  ;;  %v8133_v21 = vld [vmem:[%s15474_s3 + $0x710] sm:$0xff]  ;;  %v8150_v22 = vld [vmem:[%s15474_s3 + $0x798] sm:$0xff] }
 0x11e   :  { %v8151_v23 = vld [vmem:[%s15474_s3 + $0x7a0] sm:$0xff] }
 0x120   :  { %11050 = vmatpush3.bf16.msra.mxu1 %v11049_v29  ;;  %v8105_v29 = vld [vmem:[%s15474_s3 + $0x660] sm:$0xff] }
 0x121   :  { %11052 = vmatprep.subr.bf16.mxu1 %v11051_v30  ;;  %v8106_v30 = vld [vmem:[%s15474_s3 + $0x668] sm:$0xff] }
 0x122   :  { %v11154_v31 = vpack.c.bf16 %v8106_v30, %v8105_v29  ;;  %v8153_v29 = vld [vmem:[%s15474_s3 + $0x7b0] sm:$0xff]  ;;  %v11194_v30 = vpack.c.bf16 %v8135_v27, %v8134_v26  ;;  %v8254_v27 = vld [vmem:[%s15474_s3 + $0xa78] sm:$0xff] }
 0x124   :  { %11054 = vmatpush3.bf16.msra.mxu1 %v11053_v35  ;;  %v8109_v35 = vld [vmem:[%s15474_s3 + $0x680] sm:$0xff] }
 0x125   :  { %11056 = vmatprep.subr.bf16.mxu1 %v11055_v36  ;;  %v8110_v36 = vld [vmem:[%s15474_s3 + $0x688] sm:$0xff] }
 0x126   :  { %v11160_v37 = vpack.c.bf16 %v8110_v36, %v8109_v35  ;;  %v8188_v35 = vld [vmem:[%s15474_s3 + $0x898] sm:$0xff]  ;;  %v11198_v36 = vpack.c.bf16 %v8137_v33, %v8136_v32 }
 0x127   :  { %v8258_v33 = vld [vmem:[%s15474_s3 + $0xa98] sm:$0xff] }
 0x128   :  { %11058 = vmatpush3.bf16.msra.mxu1 %v11057_v41  ;;  %v8113_v41 = vld [vmem:[%s15474_s3 + $0x6a0] sm:$0xff] }
 0x129   :  { %11075 = vmatprep.subr.bf16.mxu1 %v11074_v42  ;;  %v8114_v42 = vld [vmem:[%s15474_s3 + $0x6a8] sm:$0xff] }
 0x12a   :  { %v11166_v43 = vpack.c.bf16 %v8114_v42, %v8113_v41  ;;  %v8190_v41 = vld [vmem:[%s15474_s3 + $0x8a8] sm:$0xff]  ;;  %v11217_v42 = vpack.c.bf16 %v8172_v39, %v8171_v38  ;;  %v8285_v39 = vld [vmem:[%s15474_s3 + $0xb40] sm:$0xff] }
 0x12b   :  { %884 = vmatmul.mubr.f32.vlgmr.msra.gmra.mrb[6].mxu1 %v12409_v2 }
 0x12c   :  { %11077 = vmatpush3.bf16.msra.mxu1 %v11076_v47  ;;  %1156 = vmatprep.mubr.f32.mxu1 %v12399_v63  ;;  %v8123_v47 = vld [vmem:[%s15474_s3 + $0x6c0] sm:$0xff] }
 0x12d   :  { %11079 = vmatprep.subr.bf16.mxu1 %v11078_v48  ;;  %v8140_v48 = vld [vmem:[%s15474_s3 + $0x748] sm:$0xff]  ;;  %v11170_v52 = vpack.c.bf16 %v8123_v47, %v8122_v46  ;;  %v8191_v46 = vld [vmem:[%s15474_s3 + $0x8b0] sm:$0xff]  ;;  %v8192_v47 = vld [vmem:[%s15474_s3 + $0x8b8] sm:$0xff] }
 0x130   :  { %11081 = vmatpush3.bf16.msra.mxu1 %v11080_v53  ;;  %v11172_v53 = vpack.c.bf16 %v8141_v49, %v8140_v48  ;;  %v11221_v48 = vpack.c.bf16 %v8174_v45, %v8173_v44  ;;  %v11223_v49 = vpack.c.bf16 %v8192_v47, %v8191_v46  ;;  %v8288_v44 = vld [vmem:[%s15474_s3 + $0xb58] sm:$0xff] }
 0x131   :  { %11083 = vmatprep.subr.bf16.mxu1 %v11082_v54  ;;  %v8124_v54 = vld [vmem:[%s15474_s3 + $0x6c8] sm:$0xff]  ;;  %v8262_v45 = vld [vmem:[%s15474_s3 + $0xab8] sm:$0x3] }
 0x132   :  { %v11174_v59 = vpack.c.bf16 %v8125_v55, %v8124_v54 }
 0x134   :  { %11085 = vmatpush3.bf16.msra.mxu1 %v11084_v60  ;;  %v11176_v60 = vpack.c.bf16 %v8143_v57, %v8142_v56  ;;  %v8177_v56 = vld [vmem:[%s15474_s3 + $0x840] sm:$0xff]  ;;  %v8178_v57 = vld [vmem:[%s15474_s3 + $0x848] sm:$0xff] }
 0x135   :  { %11087 = vmatprep.subr.bf16.mxu1 %v11086_v61  ;;  %v8126_v61 = vld [vmem:[%s15474_s3 + $0x6d8] sm:$0xff] }
 0x138   :  { %11089 = vmatpush3.bf16.msra.mxu1 %v11088_v5  ;;  %v11178_v5 = vpack.c.bf16 %v8127_v62, %v8126_v61  ;;  %v11229_v61 = vpack.c.bf16 %v8178_v57, %v8177_v56  ;;  %v8274_v56 = vld [vmem:[%s15474_s3 + $0xae8] sm:$0xff]  ;;  %v8291_v57 = vld [vmem:[%s15474_s3 + $0xb70] sm:$0xff] }
 0x139   :  { %11091 = vmatprep.subr.bf16.mxu1 %v11090_v6  ;;  %v11180_v6 = vpack.c.bf16 %v8145_v1, %v8144_v0  ;;  %v8179_v0 = vld [vmem:[%s15474_s3 + $0x850] sm:$0xff]  ;;  %v8180_v1 = vld [vmem:[%s15474_s3 + $0x858] sm:$0xff] }
 0x13c   :  { %11093 = vmatpush3.bf16.msra.mxu1 %v11092_v12  ;;  %v11182_v12 = vpack.c.bf16 %v8129_v8, %v8128_v7  ;;  %v8181_v8 = vld [vmem:[%s15474_s3 + $0x860] sm:$0xff] }
 0x13d   :  { %11095 = vmatprep.subr.bf16.mxu1 %v11094_v13  ;;  %v11184_v13 = vpack.c.bf16 %v8147_v11, %v8146_v10  ;;  %v8182_v10 = vld [vmem:[%s15474_s3 + $0x868] sm:$0xff]  ;;  %v8199_v11 = vld [vmem:[%s15474_s3 + $0x8f0] sm:$0xff] }
 0x140   :  { %11097 = vmatpush3.bf16.msra.mxu1 %v11096_v18  ;;  %v11186_v18 = vpack.c.bf16 %v8131_v15, %v8130_v14  ;;  %v8183_v15 = vld [vmem:[%s15474_s3 + $0x870] sm:$0xff] }
 0x141   :  { %11099 = vmatprep.subr.bf16.mxu1 %v11098_v19  ;;  %v11188_v19 = vpack.c.bf16 %v8149_v17, %v8148_v16  ;;  %v8184_v16 = vld [vmem:[%s15474_s3 + $0x878] sm:$0xff]  ;;  %v8201_v17 = vld [vmem:[%s15474_s3 + $0x900] sm:$0xff] }
 0x144   :  { %11101 = vmatpush3.bf16.msra.mxu1 %v11100_v24  ;;  %v11190_v24 = vpack.c.bf16 %v8133_v21, %v8132_v20  ;;  %v8185_v21 = vld [vmem:[%s15474_s3 + $0x880] sm:$0xff] }
 0x145   :  { %11103 = vmatprep.subr.bf16.mxu1 %v11102_v25  ;;  %v11192_v25 = vpack.c.bf16 %v8151_v23, %v8150_v22  ;;  %v8186_v22 = vld [vmem:[%s15474_s3 + $0x888] sm:$0xff] }
 0x146   :  { %v11245_v23 = vpack.c.bf16 %v8186_v22, %v8185_v21  ;;  %v8280_v21 = vld [vmem:[%s15474_s3 + $0xb18] sm:$0xff]  ;;  %v8297_v22 = vld [vmem:[%s15474_s3 + $0xba0] sm:$0xff] }
 0x148   :  { %11105 = vmatpush3.bf16.msra.mxu1 %v11104_v28  ;;  %v8152_v28 = vld [vmem:[%s15474_s3 + $0x7a8] sm:$0xff] }
 0x149   :  { %11153 = vmatprep.subr.bf16.mxu1 %v12078_v4 }
 0x14b   :  { %1157 = vmatmul.mubr.f32.vlgmr.msra.gmra.mrb[8].mxu1 %v12409_v2 }
 0x14c   :  { %11155 = vmatpush3.bf16.msra.mxu1 %v11154_v31  ;;  %10142 = vmatprep.mubr.msk.f32.mxu1 %vm12079_vm0, %v12080_v9  ;;  %v11196_v31 = vpack.c.bf16 %v8153_v29, %v8152_v28  ;;  %v8255_v28 = vld [vmem:[%s15474_s3 + $0xa80] sm:$0xff] }
 0x14d   :  { %11156 = vmatprep.subr.bf16.mxu1 %v12078_v4  ;;  %v11298_v29 = vpack.c.bf16 %v8255_v28, %v8254_v27  ;;  %v8282_v27 = vld [vmem:[%s15474_s3 + $0xb28] sm:$0xff]  ;;  %v8299_v28 = vld [vmem:[%s15474_s3 + $0xbb0] sm:$0xff] }
 0x150   :  { %11158 = vmatpush3.bf16.msra.mxu1 %v11157_v34  ;;  %v8187_v34 = vld [vmem:[%s15474_s3 + $0x890] sm:$0xff] }
 0x151   :  { %11159 = vmatprep.subr.bf16.mxu1 %v12078_v4 }
 0x154   :  { %11161 = vmatpush3.bf16.msra.mxu1 %v11160_v37  ;;  %v11215_v37 = vpack.c.bf16 %v8188_v35, %v8187_v34  ;;  %v8259_v34 = vld [vmem:[%s15474_s3 + $0xaa0] sm:$0xff] }
 0x155   :  { %11162 = vmatprep.subr.bf16.mxu1 %v12078_v4  ;;  %v11304_v35 = vpack.c.bf16 %v8259_v34, %v8258_v33  ;;  %v8284_v33 = vld [vmem:[%s15474_s3 + $0xb38] sm:$0xff] }
 0x156   :  { %v8334_v34 = vld [vmem:[%s15474_s3 + $0xc98] sm:$0xff] }
 0x158   :  { %11164 = vmatpush3.bf16.msra.mxu1 %v11163_v40  ;;  %v8189_v40 = vld [vmem:[%s15474_s3 + $0x8a0] sm:$0xff] }
 0x159   :  { %11165 = vmatprep.subr.bf16.mxu1 %v12078_v4 }
 0x15c   :  { %11167 = vmatpush3.bf16.msra.mxu1 %v11166_v43  ;;  %v11219_v43 = vpack.c.bf16 %v8190_v41, %v8189_v40  ;;  %v8286_v40 = vld [vmem:[%s15474_s3 + $0xb48] sm:$0xff]  ;;  %v8269_v41 = vld [vmem:[%s15474_s3 + $0xac0] sm:$0xff] }
 0x15d   :  { %10140 = vmatprep.subr.mxu1 %v12080_v9  ;;  %v11309_v46 = vpack.c.bf16 %v8286_v40, %v8285_v39  ;;  %v8319_v39 = vld [vmem:[%s15474_s3 + $0xc20] sm:$0xff]  ;;  %v8336_v40 = vld [vmem:[%s15474_s3 + $0xca8] sm:$0xff] }
 0x160   :  { %10141 = vmatpush3.msk.msra.mxu1 %vm273_vm2, %v8115_v50  ;;  %v8175_v50 = vld [vmem:[%s15474_s3 + $0x830] sm:$0xff] }
 0x161   :  { %10143 = vmatmul.mubr.msk.f32.vlgmr.msra.gmra.mrb[10].mxu1 %vm269_vm3, %v12391_v58  ;;  %11169 = vmatprep.subr.bf16.mxu1 %v11168_v51  ;;  %v8176_v51 = vld [vmem:[%s15474_s3 + $0x838] sm:$0xff] }
 0x162   :  { %11171 = vmatpush3.bf16.msra.mxu1 %v11170_v52  ;;  %1702 = vmatprep.mubr.f32.mxu1 %v12399_v63  ;;  %v8193_v52 = vld [vmem:[%s15474_s3 + $0x8c0] sm:$0xff]  ;;  %v11225_v54 = vpack.c.bf16 %v8176_v51, %v8175_v50  ;;  %v8272_v50 = vld [vmem:[%s15474_s3 + $0xad8] sm:$0xff] }
 0x163   :  { %11173 = vmatprep.subr.bf16.mxu1 %v11172_v53  ;;  %v8194_v53 = vld [vmem:[%s15474_s3 + $0x8c8] sm:$0xff]  ;;  %v8289_v51 = vld [vmem:[%s15474_s3 + $0xb60] sm:$0xff] }
 0x164   :  { %v11227_v55 = vpack.c.bf16 %v8194_v53, %v8193_v52  ;;  %v8290_v52 = vld [vmem:[%s15474_s3 + $0xb68] sm:$0xff] }
 0x166   :  { %11175 = vmatpush3.bf16.msra.mxu1 %v11174_v59  ;;  %v8195_v59 = vld [vmem:[%s15474_s3 + $0x8d0] sm:$0xff] }
 0x167   :  { %11177 = vmatprep.subr.bf16.mxu1 %v11176_v60  ;;  %v8196_v60 = vld [vmem:[%s15474_s3 + $0x8d8] sm:$0xff] }
 0x168   :  { %v11231_v62 = vpack.c.bf16 %v8196_v60, %v8195_v59  ;;  %v8292_v59 = vld [vmem:[%s15474_s3 + $0xb78] sm:$0xff] }
 0x16a   :  { %11179 = vmatpush3.bf16.msra.mxu1 %v11178_v5  ;;  %v8198_v5 = vld [vmem:[%s15474_s3 + $0x8e8] sm:$0xff] }
 0x16b   :  { %11181 = vmatprep.subr.bf16.mxu1 %v11180_v6  ;;  %v11233_v6 = vpack.c.bf16 %v8180_v1, %v8179_v0  ;;  %v11235_v7 = vpack.c.bf16 %v8198_v5, %v8197_v3  ;;  %v8276_v0 = vld [vmem:[%s15474_s3 + $0xaf8] sm:$0xff]  ;;  %v8293_v3 = vld [vmem:[%s15474_s3 + $0xb80] sm:$0xff]  ;;  %v8294_v5 = vld [vmem:[%s15474_s3 + $0xb88] sm:$0xff] }
 0x16e   :  { %11183 = vmatpush3.bf16.msra.mxu1 %v11182_v12  ;;  %v8200_v12 = vld [vmem:[%s15474_s3 + $0x8f8] sm:$0xff] }
 0x16f   :  { %11185 = vmatprep.subr.bf16.mxu1 %v11184_v13  ;;  %v11237_v13 = vpack.c.bf16 %v8182_v10, %v8181_v8  ;;  %v11239_v14 = vpack.c.bf16 %v8200_v12, %v8199_v11  ;;  %v11325_v11 = vpack.c.bf16 %v8294_v5, %v8293_v3  ;;  %v8277_v12 = vld [vmem:[%s15474_s3 + $0xb00] sm:$0xff] }
 0x172   :  { %11187 = vmatpush3.bf16.msra.mxu1 %v11186_v18  ;;  %v8202_v18 = vld [vmem:[%s15474_s3 + $0x908] sm:$0xff] }
 0x173   :  { %11189 = vmatprep.subr.bf16.mxu1 %v11188_v19  ;;  %v11241_v19 = vpack.c.bf16 %v8184_v16, %v8183_v15  ;;  %v11243_v20 = vpack.c.bf16 %v8202_v18, %v8201_v17  ;;  %v8295_v15 = vld [vmem:[%s15474_s3 + $0xb90] sm:$0xff]  ;;  %v8296_v16 = vld [vmem:[%s15474_s3 + $0xb98] sm:$0xff] }
 0x176   :  { %11191 = vmatpush3.bf16.msra.mxu1 %v11190_v24  ;;  %v8252_v24 = vld [vmem:[%s15474_s3 + $0xa68] sm:$0xff] }
 0x177   :  { %11193 = vmatprep.subr.bf16.mxu1 %v11192_v25  ;;  %v8253_v25 = vld [vmem:[%s15474_s3 + $0xa70] sm:$0xff] }
 0x178   :  { %v11295_v26 = vpack.c.bf16 %v8253_v25, %v8252_v24 }
 0x17a   :  { %11195 = vmatpush3.bf16.msra.mxu1 %v11194_v30  ;;  %v8256_v30 = vld [vmem:[%s15474_s3 + $0xa88] sm:$0xff] }
 0x17b   :  { %11197 = vmatprep.subr.bf16.mxu1 %v11196_v31  ;;  %v8257_v31 = vld [vmem:[%s15474_s3 + $0xa90] sm:$0xff] }
 0x17c   :  { %v11301_v32 = vpack.c.bf16 %v8257_v31, %v8256_v30 }
 0x17e   :  { %11199 = vmatpush3.bf16.msra.mxu1 %v11198_v36  ;;  %v8260_v36 = vld [vmem:[%s15474_s3 + $0xaa8] sm:$0xff] }
 0x17f   :  { %11216 = vmatprep.subr.bf16.mxu1 %v11215_v37  ;;  %v8261_v37 = vld [vmem:[%s15474_s3 + $0xab0] sm:$0xff] }
 0x180   :  { %v11307_v38 = vpack.c.bf16 %v8261_v37, %v8260_v36 }
 0x181   :  { %1703 = vmatmul.mubr.f32.vlgmr.msra.gmra.mrb[12].mxu1 %v12409_v2 }
 0x182   :  { %11218 = vmatpush3.bf16.msra.mxu1 %v11217_v42  ;;  %1975 = vmatprep.mubr.f32.mxu1 %v12399_v63  ;;  %v8270_v42 = vld [vmem:[%s15474_s3 + $0xac8] sm:$0xff] }
 0x183   :  { %11220 = vmatprep.subr.bf16.mxu1 %v11219_v43  ;;  %v8287_v43 = vld [vmem:[%s15474_s3 + $0xb50] sm:$0xff]  ;;  %v11311_v47 = vpack.c.bf16 %v8270_v42, %v8269_v41 }
 0x184   :  { %v8337_v41 = vld [vmem:[%s15474_s3 + $0xcb0] sm:$0xff] }
 0x186   :  { %11222 = vmatpush3.bf16.msra.mxu1 %v11221_v48  ;;  %v11313_v48 = vpack.c.bf16 %v8288_v44, %v8287_v43  ;;  %v11360_v43 = vpack.c.bf16 %v8337_v41, %v8336_v40  ;;  %v8320_v44 = vld [vmem:[%s15474_s3 + $0xc28] sm:$0xff]  ;;  %v8012_v40 = vld [vmem:[%s15474_s3 + $0x3d8] sm:$0xff]  ;;  %v8399_v41 = vld [vmem:[%s15474_s3 + $0xe70] sm:$0xff] }
 0x187   :  { %11224 = vmatprep.subr.bf16.mxu1 %v11223_v49  ;;  %v8271_v49 = vld [vmem:[%s15474_s3 + $0xad0] sm:$0xff] }
 0x188   :  { %v11315_v53 = vpack.c.bf16 %v8272_v50, %v8271_v49 }
 0x18a   :  { %11226 = vmatpush3.bf16.msra.mxu1 %v11225_v54  ;;  %v11317_v54 = vpack.c.bf16 %v8290_v52, %v8289_v51  ;;  %v8322_v52 = vld [vmem:[%s15474_s3 + $0xc38] sm:$0xff] }
 0x18b   :  { %11228 = vmatprep.subr.bf16.mxu1 %v11227_v55  ;;  %v8273_v55 = vld [vmem:[%s15474_s3 + $0xae0] sm:$0xff] }
 0x18c   :  { %v11319_v60 = vpack.c.bf16 %v8274_v56, %v8273_v55  ;;  %v8341_v55 = vld [vmem:[%s15474_s3 + $0xcd0] sm:$0xff] }
 0x18e   :  { %11230 = vmatpush3.bf16.msra.mxu1 %v11229_v61  ;;  %v11321_v61 = vpack.c.bf16 %v8292_v59, %v8291_v57  ;;  %v8324_v59 = vld [vmem:[%s15474_s3 + $0xc48] sm:$0xff] }
 0x18f   :  { %11232 = vmatprep.subr.bf16.mxu1 %v11231_v62  ;;  %v8275_v62 = vld [vmem:[%s15474_s3 + $0xaf0] sm:$0xff] }
 0x190   :  { %v11323_v8 = vpack.c.bf16 %v8276_v0, %v8275_v62  ;;  %v8342_v62 = vld [vmem:[%s15474_s3 + $0xcd8] sm:$0xff]  ;;  %v8343_v0 = vld [vmem:[%s15474_s3 + $0xce0] sm:$0xff] }
 0x192   :  { %11234 = vmatpush3.bf16.msra.mxu1 %v11233_v6 }
 0x193   :  { %11236 = vmatprep.subr.bf16.mxu1 %v11235_v7 }
 0x196   :  { %11238 = vmatpush3.bf16.msra.mxu1 %v11237_v13  ;;  %v8278_v13 = vld [vmem:[%s15474_s3 + $0xb08] sm:$0xff] }
 0x197   :  { %11240 = vmatprep.subr.bf16.mxu1 %v11239_v14  ;;  %v11327_v18 = vpack.c.bf16 %v8278_v13, %v8277_v12  ;;  %v8345_v12 = vld [vmem:[%s15474_s3 + $0xcf0] sm:$0xff]  ;;  %v7970_v13 = vld [vmem:[%s15475_s4 + $0x18] sm:$0xff] }
 0x19a   :  { %11242 = vmatpush3.bf16.msra.mxu1 %v11241_v19  ;;  %v11329_v19 = vpack.c.bf16 %v8296_v16, %v8295_v15  ;;  %v417_v15 = vld [vmem:[%s15475_s4] sm:$0xff] }
 0x19b   :  { %11244 = vmatprep.subr.bf16.mxu1 %v11243_v20  ;;  %v8279_v20 = vld [vmem:[%s15474_s3 + $0xb10] sm:$0xff] }
 0x19c   :  { %v11331_v24 = vpack.c.bf16 %v8280_v21, %v8279_v20  ;;  %v8346_v20 = vld [vmem:[%s15474_s3 + $0xcf8] sm:$0xff]  ;;  %v8347_v21 = vld [vmem:[%s15474_s3 + $0xd00] sm:$0xff] }
 0x19e   :  { %11246 = vmatpush3.bf16.msra.mxu1 %v11245_v23  ;;  %v8298_v23 = vld [vmem:[%s15474_s3 + $0xba8] sm:$0xff] }
 0x19f   :  { %11294 = vmatprep.subr.bf16.mxu1 %v12078_v4  ;;  %v11333_v25 = vpack.c.bf16 %v8298_v23, %v8297_v22  ;;  %v8007_v23 = vld [vmem:[%s15474_s3 + $0x3b0] sm:$0xff] }
 0x1a1   :  { %1976 = vmatmul.mubr.f32.vlgmr.msra.gmra.mrb[14].mxu1 %v12409_v2 }
 0x1a2   :  { %11296 = vmatpush3.bf16.msra.mxu1 %v11295_v26  ;;  %10232 = vmatprep.mubr.msk.f32.mxu1 %vm12079_vm0, %v12080_v9  ;;  %v8281_v26 = vld [vmem:[%s15474_s3 + $0xb20] sm:$0xff] }
 0x1a3   :  { %11297 = vmatprep.subr.bf16.mxu1 %v12078_v4  ;;  %v11335_v30 = vpack.c.bf16 %v8282_v27, %v8281_v26  ;;  %v8331_v26 = vld [vmem:[%s15474_s3 + $0xc80] sm:$0xff]  ;;  %v8348_v27 = vld [vmem:[%s15474_s3 + $0xd08] sm:$0xff] }
 0x1a6   :  { %11299 = vmatpush3.bf16.msra.mxu1 %v11298_v29  ;;  %v8300_v29 = vld [vmem:[%s15474_s3 + $0xbb8] sm:$0xff] }
 0x1a7   :  { %11300 = vmatprep.subr.bf16.mxu1 %v12078_v4  ;;  %v11337_v31 = vpack.c.bf16 %v8300_v29, %v8299_v28  ;;  %v8349_v28 = vld [vmem:[%s15474_s3 + $0xd10] sm:$0xff]  ;;  %v418_v29 = vld [vmem:[%s15475_s4 + $0x8] sm:$0xff] }
 0x1aa   :  { %11302 = vmatpush3.bf16.msra.mxu1 %v11301_v32  ;;  %v8283_v32 = vld [vmem:[%s15474_s3 + $0xb30] sm:$0xff] }
 0x1ab   :  { %11303 = vmatprep.subr.bf16.mxu1 %v12078_v4  ;;  %v11339_v36 = vpack.c.bf16 %v8284_v33, %v8283_v32  ;;  %v8009_v32 = vld [vmem:[%s15474_s3 + $0x3c0] sm:$0xff]  ;;  %v8010_v33 = vld [vmem:[%s15474_s3 + $0x3c8] sm:$0xff] }
 0x1ae   :  { %11305 = vmatpush3.bf16.msra.mxu1 %v11304_v35  ;;  %v8335_v35 = vld [vmem:[%s15474_s3 + $0xca0] sm:$0xff] }
 0x1af   :  { %11306 = vmatprep.subr.bf16.mxu1 %v12078_v4  ;;  %v11356_v37 = vpack.c.bf16 %v8335_v35, %v8334_v34  ;;  %v11384_v34 = vpack.c.bf16 %v8349_v28, %v8348_v27  ;;  %v8332_v35 = vld [vmem:[%s15474_s3 + $0xc88] sm:$0xff]  ;;  %v8439_v27 = vld [vmem:[%s15474_s3 + $0xf80] sm:$0xff] }
 0x1b2   :  { %11308 = vmatpush3.bf16.msra.mxu1 %v11307_v38  ;;  %v8318_v38 = vld [vmem:[%s15474_s3 + $0xc18] sm:$0xff] }
 0x1b3   :  { %10230 = vmatprep.subr.mxu1 %v12080_v9  ;;  %v11358_v42 = vpack.c.bf16 %v8319_v39, %v8318_v38  ;;  %v8011_v39 = vld [vmem:[%s15474_s3 + $0x3d0] sm:$0xff] }
 0x1b6   :  { %10231 = vmatpush3.msk.msra.mxu1 %vm273_vm2, %v8262_v45  ;;  %v8321_v45 = vld [vmem:[%s15474_s3 + $0xc30] sm:$0xff] }
 0x1b7   :  { %10233 = vmatmul.mubr.msk.f32.vlgmr.msra.gmra.mrb[16].mxu1 %vm269_vm3, %v12391_v58  ;;  %11310 = vmatprep.subr.bf16.mxu1 %v11309_v46  ;;  %v11362_v50 = vpack.c.bf16 %v8321_v45, %v8320_v44  ;;  %v8013_v45 = vld [vmem:[%s15474_s3 + $0x3e0] sm:$0xff] }
 0x1b8   :  { %11312 = vmatpush3.bf16.msra.mxu1 %v11311_v47  ;;  %2521 = vmatprep.mubr.f32.mxu1 %v12399_v63  ;;  %v8338_v47 = vld [vmem:[%s15474_s3 + $0xcb8] sm:$0xff] }
 0x1b9   :  { %11314 = vmatprep.subr.bf16.mxu1 %v11313_v48  ;;  %v8339_v48 = vld [vmem:[%s15474_s3 + $0xcc0] sm:$0xff] }
 0x1ba   :  { %v11364_v51 = vpack.c.bf16 %v8339_v48, %v8338_v47  ;;  %v8401_v47 = vld [vmem:[%s15474_s3 + $0xe80] sm:$0xff]  ;;  %v8402_v48 = vld [vmem:[%s15474_s3 + $0xe88] sm:$0xff] }
 0x1bc   :  { %11316 = vmatpush3.bf16.msra.mxu1 %v11315_v53  ;;  %v8323_v53 = vld [vmem:[%s15474_s3 + $0xc40] sm:$0xff] }
 0x1bd   :  { %11318 = vmatprep.subr.bf16.mxu1 %v11317_v54  ;;  %v8340_v54 = vld [vmem:[%s15474_s3 + $0xcc8] sm:$0xff]  ;;  %v11366_v56 = vpack.c.bf16 %v8323_v53, %v8322_v52  ;;  %v8016_v52 = vld [vmem:[%s15474_s3 + $0x3f8] sm:$0xff]  ;;  %v8403_v53 = vld [vmem:[%s15474_s3 + $0xe90] sm:$0xff] }
 0x1be   :  { %v413_v1 = vpop.f32.mrb[2].mxu1  ;;  %v11368_v57 = vpack.c.bf16 %v8341_v55, %v8340_v54  ;;  %v8404_v54 = vld [vmem:[%s15474_s3 + $0xe98] sm:$0xff] }
 0x1bf   :  { %v10024_v6 = vpop.f32.mrb[3].mxu1 }
 0x1c0   :  { %11320 = vmatpush3.bf16.msra.mxu1 %v11319_v60  ;;  %v8977_v7 = vpop.f32.mrb[2].mxu0  ;;  %v8325_v60 = vld [vmem:[%s15474_s3 + $0xc50] sm:$0xff]  ;;  %v11372_v6 = vpack.c.bf16 %v8343_v0, %v8342_v62  ;;  %v8017_v0 = vld [vmem:[%s15474_s3 + $0x400] sm:$0x3] }
 0x1c1   :  { %v8978_v10 = vpop.f32.mrb[3].mxu0  ;;  %11322 = vmatprep.subr.bf16.mxu1 %v11321_v61  ;;  %v11370_v5 = vpack.c.bf16 %v8325_v60, %v8324_v59  ;;  %v8406_v59 = vld [vmem:[%s15474_s3 + $0xea8] sm:$0xff] }
 0x1c2   :  { %v8979_v14 = vadd.f32 %v8978_v10, %v8977_v7  ;;  %v8326_v7 = vld [vmem:[%s15474_s3 + $0xc58] sm:$0xff] }
 0x1c4   :  { %v13063_v17 = vadd.f32 %v8979_v14, %v413_v1  ;;  %11324 = vmatpush3.bf16.msra.mxu1 %v11323_v8  ;;  %v8327_v8 = vld [vmem:[%s15474_s3 + $0xc60] sm:$0xff] }
 0x1c5   :  { %11326 = vmatprep.subr.bf16.mxu1 %v11325_v11  ;;  %v8344_v11 = vld [vmem:[%s15474_s3 + $0xce8] sm:$0xff]  ;;  %v11374_v14 = vpack.c.bf16 %v8327_v8, %v8326_v7  ;;  %v8433_v8 = vld [vmem:[%s15474_s3 + $0xf50] sm:$0xff] }
 0x1c6   :  { %v11376_v16 = vpack.c.bf16 %v8345_v12, %v8344_v11  ;;  %v8432_v7 = vld [vmem:[%s15474_s3 + $0xf48] sm:$0xff]  ;;  %v8417_v11 = vld [vmem:[%s15474_s3 + $0xed0] sm:$0xff]  ;;  %v8434_v12 = vld [vmem:[%s15474_s3 + $0xf58] sm:$0xff] }
 0x1c8   :  { %11328 = vmatpush3.bf16.msra.mxu1 %v11327_v18  ;;  %v8328_v18 = vld [vmem:[%s15474_s3 + $0xc68] sm:$0xff] }
 0x1c9   :  { %11330 = vmatprep.subr.bf16.mxu1 %v11329_v19  ;;  %v8329_v19 = vld [vmem:[%s15474_s3 + $0xc70] sm:$0xff] }
 0x1ca   :  { %v11378_v22 = vpack.c.bf16 %v8329_v19, %v8328_v18  ;;  %v8418_v19 = vld [vmem:[%s15474_s3 + $0xed8] sm:$0xff] }
 0x1cc   :  { %11332 = vmatpush3.bf16.msra.mxu1 %v11331_v24  ;;  %v8008_v24 = vld [vmem:[%s15474_s3 + $0x3b8] sm:$0xff] }
 0x1cd   :  { %11334 = vmatprep.subr.bf16.mxu1 %v11333_v25  ;;  %v11380_v25 = vpack.c.bf16 %v8347_v21, %v8346_v20  ;;  %v8419_v20 = vld [vmem:[%s15474_s3 + $0xee0] sm:$0xff]  ;;  %v8436_v21 = vld [vmem:[%s15474_s3 + $0xf68] sm:$0xff] }
 0x1d0   :  { %11336 = vmatpush3.bf16.msra.mxu1 %v11335_v30  ;;  %v11060_v30 = vpack.c.bf16 %v8008_v24, %v8007_v23  ;;  %v11456_v23 = vpack.c.bf16 %v8419_v20, %v8418_v19  ;;  %v8470_v19 = vld [vmem:[%s15474_s3 + $0x1048] sm:$0xff]  ;;  %v8487_v20 = vld [vmem:[%s15474_s3 + $0x10d0] sm:$0xff] }
 0x1d1   :  { %11338 = vmatprep.subr.bf16.mxu1 %v11337_v31 }
 0x1d4   :  { %11340 = vmatpush3.bf16.msra.mxu1 %v11339_v36  ;;  %v8333_v36 = vld [vmem:[%s15474_s3 + $0xc90] sm:$0xff] }
 0x1d5   :  { %11357 = vmatprep.subr.bf16.mxu1 %v11356_v37  ;;  %v11063_v37 = vpack.c.bf16 %v8010_v33, %v8009_v32  ;;  %v11386_v38 = vpack.c.bf16 %v8333_v36, %v8332_v35  ;;  %v8440_v32 = vld [vmem:[%s15474_s3 + $0xf88] sm:$0xff]  ;;  %v8441_v33 = vld [vmem:[%s15474_s3 + $0xf90] sm:$0xff] }
 0x1d6   :  { %v602_v46 = vpop.f32.mrb[4].mxu0  ;;  %v11466_v35 = vpack.c.bf16 %v8441_v33, %v8440_v32  ;;  %v8424_v36 = vld [vmem:[%s15474_s3 + $0xf08] sm:$0xff]  ;;  %v8491_v33 = vld [vmem:[%s15474_s3 + $0x10f0] sm:$0xff] }
 0x1d7   :  { %2522 = vmatmul.mubr.f32.vlgmr.msra.gmra.mrb[18].mxu1 %v12409_v2  ;;  %v10049_v49 = vpop.f32.mrb[5].mxu0  ;;  %v8474_v32 = vld [vmem:[%s15474_s3 + $0x1068] sm:$0xff] }
 0x1d8   :  { %11359 = vmatpush3.bf16.msra.mxu1 %v11358_v42  ;;  %2794 = vmatprep.mubr.f32.mxu1 %v12399_v63  ;;  %v8400_v42 = vld [vmem:[%s15474_s3 + $0xe78] sm:$0xff] }
 0x1d9   :  { %11361 = vmatprep.subr.bf16.mxu1 %v11360_v43  ;;  %v11066_v43 = vpack.c.bf16 %v8012_v40, %v8011_v39  ;;  %v11436_v44 = vpack.c.bf16 %v8400_v42, %v8399_v41  ;;  %v8443_v39 = vld [vmem:[%s15474_s3 + $0xfa0] sm:$0xff]  ;;  %v8426_v42 = vld [vmem:[%s15474_s3 + $0xf18] sm:$0xff] }
 0x1dc   :  { %11363 = vmatpush3.bf16.msra.mxu1 %v11362_v50  ;;  %v11439_v50 = vpack.c.bf16 %v8402_v48, %v8401_v47 }
 0x1dd   :  { %11365 = vmatprep.subr.bf16.mxu1 %v11364_v51  ;;  %v8015_v51 = vld [vmem:[%s15474_s3 + $0x3f0] sm:$0xff] }
 0x1de   :  { %v9024_v61 = vpop.f32.mrb[4].mxu1  ;;  %v11072_v55 = vpack.c.bf16 %v8016_v52, %v8015_v51  ;;  %v8429_v51 = vld [vmem:[%s15474_s3 + $0xf30] sm:$0xff] }
 0x1df   :  { %v9025_v1 = vpop.f32.mrb[5].mxu1 }
 0x1e0   :  { %v9026_v3 = vadd.f32 %v9025_v1, %v9024_v61  ;;  %11367 = vmatpush3.bf16.msra.mxu1 %v11366_v56  ;;  %v11442_v56 = vpack.c.bf16 %v8404_v54, %v8403_v53  ;;  %v8446_v53 = vld [vmem:[%s15474_s3 + $0xfb8] sm:$0xff]  ;;  %v8447_v54 = vld [vmem:[%s15474_s3 + $0xfc0] sm:$0xff] }
 0x1e1   :  { %11369 = vmatprep.subr.bf16.mxu1 %v11368_v57  ;;  %v8405_v57 = vld [vmem:[%s15474_s3 + $0xea0] sm:$0xff] }
 0x1e2   :  { %v603_v10 = vadd.f32 %v9026_v3, %v602_v46  ;;  %v8014_v46 = vld [vmem:[%s15474_s3 + $0x3e8] sm:$0xff]  ;;  %v11445_v1 = vpack.c.bf16 %v8406_v59, %v8405_v57  ;;  %v8407_v3 = vld [vmem:[%s15474_s3 + $0xeb0] sm:$0xff]  ;;  %v8430_v57 = vld [vmem:[%s15474_s3 + $0xf38] sm:$0xff] }
 0x1e3   :  { %v11069_v49 = vpack.c.bf16 %v8014_v46, %v8013_v45  ;;  %v8445_v45 = vld [vmem:[%s15474_s3 + $0xfb0] sm:$0xff]  ;;  %v8431_v59 = vld [vmem:[%s15474_s3 + $0xf40] sm:$0xff] }
 0x1e4   :  { %10050 = vmatprep.subr.mxu0 %v603_v10  ;;  %11371 = vmatpush3.bf16.msra.mxu1 %v11370_v5  ;;  %v8408_v5 = vld [vmem:[%s15474_s3 + $0xeb8] sm:$0xff] }
 0x1e5   :  { %10051 = vmatpush3.msra.mxu0 %v603_v10  ;;  %11373 = vmatprep.subr.bf16.mxu1 %v11372_v6  ;;  %v11448_v6 = vpack.c.bf16 %v8408_v5, %v8407_v3  ;;  %v8416_v10 = vld [vmem:[%s15474_s3 + $0xec8] sm:$0xff]  ;;  %v8465_v3 = vld [vmem:[%s15474_s3 + $0x1020] sm:$0xff] }
 0x1e6   :  { %10053 = vmatmul.mubr.msk.f32.vlgmr.msra.gmra.mrb[6].mxu0 %vm609_vm7, %v7970_v13  ;;  %10055 = vmatprep.subr.mxu0 %v13063_v17  ;;  %v8435_v13 = vld [vmem:[%s15474_s3 + $0xf60] sm:$0xff]  ;;  %v8466_v5 = vld [vmem:[%s15474_s3 + $0x1028] sm:$0xff] }
 0x1e7   :  { %10056 = vmatpush3.msra.mxu0 %v13063_v17  ;;  %10057 = vmatprep.mubr.msk.f32.mxu0 %vm609_vm7, %v417_v15  ;;  %v8330_v17 = vld [vmem:[%s15474_s3 + $0xc78] sm:$0xff]  ;;  %v11450_v15 = vpack.c.bf16 %v8433_v8, %v8432_v7  ;;  %v11454_v18 = vpack.c.bf16 %v8435_v13, %v8434_v12  ;;  %v11499_v8 = vpack.c.bf16 %v8466_v5, %v8465_v3  ;;  %v8485_v13 = vld [vmem:[%s15474_s3 + $0x10c0] sm:$0xff]  ;;  %v8517_v3 = vld [vmem:[%s15474_s3 + $0x1190] sm:$0xff] }
 0x1e8   :  { %11375 = vmatpush3.bf16.msra.mxu1 %v11374_v14  ;;  %11059 = vmatprep.subr.bf16.mxu0 %v12078_v4  ;;  %v11382_v31 = vpack.c.bf16 %v8331_v26, %v8330_v17  ;;  %v8409_v14 = vld [vmem:[%s15474_s3 + $0xec0] sm:$0x3]  ;;  %v8421_v17 = vld [vmem:[%s15474_s3 + $0xef0] sm:$0xff]  ;;  %v8438_v26 = vld [vmem:[%s15474_s3 + $0xf78] sm:$0xff] }
 0x1e9   :  { %11377 = vmatprep.subr.bf16.mxu1 %v11376_v16  ;;  %v11452_v16 = vpack.c.bf16 %v8417_v11, %v8416_v10  ;;  %v8484_v7 = vld [vmem:[%s15474_s3 + $0x10b8] sm:$0xff]  ;;  %v8467_v11 = vld [vmem:[%s15474_s3 + $0x1030] sm:$0xff] }
 0x1ea   :  { %v8468_v12 = vld [vmem:[%s15474_s3 + $0x1038] sm:$0xff] }
 0x1eb   :  { %v8534_v5 = vld [vmem:[%s15474_s3 + $0x1218] sm:$0xff] }
 0x1ec   :  { %11379 = vmatpush3.bf16.msra.mxu1 %v11378_v22  ;;  %v8437_v22 = vld [vmem:[%s15474_s3 + $0xf70] sm:$0xff] }
 0x1ed   :  { %11381 = vmatprep.subr.bf16.mxu1 %v11380_v25  ;;  %v11458_v24 = vpack.c.bf16 %v8437_v22, %v8436_v21  ;;  %v8420_v25 = vld [vmem:[%s15474_s3 + $0xee8] sm:$0xff]  ;;  %v8488_v21 = vld [vmem:[%s15474_s3 + $0x10d8] sm:$0xff] }
 0x1ee   :  { %10058 = vmatmul.mubr.msk.f32.vlgmr.msra.gmra.mrb[6].mxu0 %vm609_vm7, %v418_v29  ;;  %v11460_v28 = vpack.c.bf16 %v8421_v17, %v8420_v25  ;;  %v11462_v29 = vpack.c.bf16 %v8439_v27, %v8438_v26  ;;  %v8472_v25 = vld [vmem:[%s15474_s3 + $0x1058] sm:$0xff]  ;;  %v8489_v26 = vld [vmem:[%s15474_s3 + $0x10e0] sm:$0xff]  ;;  %v8490_v27 = vld [vmem:[%s15474_s3 + $0x10e8] sm:$0xff] }
 0x1ef   :  { %11061 = vmatpush3.bf16.msra.mxu0 %v11060_v30  ;;  %10082 = vmatprep.mubr.msk.f32.mxu0 %vm12079_vm0, %v12080_v9  ;;  %v8422_v30 = vld [vmem:[%s15474_s3 + $0xef8] sm:$0xff] }
 0x1f0   :  { %11383 = vmatpush3.bf16.msra.mxu1 %v11382_v31  ;;  %11062 = vmatprep.subr.bf16.mxu0 %v12078_v4  ;;  %v8423_v31 = vld [vmem:[%s15474_s3 + $0xf00] sm:$0xff] }
 0x1f1   :  { %11385 = vmatprep.subr.bf16.mxu1 %v11384_v34  ;;  %v11464_v34 = vpack.c.bf16 %v8423_v31, %v8422_v30  ;;  %v11513_v30 = vpack.c.bf16 %v8490_v27, %v8489_v26  ;;  %v8473_v31 = vld [vmem:[%s15474_s3 + $0x1060] sm:$0xff]  ;;  %v8522_v26 = vld [vmem:[%s15474_s3 + $0x11b8] sm:$0xff] }
 0x1f2   :  { %v8523_v27 = vld [vmem:[%s15474_s3 + $0x11c0] sm:$0xff] }
 0x1f3   :  { %11064 = vmatpush3.bf16.msra.mxu0 %v11063_v37  ;;  %v8425_v37 = vld [vmem:[%s15474_s3 + $0xf10] sm:$0xff] }
 0x1f4   :  { %11387 = vmatpush3.bf16.msra.mxu1 %v11386_v38  ;;  %11065 = vmatprep.subr.bf16.mxu0 %v12078_v4  ;;  %v8442_v38 = vld [vmem:[%s15474_s3 + $0xf98] sm:$0xff]  ;;  %v11468_v40 = vpack.c.bf16 %v8425_v37, %v8424_v36  ;;  %v8475_v37 = vld [vmem:[%s15474_s3 + $0x1070] sm:$0xff] }
 0x1f5   :  { %11435 = vmatprep.subr.bf16.mxu1 %v12078_v4  ;;  %v11470_v41 = vpack.c.bf16 %v8443_v39, %v8442_v38  ;;  %v8476_v38 = vld [vmem:[%s15474_s3 + $0x1078] sm:$0xff]  ;;  %v8493_v39 = vld [vmem:[%s15474_s3 + $0x1100] sm:$0xff] }
 0x1f7   :  { %11067 = vmatpush3.bf16.msra.mxu0 %v11066_v43  ;;  %2795 = vmatmul.mubr.f32.vlgmr.msra.gmra.mrb[20].mxu1 %v12409_v2  ;;  %v8427_v43 = vld [vmem:[%s15474_s3 + $0xf20] sm:$0xff] }
 0x1f8   :  { %11437 = vmatpush3.bf16.msra.mxu1 %v11436_v44  ;;  %11068 = vmatprep.subr.bf16.mxu0 %v12078_v4  ;;  %v8444_v44 = vld [vmem:[%s15474_s3 + $0xfa8] sm:$0xff]  ;;  %v11472_v47 = vpack.c.bf16 %v8427_v43, %v8426_v42  ;;  %v8477_v43 = vld [vmem:[%s15474_s3 + $0x1080] sm:$0xff] }
 0x1f9   :  { %11438 = vmatprep.subr.bf16.mxu1 %v12078_v4  ;;  %10322 = vmatprep.mubr.msk.f32.mxu1 %vm12079_vm0, %v12080_v9 }
 0x1fb   :  { %11070 = vmatpush3.bf16.msra.mxu0 %v11069_v49  ;;  %v11474_v49 = vpack.c.bf16 %v8445_v45, %v8444_v44  ;;  %v8478_v44 = vld [vmem:[%s15474_s3 + $0x1088] sm:$0xff]  ;;  %v8495_v45 = vld [vmem:[%s15474_s3 + $0x1110] sm:$0xff] }
 0x1fc   :  { %11440 = vmatpush3.bf16.msra.mxu1 %v11439_v50  ;;  %11071 = vmatprep.subr.bf16.mxu0 %v12078_v4  ;;  %v8428_v50 = vld [vmem:[%s15474_s3 + $0xf28] sm:$0xff] }
 0x1fd   :  { %11441 = vmatprep.subr.bf16.mxu1 %v12078_v4 }
 0x1fe   :  { %v9077_v60 = vpop.f32.mrb[6].mxu1 }
 0x1ff   :  { %11073 = vmatpush3.bf16.msra.mxu0 %v11072_v55  ;;  %v9078_v61 = vpop.f32.mrb[7].mxu1  ;;  %v11476_v55 = vpack.c.bf16 %v8429_v51, %v8428_v50  ;;  %v8480_v50 = vld [vmem:[%s15474_s3 + $0x1098] sm:$0xff] }
 0x200   :  { %v13274_v62 = vadd.f32 %v9078_v61, %v9077_v60  ;;  %11443 = vmatpush3.bf16.msra.mxu1 %v11442_v56  ;;  %10080 = vmatprep.subr.mxu0 %v12080_v9  ;;  %v11478_v56 = vpack.c.bf16 %v8447_v54, %v8446_v53  ;;  %v8481_v60 = vld [vmem:[%s15474_s3 + $0x10a0] sm:$0xff]  ;;  %v8482_v61 = vld [vmem:[%s15474_s3 + $0x10a8] sm:$0xff]  ;;  %v8530_v51 = vld [vmem:[%s15474_s3 + $0x11f8] sm:$0xff] }
 0x201   :  { %11444 = vmatprep.subr.bf16.mxu1 %v12078_v4  ;;  %v8531_v53 = vld [vmem:[%s15474_s3 + $0x1200] sm:$0xff] }
 0x203   :  { %10081 = vmatpush3.msk.msra.mxu0 %vm273_vm2, %v8017_v0  ;;  %v11480_v0 = vpack.c.bf16 %v8431_v59, %v8430_v57  ;;  %v8515_v57 = vld [vmem:[%s15474_s3 + $0x1180] sm:$0xff]  ;;  %v8532_v59 = vld [vmem:[%s15474_s3 + $0x1208] sm:$0xff] }
 0x204   :  { %10083 = vmatmul.mubr.msk.f32.vlgmr.msra.gmra.mrb[8].mxu0 %vm269_vm3, %v12391_v58  ;;  %11446 = vmatpush3.bf16.msra.mxu1 %v11445_v1  ;;  %v11497_v1 = vpack.c.bf16 %v8482_v61, %v8481_v60  ;;  %v8533_v60 = vld [vmem:[%s15474_s3 + $0x1210] sm:$0xff] }
 0x205   :  { %11447 = vmatprep.subr.bf16.mxu1 %v12078_v4 }
 0x208   :  { %11449 = vmatpush3.bf16.msra.mxu1 %v11448_v6  ;;  %v8483_v6 = vld [vmem:[%s15474_s3 + $0x10b0] sm:$0xff] }
 0x209   :  { %10320 = vmatprep.subr.mxu1 %v12080_v9  ;;  %v11501_v10 = vpack.c.bf16 %v8484_v7, %v8483_v6  ;;  %v8535_v6 = vld [vmem:[%s15474_s3 + $0x1220] sm:$0xff] }
 0x20c   :  { %10321 = vmatpush3.msk.msra.mxu1 %vm273_vm2, %v8409_v14  ;;  %v8486_v14 = vld [vmem:[%s15474_s3 + $0x10c8] sm:$0xff] }
 0x20d   :  { %10323 = vmatmul.mubr.msk.f32.vlgmr.msra.gmra.mrb[22].mxu1 %vm269_vm3, %v12391_v58  ;;  %11451 = vmatprep.subr.bf16.mxu1 %v11450_v15  ;;  %v11503_v15 = vpack.c.bf16 %v8468_v12, %v8467_v11  ;;  %v8519_v11 = vld [vmem:[%s15474_s3 + $0x11a0] sm:$0xff]  ;;  %v8536_v12 = vld [vmem:[%s15474_s3 + $0x1228] sm:$0xff] }
 0x20e   :  { %11453 = vmatpush3.bf16.msra.mxu1 %v11452_v16  ;;  %3340 = vmatprep.mubr.f32.mxu1 %v12399_v63  ;;  %v11505_v16 = vpack.c.bf16 %v8486_v14, %v8485_v13  ;;  %v8537_v13 = vld [vmem:[%s15474_s3 + $0x1230] sm:$0xff] }
 0x20f   :  { %11455 = vmatprep.subr.bf16.mxu1 %v11454_v18  ;;  %v8469_v18 = vld [vmem:[%s15474_s3 + $0x1040] sm:$0xff] }
 0x210   :  { %v11507_v22 = vpack.c.bf16 %v8470_v19, %v8469_v18  ;;  %v8521_v18 = vld [vmem:[%s15474_s3 + $0x11b0] sm:$0xff] }
 0x212   :  { %11457 = vmatpush3.bf16.msra.mxu1 %v11456_v23  ;;  %v11509_v23 = vpack.c.bf16 %v8488_v21, %v8487_v20  ;;  %v8538_v20 = vld [vmem:[%s15474_s3 + $0x1238] sm:$0xff]  ;;  %v8539_v21 = vld [vmem:[%s15474_s3 + $0x1240] sm:$0xff] }
 0x213   :  { %11459 = vmatprep.subr.bf16.mxu1 %v11458_v24  ;;  %v8471_v24 = vld [vmem:[%s15474_s3 + $0x1050] sm:$0xff] }
 0x216   :  { %11461 = vmatpush3.bf16.msra.mxu1 %v11460_v28 }
 0x217   :  { %11463 = vmatprep.subr.bf16.mxu1 %v11462_v29  ;;  %v11511_v29 = vpack.c.bf16 %v8472_v25, %v8471_v24  ;;  %v11560_v25 = vpack.c.bf16 %v8539_v21, %v8538_v20  ;;  %v8614_v20 = vld [vmem:[%s15474_s3 + $0x1438] sm:$0xff]  ;;  %v8615_v21 = vld [vmem:[%s15474_s3 + $0x1440] sm:$0xff] }
 0x21a   :  { %11465 = vmatpush3.bf16.msra.mxu1 %v11464_v34  ;;  %v8492_v34 = vld [vmem:[%s15474_s3 + $0x10f8] sm:$0xff] }
 0x21b   :  { %11467 = vmatprep.subr.bf16.mxu1 %v11466_v35  ;;  %v11515_v35 = vpack.c.bf16 %v8474_v32, %v8473_v31  ;;  %v11517_v36 = vpack.c.bf16 %v8492_v34, %v8491_v33  ;;  %v8524_v32 = vld [vmem:[%s15474_s3 + $0x11c8] sm:$0xff]  ;;  %v8525_v33 = vld [vmem:[%s15474_s3 + $0x11d0] sm:$0xff]  ;;  %v8020_v34 = vld [vmem:[%s15475_s4 + $0x20] sm:$0xff] }
 0x21c   :  { %10087 = vmatprep.mubr.msk.f32.mxu0 %vm609_vm7, %v8020_v34  ;;  %v8619_v34 = vld [vmem:[%s15474_s3 + $0x1460] sm:$0xff] }
 0x21e   :  { %v9127_v46 = vpop.f32.mrb[8].mxu1  ;;  %11469 = vmatpush3.bf16.msra.mxu1 %v11468_v40  ;;  %v8494_v40 = vld [vmem:[%s15474_s3 + $0x1108] sm:$0xff] }
 0x21f   :  { %v9128_v48 = vpop.f32.mrb[9].mxu1  ;;  %11471 = vmatprep.subr.bf16.mxu1 %v11470_v41  ;;  %v11519_v41 = vpack.c.bf16 %v8476_v38, %v8475_v37  ;;  %v11521_v42 = vpack.c.bf16 %v8494_v40, %v8493_v39  ;;  %v11566_v37 = vpack.c.bf16 %v8525_v33, %v8524_v32  ;;  %v8526_v39 = vld [vmem:[%s15474_s3 + $0x11d8] sm:$0xff]  ;;  %v8527_v40 = vld [vmem:[%s15474_s3 + $0x11e0] sm:$0xff] }
 0x220   :  { %v13383_v52 = vadd.f32 %v9128_v48, %v9127_v46  ;;  %v8496_v46 = vld [vmem:[%s15474_s3 + $0x1118] sm:$0xff] }
 0x221   :  { %v11525_v48 = vpack.c.bf16 %v8496_v46, %v8495_v45  ;;  %v8528_v45 = vld [vmem:[%s15474_s3 + $0x11e8] sm:$0xff]  ;;  %v8529_v46 = vld [vmem:[%s15474_s3 + $0x11f0] sm:$0xff]  ;;  %v8618_v33 = vld [vmem:[%s15474_s3 + $0x1458] sm:$0xff] }
 0x222   :  { %11473 = vmatpush3.bf16.msra.mxu1 %v11472_v47  ;;  %v11523_v47 = vpack.c.bf16 %v8478_v44, %v8477_v43  ;;  %v11570_v43 = vpack.c.bf16 %v8527_v40, %v8526_v39  ;;  %v11652_v39 = vpack.c.bf16 %v8619_v34, %v8618_v33  ;;  %v8066_v34 = vld [vmem:[%s15474_s3 + $0x558] sm:$0x3] }
 0x223   :  { %11475 = vmatprep.subr.bf16.mxu1 %v11474_v49  ;;  %v8479_v49 = vld [vmem:[%s15474_s3 + $0x1090] sm:$0xff] }
 0x224   :  { %v11527_v54 = vpack.c.bf16 %v8480_v50, %v8479_v49  ;;  %v8596_v49 = vld [vmem:[%s15474_s3 + $0x13d8] sm:$0xff] }
 0x226   :  { %11477 = vmatpush3.bf16.msra.mxu1 %v11476_v55  ;;  %v11544_v55 = vpack.c.bf16 %v8531_v53, %v8530_v51  ;;  %v8597_v51 = vld [vmem:[%s15474_s3 + $0x13e0] sm:$0xff]  ;;  %v8598_v53 = vld [vmem:[%s15474_s3 + $0x13e8] sm:$0xff] }
 0x227   :  { %11479 = vmatprep.subr.bf16.mxu1 %v11478_v56  ;;  %v8514_v56 = vld [vmem:[%s15474_s3 + $0x1178] sm:$0xff] }
 0x228   :  { %v11546_v61 = vpack.c.bf16 %v8515_v57, %v8514_v56  ;;  %v8600_v56 = vld [vmem:[%s15474_s3 + $0x13f8] sm:$0xff] }
 0x22a   :  { %11481 = vmatpush3.bf16.msra.mxu1 %v11480_v0  ;;  %v11548_v0 = vpack.c.bf16 %v8533_v60, %v8532_v59  ;;  %v8601_v59 = vld [vmem:[%s15474_s3 + $0x1400] sm:$0xff]  ;;  %v8602_v60 = vld [vmem:[%s15474_s3 + $0x1408] sm:$0xff] }
 0x22b   :  { %11498 = vmatprep.subr.bf16.mxu1 %v11497_v1  ;;  %v8516_v1 = vld [vmem:[%s15474_s3 + $0x1188] sm:$0xff] }
 0x22c   :  { %v11550_v7 = vpack.c.bf16 %v8517_v3, %v8516_v1  ;;  %v11633_v3 = vpack.c.bf16 %v8602_v60, %v8601_v59 }
 0x22d   :  { %3341 = vmatmul.mubr.f32.vlgmr.msra.gmra.mrb[24].mxu1 %v12409_v2 }
 0x22e   :  { %11500 = vmatpush3.bf16.msra.mxu1 %v11499_v8  ;;  %3613 = vmatprep.mubr.f32.mxu1 %v12399_v63  ;;  %v11552_v8 = vpack.c.bf16 %v8535_v6, %v8534_v5  ;;  %v8603_v5 = vld [vmem:[%s15474_s3 + $0x1410] sm:$0xff]  ;;  %v8604_v6 = vld [vmem:[%s15474_s3 + $0x1418] sm:$0xff] }
 0x22f   :  { %11502 = vmatprep.subr.bf16.mxu1 %v11501_v10  ;;  %v8518_v10 = vld [vmem:[%s15474_s3 + $0x1198] sm:$0xff] }
 0x230   :  { %v11554_v14 = vpack.c.bf16 %v8519_v11, %v8518_v10  ;;  %v8629_v10 = vld [vmem:[%s15474_s3 + $0x14b0] sm:$0xff]  ;;  %v8612_v11 = vld [vmem:[%s15474_s3 + $0x1428] sm:$0xff] }
 0x232   :  { %11504 = vmatpush3.bf16.msra.mxu1 %v11503_v15  ;;  %v11556_v15 = vpack.c.bf16 %v8537_v13, %v8536_v12  ;;  %v8613_v12 = vld [vmem:[%s15474_s3 + $0x1430] sm:$0xff]  ;;  %v8630_v13 = vld [vmem:[%s15474_s3 + $0x14b8] sm:$0xff] }
 0x233   :  { %11506 = vmatprep.subr.bf16.mxu1 %v11505_v16  ;;  %v8520_v16 = vld [vmem:[%s15474_s3 + $0x11a8] sm:$0xff] }
 0x234   :  { %v13447_v17 = vpop.f32.mrb[10].mxu1  ;;  %v11558_v24 = vpack.c.bf16 %v8521_v18, %v8520_v16  ;;  %v11640_v18 = vpack.c.bf16 %v8613_v12, %v8612_v11  ;;  %v8056_v12 = vld [vmem:[%s15474_s3 + $0x508] sm:$0xff] }
 0x235   :  { %v10144_v28 = vpop.f32.mrb[11].mxu1 }
 0x236   :  { %11508 = vmatpush3.bf16.msra.mxu1 %v11507_v22  ;;  %v8540_v28 = vld [vmem:[%s15474_s3 + $0x1248] sm:$0xff] }
 0x237   :  { %11510 = vmatprep.subr.bf16.mxu1 %v11509_v23 }
 0x23a   :  { %11512 = vmatpush3.bf16.msra.mxu1 %v11511_v29  ;;  %v8541_v29 = vld [vmem:[%s15474_s3 + $0x1250] sm:$0xff] }
 0x23b   :  { %11514 = vmatprep.subr.bf16.mxu1 %v11513_v30  ;;  %v11562_v30 = vpack.c.bf16 %v8523_v27, %v8522_v26  ;;  %v11564_v31 = vpack.c.bf16 %v8541_v29, %v8540_v28  ;;  %v8616_v27 = vld [vmem:[%s15474_s3 + $0x1448] sm:$0xff]  ;;  %v8617_v28 = vld [vmem:[%s15474_s3 + $0x1450] sm:$0xff]  ;;  %v8634_v29 = vld [vmem:[%s15474_s3 + $0x14d8] sm:$0xff] }
 0x23e   :  { %11516 = vmatpush3.bf16.msra.mxu1 %v11515_v35  ;;  %v8542_v35 = vld [vmem:[%s15474_s3 + $0x1258] sm:$0xff] }
 0x23f   :  { %11518 = vmatprep.subr.bf16.mxu1 %v11517_v36  ;;  %v8543_v36 = vld [vmem:[%s15474_s3 + $0x1260] sm:$0xff] }
 0x240   :  { %v11568_v38 = vpack.c.bf16 %v8543_v36, %v8542_v35  ;;  %v8636_v36 = vld [vmem:[%s15474_s3 + $0x14e8] sm:$0xff] }
 0x242   :  { %11520 = vmatpush3.bf16.msra.mxu1 %v11519_v41  ;;  %v8544_v41 = vld [vmem:[%s15474_s3 + $0x1268] sm:$0xff] }
 0x243   :  { %11522 = vmatprep.subr.bf16.mxu1 %v11521_v42  ;;  %v8545_v42 = vld [vmem:[%s15474_s3 + $0x1270] sm:$0xff] }
 0x244   :  { %v11572_v44 = vpack.c.bf16 %v8545_v42, %v8544_v41  ;;  %v8620_v41 = vld [vmem:[%s15474_s3 + $0x1468] sm:$0xff]  ;;  %v8621_v42 = vld [vmem:[%s15474_s3 + $0x1470] sm:$0xff] }
 0x246   :  { %11524 = vmatpush3.bf16.msra.mxu1 %v11523_v47  ;;  %v11574_v47 = vpack.c.bf16 %v8529_v46, %v8528_v45  ;;  %v11656_v45 = vpack.c.bf16 %v8621_v42, %v8620_v41 }
 0x247   :  { %11526 = vmatprep.subr.bf16.mxu1 %v11525_v48  ;;  %v8595_v48 = vld [vmem:[%s15474_s3 + $0x13d0] sm:$0xff] }
 0x248   :  { %v11624_v50 = vpack.c.bf16 %v8596_v49, %v8595_v48  ;;  %v8623_v48 = vld [vmem:[%s15474_s3 + $0x1480] sm:$0xff]  ;;  %v8640_v49 = vld [vmem:[%s15474_s3 + $0x1508] sm:$0xff] }
 0x24a   :  { %11528 = vmatpush3.bf16.msra.mxu1 %v11527_v54  ;;  %v11627_v54 = vpack.c.bf16 %v8598_v53, %v8597_v51 }
 0x24b   :  { %11545 = vmatprep.subr.bf16.mxu1 %v11544_v55  ;;  %v8599_v55 = vld [vmem:[%s15474_s3 + $0x13f0] sm:$0xff] }
 0x24c   :  { %v11630_v57 = vpack.c.bf16 %v8600_v56, %v8599_v55  ;;  %v8625_v55 = vld [vmem:[%s15474_s3 + $0x1490] sm:$0xff]  ;;  %v8642_v56 = vld [vmem:[%s15474_s3 + $0x1518] sm:$0xff] }
 0x24d   :  { %3614 = vmatmul.mubr.f32.vlgmr.msra.gmra.mrb[26].mxu1 %v12409_v2 }
 0x24e   :  { %11547 = vmatpush3.bf16.msra.mxu1 %v11546_v61  ;;  %3886 = vmatprep.mubr.f32.mxu1 %v12399_v63 }
 0x24f   :  { %11549 = vmatprep.subr.bf16.mxu1 %v11548_v0 }
 0x252   :  { %11551 = vmatpush3.bf16.msra.mxu1 %v11550_v7  ;;  %v11636_v7 = vpack.c.bf16 %v8604_v6, %v8603_v5 }
 0x253   :  { %11553 = vmatprep.subr.bf16.mxu1 %v11552_v8  ;;  %v8628_v8 = vld [vmem:[%s15474_s3 + $0x14a8] sm:$0xff] }
 0x254   :  { %v9227_v19 = vpop.f32.mrb[12].mxu1  ;;  %v11638_v16 = vpack.c.bf16 %v8629_v10, %v8628_v8 }
 0x255   :  { %v9228_v22 = vpop.f32.mrb[13].mxu1 }
 0x256   :  { %v13553_v23 = vadd.f32 %v9228_v22, %v9227_v19  ;;  %11555 = vmatpush3.bf16.msra.mxu1 %v11554_v14  ;;  %v8631_v14 = vld [vmem:[%s15474_s3 + $0x14c0] sm:$0xff]  ;;  %v8632_v22 = vld [vmem:[%s15474_s3 + $0x14c8] sm:$0xff] }
 0x257   :  { %11557 = vmatprep.subr.bf16.mxu1 %v11556_v15  ;;  %v8605_v15 = vld [vmem:[%s15474_s3 + $0x1420] sm:$0x3]  ;;  %v11642_v19 = vpack.c.bf16 %v8631_v14, %v8630_v13  ;;  %v8057_v13 = vld [vmem:[%s15474_s3 + $0x510] sm:$0xff] }
 0x25a   :  { %11559 = vmatpush3.bf16.msra.mxu1 %v11558_v24  ;;  %v8633_v24 = vld [vmem:[%s15474_s3 + $0x14d0] sm:$0xff] }
 0x25b   :  { %11561 = vmatprep.subr.bf16.mxu1 %v11560_v25  ;;  %v11644_v25 = vpack.c.bf16 %v8615_v21, %v8614_v20  ;;  %v11646_v26 = vpack.c.bf16 %v8633_v24, %v8632_v22  ;;  %v8058_v20 = vld [vmem:[%s15474_s3 + $0x518] sm:$0xff]  ;;  %v8059_v21 = vld [vmem:[%s15474_s3 + $0x520] sm:$0xff]  ;;  %v8060_v22 = vld [vmem:[%s15474_s3 + $0x528] sm:$0xff] }
 0x25c   :  { %v8061_v24 = vld [vmem:[%s15474_s3 + $0x530] sm:$0xff] }
 0x25e   :  { %11563 = vmatpush3.bf16.msra.mxu1 %v11562_v30  ;;  %v8635_v30 = vld [vmem:[%s15474_s3 + $0x14e0] sm:$0xff] }
 0x25f   :  { %11565 = vmatprep.subr.bf16.mxu1 %v11564_v31  ;;  %v11648_v31 = vpack.c.bf16 %v8617_v28, %v8616_v27  ;;  %v11650_v32 = vpack.c.bf16 %v8635_v30, %v8634_v29  ;;  %v11113_v27 = vpack.c.bf16 %v8061_v24, %v8060_v22  ;;  %v8062_v28 = vld [vmem:[%s15474_s3 + $0x538] sm:$0xff]  ;;  %v8063_v29 = vld [vmem:[%s15474_s3 + $0x540] sm:$0xff] }
 0x260   :  { %v11116_v30 = vpack.c.bf16 %v8063_v29, %v8062_v28  ;;  %v8080_v22 = vld [vmem:[%s15474_s3 + $0x598] sm:$0xff]  ;;  %v8097_v24 = vld [vmem:[%s15474_s3 + $0x620] sm:$0xff] }
 0x261   :  { %v8081_v29 = vld [vmem:[%s15474_s3 + $0x5a0] sm:$0xff] }
 0x262   :  { %11567 = vmatpush3.bf16.msra.mxu1 %v11566_v37  ;;  %v8637_v37 = vld [vmem:[%s15474_s3 + $0x14f0] sm:$0xff] }
 0x263   :  { %11569 = vmatprep.subr.bf16.mxu1 %v11568_v38  ;;  %v11654_v40 = vpack.c.bf16 %v8637_v37, %v8636_v36 }
 0x266   :  { %11571 = vmatpush3.bf16.msra.mxu1 %v11570_v43  ;;  %v8638_v43 = vld [vmem:[%s15474_s3 + $0x14f8] sm:$0xff] }
 0x267   :  { %11573 = vmatprep.subr.bf16.mxu1 %v11572_v44  ;;  %v8639_v44 = vld [vmem:[%s15474_s3 + $0x1500] sm:$0xff] }
 0x268   :  { %v11658_v46 = vpack.c.bf16 %v8639_v44, %v8638_v43 }
 0x26a   :  { %11575 = vmatpush3.bf16.msra.mxu1 %v11574_v47  ;;  %v8622_v47 = vld [vmem:[%s15474_s3 + $0x1478] sm:$0xff] }
 0x26b   :  { %11623 = vmatprep.subr.bf16.mxu1 %v12078_v4  ;;  %v11660_v51 = vpack.c.bf16 %v8623_v48, %v8622_v47 }
 0x26d   :  { %3887 = vmatmul.mubr.f32.vlgmr.msra.gmra.mrb[28].mxu1 %v12409_v2 }
 0x26e   :  { %11625 = vmatpush3.bf16.msra.mxu1 %v11624_v50  ;;  %10442 = vmatprep.mubr.msk.f32.mxu1 %vm12079_vm0, %v12080_v9  ;;  %v8641_v50 = vld [vmem:[%s15474_s3 + $0x1510] sm:$0xff] }
 0x26f   :  { %11626 = vmatprep.subr.bf16.mxu1 %v12078_v4  ;;  %v11662_v53 = vpack.c.bf16 %v8641_v50, %v8640_v49 }
 0x272   :  { %11628 = vmatpush3.bf16.msra.mxu1 %v11627_v54  ;;  %v8624_v54 = vld [vmem:[%s15474_s3 + $0x1488] sm:$0xff] }
 0x273   :  { %11629 = vmatprep.subr.bf16.mxu1 %v12078_v4  ;;  %v11664_v59 = vpack.c.bf16 %v8625_v55, %v8624_v54  ;;  %v8073_v54 = vld [vmem:[%s15474_s3 + $0x560] sm:$0xff]  ;;  %v8074_v55 = vld [vmem:[%s15474_s3 + $0x568] sm:$0xff] }
 0x274   :  { %v9277_v61 = vpop.f32.mrb[14].mxu1 }
 0x275   :  { %v9278_v0 = vpop.f32.mrb[15].mxu1 }
 0x276   :  { %v13631_v1 = vadd.f32 %v9278_v0, %v9277_v61  ;;  %11631 = vmatpush3.bf16.msra.mxu1 %v11630_v57  ;;  %v8643_v57 = vld [vmem:[%s15474_s3 + $0x1520] sm:$0xff]  ;;  %v8626_v61 = vld [vmem:[%s15474_s3 + $0x1498] sm:$0xff] }
 0x277   :  { %11632 = vmatprep.subr.bf16.mxu1 %v12078_v4  ;;  %v11666_v60 = vpack.c.bf16 %v8643_v57, %v8642_v56  ;;  %v8627_v0 = vld [vmem:[%s15474_s3 + $0x14a0] sm:$0xff]  ;;  %v8091_v57 = vld [vmem:[%s15474_s3 + $0x5f0] sm:$0xff] }
 0x27a   :  { %11634 = vmatpush3.bf16.msra.mxu1 %v11633_v3  ;;  %v11668_v3 = vpack.c.bf16 %v8627_v0, %v8626_v61 }
 0x27b   :  { %11635 = vmatprep.subr.bf16.mxu1 %v12078_v4 }
 0x27e   :  { %11637 = vmatpush3.bf16.msra.mxu1 %v11636_v7 }
 0x27f   :  { %10440 = vmatprep.subr.mxu1 %v12080_v9 }
 0x282   :  { %10441 = vmatpush3.msk.msra.mxu1 %vm273_vm2, %v8605_v15 }
 0x283   :  { %10443 = vmatmul.mubr.msk.f32.vlgmr.msra.gmra.mrb[30].mxu1 %vm269_vm3, %v12391_v58  ;;  %11639 = vmatprep.subr.bf16.mxu1 %v11638_v16 }
 0x284   :  { %11641 = vmatpush3.bf16.msra.mxu1 %v11640_v18  ;;  %4432 = vmatprep.mubr.f32.mxu1 %v12399_v63  ;;  %v8021_v18 = vld [vmem:[%s15475_s4 + $0x28] sm:$0xff] }
 0x285   :  { %11643 = vmatprep.subr.bf16.mxu1 %v11642_v19  ;;  %v11107_v19 = vpack.c.bf16 %v8057_v13, %v8056_v12  ;;  %v8094_v12 = vld [vmem:[%s15474_s3 + $0x608] sm:$0xff] }
 0x288   :  { %11645 = vmatpush3.bf16.msra.mxu1 %v11644_v25 }
 0x289   :  { %11647 = vmatprep.subr.bf16.mxu1 %v11646_v26 }
 0x28a   :  { %v13697_v35 = vpop.f32.mrb[16].mxu1 }
 0x28b   :  { %v10234_v38 = vpop.f32.mrb[17].mxu1 }
 0x28c   :  { %11649 = vmatpush3.bf16.msra.mxu1 %v11648_v31  ;;  %v8064_v31 = vld [vmem:[%s15474_s3 + $0x548] sm:$0xff] }
 0x28d   :  { %11651 = vmatprep.subr.bf16.mxu1 %v11650_v32  ;;  %v8065_v32 = vld [vmem:[%s15474_s3 + $0x550] sm:$0xff] }
 0x28e   :  { %v11119_v33 = vpack.c.bf16 %v8065_v32, %v8064_v31  ;;  %v8099_v31 = vld [vmem:[%s15474_s3 + $0x630] sm:$0xff]  ;;  %v8100_v32 = vld [vmem:[%s15474_s3 + $0x638] sm:$0xff] }
 0x290   :  { %11653 = vmatpush3.bf16.msra.mxu1 %v11652_v39 }
 0x291   :  { %11655 = vmatprep.subr.bf16.mxu1 %v11654_v40 }
 0x294   :  { %11657 = vmatpush3.bf16.msra.mxu1 %v11656_v45  ;;  %v8069_v45 = vld [vmem:[%s15475_s4 + $0x30] sm:$0xff] }
 0x295   :  { %11659 = vmatprep.subr.bf16.mxu1 %v11658_v46 }
 0x298   :  { %11661 = vmatpush3.bf16.msra.mxu1 %v11660_v51  ;;  %v8089_v51 = vld [vmem:[%s15474_s3 + $0x5e0] sm:$0xff] }
 0x299   :  { %11663 = vmatprep.subr.bf16.mxu1 %v11662_v53  ;;  %v8090_v53 = vld [vmem:[%s15474_s3 + $0x5e8] sm:$0xff] }
 0x29a   :  { %v11121_v0 = vpack.c.bf16 %v8090_v53, %v8089_v51 }
 0x29c   :  { %11665 = vmatpush3.bf16.msra.mxu1 %v11664_v59  ;;  %v8092_v59 = vld [vmem:[%s15474_s3 + $0x5f8] sm:$0xff] }
 0x29d   :  { %11667 = vmatprep.subr.bf16.mxu1 %v11666_v60 }
 0x2a0   :  { %11669 = vmatpush3.bf16.msra.mxu1 %v11668_v3  ;;  %v8070_v3 = vld [vmem:[%s15475_s4 + $0x38] sm:$0xff] }
 0x2a3   :  { %4433 = vmatmul.mubr.f32.vlgmr.msra.gmra.mrb[32].mxu1 %v12409_v2 }
 0x2aa   :  { %v9377_v5 = vpop.f32.mrb[18].mxu1 }
 0x2ab   :  { %v9378_v6 = vpop.f32.mrb[19].mxu1 }
 0x2ac   :  { %v13748_v7 = vadd.f32 %v9378_v6, %v9377_v5  ;;  %v11123_v5 = vpack.c.bf16 %v8074_v55, %v8073_v54  ;;  %v11125_v6 = vpack.c.bf16 %v8092_v59, %v8091_v57  ;;  %v8087_v54 = vld [vmem:[%s15474_s3 + $0x5d0] sm:$0xff]  ;;  %v8088_v55 = vld [vmem:[%s15474_s3 + $0x5d8] sm:$0xff]  ;;  %v8118_v57 = vld [vmem:[%s15475_s4 + $0x40] sm:$0xff] }
 0x2ca   :  { %v9427_v8 = vpop.f32.mrb[20].mxu1 }
 0x2cb   :  { %v9428_v10 = vpop.f32.mrb[21].mxu1 }
 0x2cc   :  { %v13750_v11 = vadd.f32 %v9428_v10, %v9427_v8  ;;  %v8075_v8 = vld [vmem:[%s15474_s3 + $0x570] sm:$0xff]  ;;  %v8076_v10 = vld [vmem:[%s15474_s3 + $0x578] sm:$0xff] }
 0x2cd   :  { %v11127_v13 = vpack.c.bf16 %v8076_v10, %v8075_v8  ;;  %v8156_v10 = vld [vmem:[%s15474_s3 + $0x7c8] sm:$0xff] }
 0x2d7   :  { %v955_v14 = vpop.f32.mrb[8].mxu0 }
 0x2d8   :  { %v956_v15 = vadd.f32 %v13274_v62, %v955_v14  ;;  %v10084_v16 = vpop.f32.mrb[9].mxu0  ;;  %v11110_v62 = vpack.c.bf16 %v8059_v21, %v8058_v20 }
 0x2d9   :  { %v8078_v16 = vld [vmem:[%s15474_s3 + $0x588] sm:$0xff] }
 0x2da   :  { %10085 = vmatprep.subr.mxu0 %v956_v15 }
 0x2db   :  { %10086 = vmatpush3.msra.mxu0 %v956_v15  ;;  %v8077_v15 = vld [vmem:[%s15474_s3 + $0x580] sm:$0xff] }
 0x2dc   :  { %11106 = vmatprep.subr.bf16.mxu0 %v12078_v4  ;;  %10088 = vmatmul.mubr.msk.f32.vlgmr.msra.gmra.mrb[6].mxu0 %vm609_vm7, %v8021_v18  ;;  %v8095_v18 = vld [vmem:[%s15474_s3 + $0x610] sm:$0xff]  ;;  %v11131_v20 = vpack.c.bf16 %v8078_v16, %v8077_v15  ;;  %v8160_v15 = vld [vmem:[%s15474_s3 + $0x7e8] sm:$0xff] }
 0x2dd   :  { %11108 = vmatpush3.bf16.msra.mxu0 %v11107_v19  ;;  %10112 = vmatprep.mubr.msk.f32.mxu0 %vm12079_vm0, %v12080_v9  ;;  %v8096_v19 = vld [vmem:[%s15474_s3 + $0x618] sm:$0xff]  ;;  %v8161_v16 = vld [vmem:[%s15474_s3 + $0x7f0] sm:$0xff] }
 0x2de   :  { %11109 = vmatprep.subr.bf16.mxu0 %v12078_v4  ;;  %v11133_v21 = vpack.c.bf16 %v8096_v19, %v8095_v18  ;;  %v11210_v18 = vpack.c.bf16 %v8161_v16, %v8160_v15  ;;  %v8162_v19 = vld [vmem:[%s15474_s3 + $0x7f8] sm:$0xff]  ;;  %v8243_v16 = vld [vmem:[%s15474_s3 + $0xa20] sm:$0xff] }
 0x2df   :  { %v8242_v15 = vld [vmem:[%s15474_s3 + $0xa18] sm:$0xff] }
 0x2e0   :  { %v13779_v25 = vpop.f32.mrb[22].mxu1 }
 0x2e1   :  { %11111 = vmatpush3.bf16.msra.mxu0 %v11110_v62  ;;  %v10324_v26 = vpop.f32.mrb[23].mxu1  ;;  %v8079_v62 = vld [vmem:[%s15474_s3 + $0x590] sm:$0xff] }
 0x2e2   :  { %11112 = vmatprep.subr.bf16.mxu0 %v12078_v4  ;;  %v8098_v26 = vld [vmem:[%s15474_s3 + $0x628] sm:$0xff] }
 0x2e3   :  { %v11137_v28 = vpack.c.bf16 %v8098_v26, %v8097_v24  ;;  %v8203_v24 = vld [vmem:[%s15474_s3 + $0x910] sm:$0xff]  ;;  %v8204_v26 = vld [vmem:[%s15474_s3 + $0x918] sm:$0xff] }
 0x2e5   :  { %11114 = vmatpush3.bf16.msra.mxu0 %v11113_v27  ;;  %v11135_v27 = vpack.c.bf16 %v8080_v22, %v8079_v62  ;;  %v8164_v62 = vld [vmem:[%s15474_s3 + $0x808] sm:$0x3]  ;;  %v8167_v22 = vld [vmem:[%s15475_s4 + $0x50] sm:$0xff] }
 0x2e6   :  { %11115 = vmatprep.subr.bf16.mxu0 %v12078_v4 }
 0x2e9   :  { %11117 = vmatpush3.bf16.msra.mxu0 %v11116_v30  ;;  %v8082_v30 = vld [vmem:[%s15474_s3 + $0x5a8] sm:$0xff] }
 0x2ea   :  { %11118 = vmatprep.subr.bf16.mxu0 %v12078_v4 }
 0x2ed   :  { %11120 = vmatpush3.bf16.msra.mxu0 %v11119_v33  ;;  %v11139_v33 = vpack.c.bf16 %v8082_v30, %v8081_v29  ;;  %v8168_v30 = vld [vmem:[%s15475_s4 + $0x58] sm:$0xff] }
 0x2ee   :  { %10110 = vmatprep.subr.mxu0 %v12080_v9 }
 0x2f1   :  { %10111 = vmatpush3.msk.msra.mxu0 %vm273_vm2, %v8066_v34  ;;  %v11141_v34 = vpack.c.bf16 %v8100_v32, %v8099_v31  ;;  %v11248_v31 = vpack.c.bf16 %v8204_v26, %v8203_v24  ;;  %v8205_v32 = vld [vmem:[%s15474_s3 + $0x920] sm:$0xff] }
 0x2f2   :  { %10113 = vmatmul.mubr.msk.f32.vlgmr.msra.gmra.mrb[10].mxu0 %vm269_vm3, %v12391_v58 }
 0x2f3   :  { %10117 = vmatprep.mubr.msk.f32.mxu0 %vm609_vm7, %v8069_v45  ;;  %v8085_v45 = vld [vmem:[%s15474_s3 + $0x5c0] sm:$0xff] }
 0x300   :  { %v9527_v36 = vpop.f32.mrb[24].mxu1 }
 0x301   :  { %v9528_v37 = vpop.f32.mrb[25].mxu1 }
 0x302   :  { %v13803_v38 = vadd.f32 %v9528_v37, %v9527_v36  ;;  %v8083_v36 = vld [vmem:[%s15474_s3 + $0x5b0] sm:$0xff]  ;;  %v8084_v37 = vld [vmem:[%s15474_s3 + $0x5b8] sm:$0xff] }
 0x320   :  { %v9577_v39 = vpop.f32.mrb[26].mxu1 }
 0x321   :  { %v9578_v40 = vpop.f32.mrb[27].mxu1 }
 0x322   :  { %v13805_v41 = vadd.f32 %v9578_v40, %v9577_v39  ;;  %v8101_v39 = vld [vmem:[%s15474_s3 + $0x640] sm:$0xff]  ;;  %v8102_v40 = vld [vmem:[%s15474_s3 + $0x648] sm:$0xff] }
 0x340   :  { %v9627_v42 = vpop.f32.mrb[28].mxu1 }
 0x341   :  { %v9628_v43 = vpop.f32.mrb[29].mxu1 }
 0x342   :  { %v13807_v44 = vadd.f32 %v9628_v43, %v9627_v42  ;;  %v11143_v42 = vpack.c.bf16 %v8084_v37, %v8083_v36  ;;  %v11145_v43 = vpack.c.bf16 %v8102_v40, %v8101_v39  ;;  %v8208_v36 = vld [vmem:[%s15474_s3 + $0x938] sm:$0xff]  ;;  %v8209_v39 = vld [vmem:[%s15474_s3 + $0x940] sm:$0xff]  ;;  %v8210_v40 = vld [vmem:[%s15474_s3 + $0x948] sm:$0xff] }
 0x356   :  { %v13813_v46 = vpop.f32.mrb[30].mxu1 }
 0x357   :  { %v10444_v47 = vpop.f32.mrb[31].mxu1 }
 0x358   :  { %v8086_v47 = vld [vmem:[%s15474_s3 + $0x5c8] sm:$0xff] }
 0x359   :  { %v11147_v51 = vpack.c.bf16 %v8086_v47, %v8085_v45  ;;  %v8212_v45 = vld [vmem:[%s15474_s3 + $0x958] sm:$0xff] }
 0x376   :  { %v9727_v48 = vpop.f32.mrb[32].mxu1 }
 0x377   :  { %v9728_v49 = vpop.f32.mrb[33].mxu1 }
 0x378   :  { %v13815_v50 = vadd.f32 %v9728_v49, %v9727_v48  ;;  %v8103_v48 = vld [vmem:[%s15474_s3 + $0x650] sm:$0xff]  ;;  %v8104_v49 = vld [vmem:[%s15474_s3 + $0x658] sm:$0xff] }
 0x379   :  { %v11149_v53 = vpack.c.bf16 %v8104_v49, %v8103_v48  ;;  %v8213_v48 = vld [vmem:[%s15474_s3 + $0x960] sm:$0x3] }
 0x37a   :  { %v8216_v49 = vld [vmem:[%s15475_s4 + $0x60] sm:$0xff] }
 0x3c5   :  { %v1228_v56 = vpop.f32.mrb[10].mxu0 }
 0x3c6   :  { %v1229_v60 = vadd.f32 %v13383_v52, %v1228_v56  ;;  %v10114_v61 = vpop.f32.mrb[11].mxu0  ;;  %v8093_v52 = vld [vmem:[%s15474_s3 + $0x600] sm:$0xff]  ;;  %v11151_v56 = vpack.c.bf16 %v8088_v55, %v8087_v54  ;;  %v8220_v54 = vld [vmem:[%s15474_s3 + $0x968] sm:$0xff]  ;;  %v8221_v55 = vld [vmem:[%s15474_s3 + $0x970] sm:$0xff] }
 0x3c7   :  { %v11129_v14 = vpack.c.bf16 %v8094_v12, %v8093_v52  ;;  %v8157_v52 = vld [vmem:[%s15474_s3 + $0x7d0] sm:$0xff]  ;;  %v8158_v12 = vld [vmem:[%s15474_s3 + $0x7d8] sm:$0xff] }
 0x3c8   :  { %10115 = vmatprep.subr.mxu0 %v1229_v60 }
 0x3c9   :  { %10116 = vmatpush3.msra.mxu0 %v1229_v60 }
 0x3ca   :  { %10118 = vmatmul.mubr.msk.f32.vlgmr.msra.gmra.mrb[6].mxu0 %vm609_vm7, %v8070_v3  ;;  %11122 = vmatprep.subr.bf16.mxu0 %v11121_v0  ;;  %v8154_v0 = vld [vmem:[%s15474_s3 + $0x7b8] sm:$0xff]  ;;  %v8155_v3 = vld [vmem:[%s15474_s3 + $0x7c0] sm:$0xff] }
 0x3cb   :  { %11124 = vmatpush3.bf16.msra.mxu0 %v11123_v5  ;;  %1429 = vmatprep.mubr.f32.mxu0 %v12399_v63  ;;  %v11201_v8 = vpack.c.bf16 %v8155_v3, %v8154_v0  ;;  %v8217_v3 = vld [vmem:[%s15475_s4 + $0x68] sm:$0xff] }
 0x3cc   :  { %11126 = vmatprep.subr.bf16.mxu0 %v11125_v6  ;;  %v8119_v6 = vld [vmem:[%s15475_s4 + $0x48] sm:$0xff] }
 0x3cf   :  { %11128 = vmatpush3.bf16.msra.mxu0 %v11127_v13  ;;  %v8159_v13 = vld [vmem:[%s15474_s3 + $0x7e0] sm:$0xff] }
 0x3d0   :  { %11130 = vmatprep.subr.bf16.mxu0 %v11129_v14  ;;  %v11207_v14 = vpack.c.bf16 %v8159_v13, %v8158_v12  ;;  %v8224_v13 = vld [vmem:[%s15474_s3 + $0x988] sm:$0xff] }
 0x3d3   :  { %11132 = vmatpush3.bf16.msra.mxu0 %v11131_v20  ;;  %v8163_v20 = vld [vmem:[%s15474_s3 + $0x800] sm:$0xff] }
 0x3d4   :  { %11134 = vmatprep.subr.bf16.mxu0 %v11133_v21  ;;  %v11213_v21 = vpack.c.bf16 %v8163_v20, %v8162_v19  ;;  %v11274_v19 = vpack.c.bf16 %v8243_v16, %v8242_v15  ;;  %v8226_v20 = vld [vmem:[%s15474_s3 + $0x998] sm:$0xff]  ;;  %v8311_v16 = vld [vmem:[%s15474_s3 + $0xc10] sm:$0x3] }
 0x3d7   :  { %11136 = vmatpush3.bf16.msra.mxu0 %v11135_v27 }
 0x3d8   :  { %11138 = vmatprep.subr.bf16.mxu0 %v11137_v28 }
 0x3db   :  { %11140 = vmatpush3.bf16.msra.mxu0 %v11139_v33  ;;  %v8206_v33 = vld [vmem:[%s15474_s3 + $0x928] sm:$0xff] }
 0x3dc   :  { %11142 = vmatprep.subr.bf16.mxu0 %v11141_v34  ;;  %v8207_v34 = vld [vmem:[%s15474_s3 + $0x930] sm:$0xff] }
 0x3dd   :  { %v11254_v37 = vpack.c.bf16 %v8208_v36, %v8207_v34  ;;  %v8248_v34 = vld [vmem:[%s15474_s3 + $0xa48] sm:$0xff]  ;;  %v8249_v36 = vld [vmem:[%s15474_s3 + $0xa50] sm:$0xff] }
 0x3df   :  { %11144 = vmatpush3.bf16.msra.mxu0 %v11143_v42  ;;  %v11257_v42 = vpack.c.bf16 %v8210_v40, %v8209_v39  ;;  %v11286_v39 = vpack.c.bf16 %v8249_v36, %v8248_v34  ;;  %v8232_v40 = vld [vmem:[%s15474_s3 + $0x9c8] sm:$0xff]  ;;  %v8358_v34 = vld [vmem:[%s15474_s3 + $0xd58] sm:$0xff]  ;;  %v8359_v36 = vld [vmem:[%s15474_s3 + $0xd60] sm:$0xff] }
 0x3e0   :  { %11146 = vmatprep.subr.bf16.mxu0 %v11145_v43  ;;  %v8211_v43 = vld [vmem:[%s15474_s3 + $0x950] sm:$0xff] }
 0x3e1   :  { %v11260_v47 = vpack.c.bf16 %v8212_v45, %v8211_v43  ;;  %v8250_v43 = vld [vmem:[%s15474_s3 + $0xa58] sm:$0xff]  ;;  %v8251_v45 = vld [vmem:[%s15474_s3 + $0xa60] sm:$0xff] }
 0x3e3   :  { %11148 = vmatpush3.bf16.msra.mxu0 %v11147_v51  ;;  %v8236_v51 = vld [vmem:[%s15474_s3 + $0x9e8] sm:$0xff] }
 0x3e4   :  { %11150 = vmatprep.subr.bf16.mxu0 %v11149_v53  ;;  %v8237_v53 = vld [vmem:[%s15474_s3 + $0x9f0] sm:$0xff] }
 0x3e5   :  { %v11262_v0 = vpack.c.bf16 %v8237_v53, %v8236_v51  ;;  %v8235_v51 = vld [vmem:[%s15474_s3 + $0x9e0] sm:$0xff] }
 0x3e7   :  { %11152 = vmatpush3.bf16.msra.mxu0 %v11151_v56 }
 0x3ea   :  { %1430 = vmatmul.mubr.f32.vlgmr.msra.gmra.mrb[12].mxu0 %v12409_v2 }
 0x3eb   :  { %10147 = vmatprep.mubr.msk.f32.mxu0 %vm609_vm7, %v8118_v57  ;;  %v8238_v57 = vld [vmem:[%s15474_s3 + $0x9f8] sm:$0xff] }
 0x4bd   :  { %v9177_v59 = vpop.f32.mrb[12].mxu0 }
 0x4be   :  { %v9178_v60 = vpop.f32.mrb[13].mxu0 }
 0x4bf   :  { %v9179_v61 = vadd.f32 %v9178_v60, %v9177_v59  ;;  %v8239_v59 = vld [vmem:[%s15474_s3 + $0xa00] sm:$0xff] }
 0x4c1   :  { %v1502_v5 = vadd.f32 %v9179_v61, %v13447_v17  ;;  %v11204_v17 = vpack.c.bf16 %v8157_v52, %v8156_v10  ;;  %v8223_v10 = vld [vmem:[%s15474_s3 + $0x980] sm:$0xff]  ;;  %v8241_v52 = vld [vmem:[%s15474_s3 + $0xa10] sm:$0xff] }
 0x4c3   :  { %10145 = vmatprep.subr.mxu0 %v1502_v5 }
 0x4c4   :  { %10146 = vmatpush3.msra.mxu0 %v1502_v5  ;;  %v11264_v5 = vpack.c.bf16 %v8221_v55, %v8220_v54  ;;  %v8265_v54 = vld [vmem:[%s15475_s4 + $0x70] sm:$0xff] }
 0x4c5   :  { %11200 = vmatprep.subr.bf16.mxu0 %v12078_v4  ;;  %10148 = vmatmul.mubr.msk.f32.vlgmr.msra.gmra.mrb[6].mxu0 %vm609_vm7, %v8119_v6  ;;  %v11266_v6 = vpack.c.bf16 %v8239_v59, %v8238_v57  ;;  %v8301_v59 = vld [vmem:[%s15474_s3 + $0xbc0] sm:$0xff] }
 0x4c6   :  { %11202 = vmatpush3.bf16.msra.mxu0 %v11201_v8  ;;  %10172 = vmatprep.mubr.msk.f32.mxu0 %vm12079_vm0, %v12080_v9  ;;  %v8222_v8 = vld [vmem:[%s15474_s3 + $0x978] sm:$0xff] }
 0x4c7   :  { %11203 = vmatprep.subr.bf16.mxu0 %v12078_v4 }
 0x4ca   :  { %11205 = vmatpush3.bf16.msra.mxu0 %v11204_v17  ;;  %v11268_v17 = vpack.c.bf16 %v8223_v10, %v8222_v8  ;;  %v8305_v8 = vld [vmem:[%s15474_s3 + $0xbe0] sm:$0xff]  ;;  %v8306_v10 = vld [vmem:[%s15474_s3 + $0xbe8] sm:$0xff] }
 0x4cb   :  { %11206 = vmatprep.subr.bf16.mxu0 %v12078_v4 }
 0x4ce   :  { %11208 = vmatpush3.bf16.msra.mxu0 %v11207_v14  ;;  %v8225_v14 = vld [vmem:[%s15474_s3 + $0x990] sm:$0xff] }
 0x4cf   :  { %11209 = vmatprep.subr.bf16.mxu0 %v12078_v4 }
 0x4d2   :  { %11211 = vmatpush3.bf16.msra.mxu0 %v11210_v18  ;;  %v11272_v18 = vpack.c.bf16 %v8225_v14, %v8224_v13  ;;  %v8309_v13 = vld [vmem:[%s15474_s3 + $0xc00] sm:$0xff]  ;;  %v8310_v14 = vld [vmem:[%s15474_s3 + $0xc08] sm:$0xff] }
 0x4d3   :  { %11212 = vmatprep.subr.bf16.mxu0 %v12078_v4  ;;  %v11354_v15 = vpack.c.bf16 %v8310_v14, %v8309_v13  ;;  %v8391_v13 = vld [vmem:[%s15474_s3 + $0xe30] sm:$0xff]  ;;  %v8392_v14 = vld [vmem:[%s15474_s3 + $0xe38] sm:$0xff] }
 0x4d6   :  { %11214 = vmatpush3.bf16.msra.mxu0 %v11213_v21  ;;  %v8227_v21 = vld [vmem:[%s15474_s3 + $0x9a0] sm:$0xff] }
 0x4d7   :  { %10170 = vmatprep.subr.mxu0 %v12080_v9  ;;  %v11276_v24 = vpack.c.bf16 %v8227_v21, %v8226_v20  ;;  %v8351_v20 = vld [vmem:[%s15474_s3 + $0xd20] sm:$0xff] }
 0x4da   :  { %10171 = vmatpush3.msk.msra.mxu0 %vm273_vm2, %v8164_v62  ;;  %v8244_v62 = vld [vmem:[%s15474_s3 + $0xa28] sm:$0xff] }
 0x4db   :  { %10173 = vmatmul.mubr.msk.f32.vlgmr.msra.gmra.mrb[14].mxu0 %vm269_vm3, %v12391_v58 }
 0x4dc   :  { %10177 = vmatprep.mubr.msk.f32.mxu0 %vm609_vm7, %v8167_v22  ;;  %v8245_v22 = vld [vmem:[%s15474_s3 + $0xa30] sm:$0xff] }
 0x4dd   :  { %v11278_v26 = vpack.c.bf16 %v8245_v22, %v8244_v62 }
 0x5ae   :  { %v1774_v27 = vpop.f32.mrb[14].mxu0 }
 0x5af   :  { %v1775_v28 = vadd.f32 %v13553_v23, %v1774_v27  ;;  %v10174_v29 = vpop.f32.mrb[15].mxu0  ;;  %v11251_v23 = vpack.c.bf16 %v8206_v33, %v8205_v32  ;;  %v8228_v27 = vld [vmem:[%s15474_s3 + $0x9a8] sm:$0xff]  ;;  %v8230_v33 = vld [vmem:[%s15474_s3 + $0x9b8] sm:$0xff] }
 0x5b0   :  { %v8246_v29 = vld [vmem:[%s15474_s3 + $0xa38] sm:$0xff] }
 0x5b1   :  { %10175 = vmatprep.subr.mxu0 %v1775_v28 }
 0x5b2   :  { %10176 = vmatpush3.msra.mxu0 %v1775_v28  ;;  %v8229_v28 = vld [vmem:[%s15474_s3 + $0x9b0] sm:$0xff] }
 0x5b3   :  { %11247 = vmatprep.subr.bf16.mxu0 %v12078_v4  ;;  %10178 = vmatmul.mubr.msk.f32.vlgmr.msra.gmra.mrb[6].mxu0 %vm609_vm7, %v8168_v30  ;;  %v8247_v30 = vld [vmem:[%s15474_s3 + $0xa40] sm:$0xff] }
 0x5b4   :  { %11249 = vmatpush3.bf16.msra.mxu0 %v11248_v31  ;;  %10202 = vmatprep.mubr.msk.f32.mxu0 %vm12079_vm0, %v12080_v9  ;;  %v11280_v31 = vpack.c.bf16 %v8229_v28, %v8228_v27  ;;  %v11282_v32 = vpack.c.bf16 %v8247_v30, %v8246_v29  ;;  %v8352_v27 = vld [vmem:[%s15474_s3 + $0xd28] sm:$0xff]  ;;  %v8353_v28 = vld [vmem:[%s15474_s3 + $0xd30] sm:$0xff]  ;;  %v8354_v29 = vld [vmem:[%s15474_s3 + $0xd38] sm:$0xff] }
 0x5b5   :  { %11250 = vmatprep.subr.bf16.mxu0 %v12078_v4  ;;  %v8355_v30 = vld [vmem:[%s15474_s3 + $0xd40] sm:$0xff] }
 0x5b8   :  { %11252 = vmatpush3.bf16.msra.mxu0 %v11251_v23  ;;  %v8231_v23 = vld [vmem:[%s15474_s3 + $0x9c0] sm:$0xff] }
 0x5b9   :  { %11253 = vmatprep.subr.bf16.mxu0 %v12078_v4 }
 0x5bc   :  { %11255 = vmatpush3.bf16.msra.mxu0 %v11254_v37  ;;  %v11284_v37 = vpack.c.bf16 %v8231_v23, %v8230_v33  ;;  %v8357_v33 = vld [vmem:[%s15474_s3 + $0xd50] sm:$0xff] }
 0x5bd   :  { %11256 = vmatprep.subr.bf16.mxu0 %v12078_v4 }
 0x5c0   :  { %11258 = vmatpush3.bf16.msra.mxu0 %v11257_v42  ;;  %v8233_v42 = vld [vmem:[%s15474_s3 + $0x9d0] sm:$0xff] }
 0x5c1   :  { %11259 = vmatprep.subr.bf16.mxu0 %v12078_v4 }
 0x5c4   :  { %11261 = vmatpush3.bf16.msra.mxu0 %v11260_v47  ;;  %v11288_v47 = vpack.c.bf16 %v8233_v42, %v8232_v40  ;;  %v8363_v40 = vld [vmem:[%s15475_s4 + $0x90] sm:$0xff] }
 0x5c5   :  { %10200 = vmatprep.subr.mxu0 %v12080_v9  ;;  %v8383_v42 = vld [vmem:[%s15474_s3 + $0xdf0] sm:$0xff] }
 0x5c8   :  { %10201 = vmatpush3.msk.msra.mxu0 %vm273_vm2, %v8213_v48  ;;  %v11290_v48 = vpack.c.bf16 %v8251_v45, %v8250_v43  ;;  %v8384_v43 = vld [vmem:[%s15474_s3 + $0xdf8] sm:$0xff]  ;;  %v8367_v45 = vld [vmem:[%s15474_s3 + $0xd70] sm:$0xff] }
 0x5c9   :  { %10203 = vmatmul.mubr.msk.f32.vlgmr.msra.gmra.mrb[16].mxu0 %vm269_vm3, %v12391_v58 }
 0x5ca   :  { %10207 = vmatprep.mubr.msk.f32.mxu0 %vm609_vm7, %v8216_v49  ;;  %v8234_v49 = vld [vmem:[%s15474_s3 + $0x9d8] sm:$0xff] }
 0x5cb   :  { %v11292_v53 = vpack.c.bf16 %v8235_v51, %v8234_v49  ;;  %v8385_v49 = vld [vmem:[%s15474_s3 + $0xe00] sm:$0xff]  ;;  %v8386_v51 = vld [vmem:[%s15474_s3 + $0xe08] sm:$0xff] }
 0x69c   :  { %v2047_v56 = vpop.f32.mrb[16].mxu0 }
 0x69d   :  { %v2048_v60 = vadd.f32 %v13631_v1, %v2047_v56  ;;  %v10204_v61 = vpop.f32.mrb[17].mxu0  ;;  %v8240_v1 = vld [vmem:[%s15474_s3 + $0xa08] sm:$0xff] }
 0x69e   :  { %v11270_v12 = vpack.c.bf16 %v8241_v52, %v8240_v1  ;;  %v11348_v1 = vpack.c.bf16 %v8306_v10, %v8305_v8  ;;  %v8307_v52 = vld [vmem:[%s15474_s3 + $0xbf0] sm:$0xff]  ;;  %v8389_v8 = vld [vmem:[%s15474_s3 + $0xe20] sm:$0xff]  ;;  %v8390_v10 = vld [vmem:[%s15474_s3 + $0xe28] sm:$0xff] }
 0x69f   :  { %10205 = vmatprep.subr.mxu0 %v2048_v60 }
 0x6a0   :  { %10206 = vmatpush3.msra.mxu0 %v2048_v60  ;;  %v8302_v60 = vld [vmem:[%s15474_s3 + $0xbc8] sm:$0xff] }
 0x6a1   :  { %10208 = vmatmul.mubr.msk.f32.vlgmr.msra.gmra.mrb[6].mxu0 %vm609_vm7, %v8217_v3  ;;  %11263 = vmatprep.subr.bf16.mxu0 %v11262_v0  ;;  %v8266_v0 = vld [vmem:[%s15475_s4 + $0x78] sm:$0xff]  ;;  %v11342_v3 = vpack.c.bf16 %v8302_v60, %v8301_v59  ;;  %v11407_v59 = vpack.c.bf16 %v8386_v51, %v8385_v49  ;;  %v8369_v60 = vld [vmem:[%s15474_s3 + $0xd80] sm:$0xff]  ;;  %v8413_v51 = vld [vmem:[%s15475_s4 + $0xa8] sm:$0xff] }
 0x6a2   :  { %11265 = vmatpush3.bf16.msra.mxu0 %v11264_v5  ;;  %2248 = vmatprep.mubr.f32.mxu0 %v12399_v63  ;;  %v8303_v5 = vld [vmem:[%s15474_s3 + $0xbd0] sm:$0xff] }
 0x6a3   :  { %11267 = vmatprep.subr.bf16.mxu0 %v11266_v6  ;;  %v8304_v6 = vld [vmem:[%s15474_s3 + $0xbd8] sm:$0xff] }
 0x6a6   :  { %11269 = vmatpush3.bf16.msra.mxu0 %v11268_v17  ;;  %v8308_v17 = vld [vmem:[%s15474_s3 + $0xbf8] sm:$0xff] }
 0x6a7   :  { %11271 = vmatprep.subr.bf16.mxu0 %v11270_v12  ;;  %v11351_v12 = vpack.c.bf16 %v8308_v17, %v8307_v52  ;;  %v11415_v52 = vpack.c.bf16 %v8390_v10, %v8389_v8  ;;  %v8373_v17 = vld [vmem:[%s15474_s3 + $0xda0] sm:$0xff]  ;;  %v8498_v10 = vld [vmem:[%s15474_s3 + $0x1128] sm:$0xff] }
 0x6a8   :  { %v8497_v8 = vld [vmem:[%s15474_s3 + $0x1120] sm:$0xff] }
 0x6aa   :  { %11273 = vmatpush3.bf16.msra.mxu0 %v11272_v18  ;;  %v8314_v18 = vld [vmem:[%s15475_s4 + $0x80] sm:$0xff] }
 0x6ab   :  { %11275 = vmatprep.subr.bf16.mxu0 %v11274_v19  ;;  %v8350_v19 = vld [vmem:[%s15474_s3 + $0xd18] sm:$0xff] }
 0x6ae   :  { %11277 = vmatpush3.bf16.msra.mxu0 %v11276_v24  ;;  %v8315_v24 = vld [vmem:[%s15475_s4 + $0x88] sm:$0xff] }
 0x6af   :  { %11279 = vmatprep.subr.bf16.mxu0 %v11278_v26  ;;  %v11389_v26 = vpack.c.bf16 %v8351_v20, %v8350_v19  ;;  %v8376_v19 = vld [vmem:[%s15474_s3 + $0xdb8] sm:$0xff]  ;;  %v8393_v20 = vld [vmem:[%s15474_s3 + $0xe40] sm:$0xff] }
 0x6b2   :  { %11281 = vmatpush3.bf16.msra.mxu0 %v11280_v31  ;;  %v11395_v31 = vpack.c.bf16 %v8355_v30, %v8354_v29  ;;  %v8379_v30 = vld [vmem:[%s15474_s3 + $0xdd0] sm:$0xff] }
 0x6b3   :  { %11283 = vmatprep.subr.bf16.mxu0 %v11282_v32  ;;  %v8356_v32 = vld [vmem:[%s15474_s3 + $0xd48] sm:$0xff] }
 0x6b4   :  { %v11398_v23 = vpack.c.bf16 %v8357_v33, %v8356_v32  ;;  %v8397_v32 = vld [vmem:[%s15474_s3 + $0xe60] sm:$0xff]  ;;  %v8398_v33 = vld [vmem:[%s15474_s3 + $0xe68] sm:$0xff] }
 0x6b6   :  { %11285 = vmatpush3.bf16.msra.mxu0 %v11284_v37  ;;  %v11401_v37 = vpack.c.bf16 %v8359_v36, %v8358_v34  ;;  %v11431_v34 = vpack.c.bf16 %v8398_v33, %v8397_v32  ;;  %v8381_v36 = vld [vmem:[%s15474_s3 + $0xde0] sm:$0xff]  ;;  %v8511_v33 = vld [vmem:[%s15475_s4 + $0xc8] sm:$0xff] }
 0x6b7   :  { %11287 = vmatprep.subr.bf16.mxu0 %v11286_v39  ;;  %v8360_v39 = vld [vmem:[%s15474_s3 + $0xd68] sm:$0x3] }
 0x6ba   :  { %11289 = vmatpush3.bf16.msra.mxu0 %v11288_v47  ;;  %v8368_v47 = vld [vmem:[%s15474_s3 + $0xd78] sm:$0xff] }
 0x6bb   :  { %11291 = vmatprep.subr.bf16.mxu0 %v11290_v48 }
 0x6be   :  { %11293 = vmatpush3.bf16.msra.mxu0 %v11292_v53 }
 0x6c1   :  { %2249 = vmatmul.mubr.f32.vlgmr.msra.gmra.mrb[18].mxu0 %v12409_v2 }
 0x6c2   :  { %10237 = vmatprep.mubr.msk.f32.mxu0 %vm609_vm7, %v8265_v54 }
 0x794   :  { %v9327_v55 = vpop.f32.mrb[18].mxu0 }
 0x795   :  { %v9328_v56 = vpop.f32.mrb[19].mxu0 }
 0x796   :  { %v9329_v57 = vadd.f32 %v9328_v56, %v9327_v55  ;;  %v11403_v55 = vpack.c.bf16 %v8384_v43, %v8383_v42  ;;  %v8364_v56 = vld [vmem:[%s15475_s4 + $0x98] sm:$0xff] }
 0x798   :  { %v2321_v61 = vadd.f32 %v9329_v57, %v13697_v35  ;;  %v11345_v35 = vpack.c.bf16 %v8304_v6, %v8303_v5  ;;  %v11405_v57 = vpack.c.bf16 %v8368_v47, %v8367_v45  ;;  %v8371_v6 = vld [vmem:[%s15474_s3 + $0xd90] sm:$0xff]  ;;  %v8448_v47 = vld [vmem:[%s15474_s3 + $0xfc8] sm:$0xff] }
 0x79a   :  { %10235 = vmatprep.subr.mxu0 %v2321_v61 }
 0x79b   :  { %10236 = vmatpush3.msra.mxu0 %v2321_v61  ;;  %v8370_v61 = vld [vmem:[%s15474_s3 + $0xd88] sm:$0xff] }
 0x79c   :  { %11341 = vmatprep.subr.bf16.mxu0 %v12078_v4  ;;  %10238 = vmatmul.mubr.msk.f32.vlgmr.msra.gmra.mrb[6].mxu0 %vm609_vm7, %v8266_v0  ;;  %v8388_v0 = vld [vmem:[%s15474_s3 + $0xe18] sm:$0xff] }
 0x79d   :  { %11343 = vmatpush3.bf16.msra.mxu0 %v11342_v3  ;;  %10262 = vmatprep.mubr.msk.f32.mxu0 %vm12079_vm0, %v12080_v9  ;;  %v11409_v3 = vpack.c.bf16 %v8370_v61, %v8369_v60  ;;  %v8454_v60 = vld [vmem:[%s15474_s3 + $0xff8] sm:$0xff]  ;;  %v8455_v61 = vld [vmem:[%s15474_s3 + $0x1000] sm:$0xff] }
 0x79e   :  { %11344 = vmatprep.subr.bf16.mxu0 %v12078_v4 }
 0x7a1   :  { %11346 = vmatpush3.bf16.msra.mxu0 %v11345_v35  ;;  %v8372_v35 = vld [vmem:[%s15474_s3 + $0xd98] sm:$0xff] }
 0x7a2   :  { %11347 = vmatprep.subr.bf16.mxu0 %v12078_v4 }
 0x7a5   :  { %11349 = vmatpush3.bf16.msra.mxu0 %v11348_v1  ;;  %v11413_v1 = vpack.c.bf16 %v8372_v35, %v8371_v6  ;;  %v8458_v6 = vld [vmem:[%s15474_s3 + $0x1018] sm:$0x3]  ;;  %v8461_v35 = vld [vmem:[%s15475_s4 + $0xb0] sm:$0xff] }
 0x7a6   :  { %11350 = vmatprep.subr.bf16.mxu0 %v12078_v4 }
 0x7a9   :  { %11352 = vmatpush3.bf16.msra.mxu0 %v11351_v12  ;;  %v8374_v12 = vld [vmem:[%s15474_s3 + $0xda8] sm:$0xff] }
 0x7aa   :  { %11353 = vmatprep.subr.bf16.mxu0 %v12078_v4 }
 0x7ad   :  { %11355 = vmatpush3.bf16.msra.mxu0 %v11354_v15  ;;  %v11417_v15 = vpack.c.bf16 %v8374_v12, %v8373_v17  ;;  %v8462_v12 = vld [vmem:[%s15475_s4 + $0xb8] sm:$0xff] }
 0x7ae   :  { %10260 = vmatprep.subr.mxu0 %v12080_v9 }
 0x7b1   :  { %10261 = vmatpush3.msk.msra.mxu0 %vm273_vm2, %v8311_v16  ;;  %v11419_v16 = vpack.c.bf16 %v8392_v14, %v8391_v13  ;;  %v11530_v13 = vpack.c.bf16 %v8498_v10, %v8497_v8  ;;  %v8499_v14 = vld [vmem:[%s15474_s3 + $0x1130] sm:$0xff]  ;;  %v8566_v8 = vld [vmem:[%s15474_s3 + $0x12e8] sm:$0xff]  ;;  %v8584_v10 = vld [vmem:[%s15474_s3 + $0x1378] sm:$0xff] }
 0x7b2   :  { %10263 = vmatmul.mubr.msk.f32.vlgmr.msra.gmra.mrb[20].mxu0 %vm269_vm3, %v12391_v58 }
 0x7b3   :  { %10267 = vmatprep.mubr.msk.f32.mxu0 %vm609_vm7, %v8314_v18  ;;  %v8375_v18 = vld [vmem:[%s15474_s3 + $0xdb0] sm:$0xff] }
 0x885   :  { %v2593_v21 = vpop.f32.mrb[20].mxu0 }
 0x886   :  { %v2594_v62 = vadd.f32 %v13748_v7, %v2593_v21  ;;  %v10264_v22 = vpop.f32.mrb[21].mxu0  ;;  %v11392_v7 = vpack.c.bf16 %v8353_v28, %v8352_v27  ;;  %v8394_v21 = vld [vmem:[%s15474_s3 + $0xe48] sm:$0xff]  ;;  %v8395_v27 = vld [vmem:[%s15474_s3 + $0xe50] sm:$0xff]  ;;  %v8396_v28 = vld [vmem:[%s15474_s3 + $0xe58] sm:$0xff] }
 0x887   :  { %v11423_v22 = vpack.c.bf16 %v8394_v21, %v8393_v20  ;;  %v11427_v29 = vpack.c.bf16 %v8396_v28, %v8395_v27  ;;  %v8503_v20 = vld [vmem:[%s15474_s3 + $0x1150] sm:$0xff]  ;;  %v8504_v21 = vld [vmem:[%s15474_s3 + $0x1158] sm:$0xff]  ;;  %v8510_v28 = vld [vmem:[%s15475_s4 + $0xc0] sm:$0xff] }
 0x888   :  { %10265 = vmatprep.subr.mxu0 %v2594_v62  ;;  %v8507_v27 = vld [vmem:[%s15474_s3 + $0x1170] sm:$0x3] }
 0x889   :  { %10266 = vmatpush3.msra.mxu0 %v2594_v62  ;;  %v11421_v62 = vpack.c.bf16 %v8376_v19, %v8375_v18  ;;  %v8502_v18 = vld [vmem:[%s15474_s3 + $0x1148] sm:$0xff] }
 0x88a   :  { %11388 = vmatprep.subr.bf16.mxu0 %v12078_v4  ;;  %10268 = vmatmul.mubr.msk.f32.vlgmr.msra.gmra.mrb[6].mxu0 %vm609_vm7, %v8315_v24  ;;  %v8377_v24 = vld [vmem:[%s15474_s3 + $0xdc0] sm:$0xff] }
 0x88b   :  { %11390 = vmatpush3.bf16.msra.mxu0 %v11389_v26  ;;  %10292 = vmatprep.mubr.msk.f32.mxu0 %vm12079_vm0, %v12080_v9  ;;  %v8378_v26 = vld [vmem:[%s15474_s3 + $0xdc8] sm:$0xff] }
 0x88c   :  { %11391 = vmatprep.subr.bf16.mxu0 %v12078_v4 }
 0x88f   :  { %11393 = vmatpush3.bf16.msra.mxu0 %v11392_v7  ;;  %v11425_v7 = vpack.c.bf16 %v8378_v26, %v8377_v24  ;;  %v8506_v24 = vld [vmem:[%s15474_s3 + $0x1168] sm:$0xff] }
 0x890   :  { %11394 = vmatprep.subr.bf16.mxu0 %v12078_v4 }
 0x893   :  { %11396 = vmatpush3.bf16.msra.mxu0 %v11395_v31  ;;  %v8380_v31 = vld [vmem:[%s15474_s3 + $0xdd8] sm:$0xff] }
 0x894   :  { %11397 = vmatprep.subr.bf16.mxu0 %v12078_v4 }
 0x897   :  { %11399 = vmatpush3.bf16.msra.mxu0 %v11398_v23  ;;  %v11429_v23 = vpack.c.bf16 %v8380_v31, %v8379_v30 }
 0x898   :  { %11400 = vmatprep.subr.bf16.mxu0 %v12078_v4 }
 0x89b   :  { %11402 = vmatpush3.bf16.msra.mxu0 %v11401_v37  ;;  %v8382_v37 = vld [vmem:[%s15474_s3 + $0xde8] sm:$0xff] }
 0x89c   :  { %10290 = vmatprep.subr.mxu0 %v12080_v9 }
 0x89f   :  { %10291 = vmatpush3.msk.msra.mxu0 %vm273_vm2, %v8360_v39  ;;  %v11433_v39 = vpack.c.bf16 %v8382_v37, %v8381_v36  ;;  %v8549_v36 = vld [vmem:[%s15474_s3 + $0x1290] sm:$0xff]  ;;  %v8550_v37 = vld [vmem:[%s15474_s3 + $0x1298] sm:$0xff] }
 0x8a0   :  { %10293 = vmatmul.mubr.msk.f32.vlgmr.msra.gmra.mrb[22].mxu0 %vm269_vm3, %v12391_v58 }
 0x8a1   :  { %10297 = vmatprep.mubr.msk.f32.mxu0 %vm609_vm7, %v8363_v40  ;;  %v8412_v40 = vld [vmem:[%s15475_s4 + $0xa0] sm:$0xff] }
 0x973   :  { %v2866_v48 = vpop.f32.mrb[22].mxu0 }
 0x974   :  { %v2867_v53 = vadd.f32 %v13750_v11, %v2866_v48  ;;  %v10294_v54 = vpop.f32.mrb[23].mxu0  ;;  %v8387_v11 = vld [vmem:[%s15474_s3 + $0xe10] sm:$0xff] }
 0x975   :  { %v11411_v5 = vpack.c.bf16 %v8388_v0, %v8387_v11  ;;  %v8449_v48 = vld [vmem:[%s15474_s3 + $0xfd0] sm:$0xff]  ;;  %v8450_v54 = vld [vmem:[%s15474_s3 + $0xfd8] sm:$0xff]  ;;  %v11492_v11 = vpack.c.bf16 %v8455_v61, %v8454_v60  ;;  %v8456_v0 = vld [vmem:[%s15474_s3 + $0x1008] sm:$0xff] }
 0x976   :  { %10295 = vmatprep.subr.mxu0 %v2867_v53  ;;  %v8582_v60 = vld [vmem:[%s15474_s3 + $0x1368] sm:$0xff] }
 0x977   :  { %10296 = vmatpush3.msra.mxu0 %v2867_v53  ;;  %v11483_v53 = vpack.c.bf16 %v8449_v48, %v8448_v47  ;;  %v8554_v47 = vld [vmem:[%s15474_s3 + $0x12b8] sm:$0xff]  ;;  %v8555_v48 = vld [vmem:[%s15474_s3 + $0x12c0] sm:$0xff] }
 0x978   :  { %10298 = vmatmul.mubr.msk.f32.vlgmr.msra.gmra.mrb[6].mxu0 %vm609_vm7, %v8364_v56  ;;  %11404 = vmatprep.subr.bf16.mxu0 %v11403_v55  ;;  %v8451_v55 = vld [vmem:[%s15474_s3 + $0xfe0] sm:$0xff]  ;;  %v8452_v56 = vld [vmem:[%s15474_s3 + $0xfe8] sm:$0xff] }
 0x979   :  { %11406 = vmatpush3.bf16.msra.mxu0 %v11405_v57  ;;  %3067 = vmatprep.mubr.f32.mxu0 %v12399_v63  ;;  %v8453_v57 = vld [vmem:[%s15474_s3 + $0xff0] sm:$0xff] }
 0x97a   :  { %11408 = vmatprep.subr.bf16.mxu0 %v11407_v59  ;;  %v11489_v59 = vpack.c.bf16 %v8453_v57, %v8452_v56  ;;  %v8564_v56 = vld [vmem:[%s15474_s3 + $0x12d8] sm:$0xff] }
 0x97d   :  { %11410 = vmatpush3.bf16.msra.mxu0 %v11409_v3  ;;  %v8457_v3 = vld [vmem:[%s15474_s3 + $0x1010] sm:$0xff] }
 0x97e   :  { %11412 = vmatprep.subr.bf16.mxu0 %v11411_v5  ;;  %v11495_v5 = vpack.c.bf16 %v8457_v3, %v8456_v0  ;;  %v8560_v3 = vld [vmem:[%s15475_s4 + $0xd8] sm:$0xff] }
 0x981   :  { %11414 = vmatpush3.bf16.msra.mxu0 %v11413_v1 }
 0x982   :  { %11416 = vmatprep.subr.bf16.mxu0 %v11415_v52 }
 0x985   :  { %11418 = vmatpush3.bf16.msra.mxu0 %v11417_v15  ;;  %v8500_v15 = vld [vmem:[%s15474_s3 + $0x1138] sm:$0xff] }
 0x986   :  { %11420 = vmatprep.subr.bf16.mxu0 %v11419_v16  ;;  %v8501_v16 = vld [vmem:[%s15474_s3 + $0x1140] sm:$0xff] }
 0x987   :  { %v11536_v19 = vpack.c.bf16 %v8502_v18, %v8501_v16  ;;  %v8570_v16 = vld [vmem:[%s15474_s3 + $0x1308] sm:$0xff]  ;;  %v8587_v18 = vld [vmem:[%s15474_s3 + $0x1390] sm:$0xff] }
 0x989   :  { %11422 = vmatpush3.bf16.msra.mxu0 %v11421_v62  ;;  %v11539_v62 = vpack.c.bf16 %v8504_v21, %v8503_v20 }
 0x98a   :  { %11424 = vmatprep.subr.bf16.mxu0 %v11423_v22  ;;  %v8505_v22 = vld [vmem:[%s15474_s3 + $0x1160] sm:$0xff] }
 0x98b   :  { %v11542_v26 = vpack.c.bf16 %v8506_v24, %v8505_v22  ;;  %v8572_v22 = vld [vmem:[%s15474_s3 + $0x1318] sm:$0xff]  ;;  %v8589_v24 = vld [vmem:[%s15474_s3 + $0x13a0] sm:$0xff] }
 0x98d   :  { %11426 = vmatpush3.bf16.msra.mxu0 %v11425_v7  ;;  %v8546_v7 = vld [vmem:[%s15474_s3 + $0x1278] sm:$0xff] }
 0x98e   :  { %11428 = vmatprep.subr.bf16.mxu0 %v11427_v29  ;;  %v8547_v29 = vld [vmem:[%s15474_s3 + $0x1280] sm:$0xff] }
 0x991   :  { %11430 = vmatpush3.bf16.msra.mxu0 %v11429_v23  ;;  %v11577_v23 = vpack.c.bf16 %v8547_v29, %v8546_v7  ;;  %v8573_v7 = vld [vmem:[%s15474_s3 + $0x1320] sm:$0xff]  ;;  %v8574_v29 = vld [vmem:[%s15474_s3 + $0x1328] sm:$0xff] }
 0x992   :  { %11432 = vmatprep.subr.bf16.mxu0 %v11431_v34  ;;  %v8548_v34 = vld [vmem:[%s15474_s3 + $0x1288] sm:$0xff] }
 0x995   :  { %11434 = vmatpush3.bf16.msra.mxu0 %v11433_v39  ;;  %v8551_v39 = vld [vmem:[%s15474_s3 + $0x12a0] sm:$0xff] }
 0x998   :  { %3068 = vmatmul.mubr.f32.vlgmr.msra.gmra.mrb[24].mxu0 %v12409_v2 }
 0x999   :  { %10327 = vmatprep.mubr.msk.f32.mxu0 %vm609_vm7, %v8412_v40  ;;  %v11583_v40 = vpack.c.bf16 %v8551_v39, %v8550_v37 }
 0xa6b   :  { %v9477_v42 = vpop.f32.mrb[24].mxu0 }
 0xa6c   :  { %v9478_v43 = vpop.f32.mrb[25].mxu0 }
 0xa6d   :  { %v9479_v45 = vadd.f32 %v9478_v43, %v9477_v42  ;;  %v8552_v42 = vld [vmem:[%s15474_s3 + $0x12a8] sm:$0xff]  ;;  %v8553_v43 = vld [vmem:[%s15474_s3 + $0x12b0] sm:$0xff] }
 0xa6f   :  { %v3140_v49 = vadd.f32 %v9479_v45, %v13779_v25  ;;  %v11486_v25 = vpack.c.bf16 %v8451_v55, %v8450_v54  ;;  %v11586_v45 = vpack.c.bf16 %v8553_v43, %v8552_v42  ;;  %v8579_v54 = vld [vmem:[%s15474_s3 + $0x1350] sm:$0xff]  ;;  %v8580_v55 = vld [vmem:[%s15474_s3 + $0x1358] sm:$0xff]  ;;  %v8578_v42 = vld [vmem:[%s15474_s3 + $0x1348] sm:$0xff] }
 0xa70   :  { %v11591_v0 = vpack.c.bf16 %v8580_v55, %v8579_v54 }
 0xa71   :  { %10325 = vmatprep.subr.mxu0 %v3140_v49 }
 0xa72   :  { %10326 = vmatpush3.msra.mxu0 %v3140_v49  ;;  %v11589_v49 = vpack.c.bf16 %v8555_v48, %v8554_v47 }
 0xa73   :  { %11482 = vmatprep.subr.bf16.mxu0 %v12078_v4  ;;  %10328 = vmatmul.mubr.msk.f32.vlgmr.msra.gmra.mrb[6].mxu0 %vm609_vm7, %v8413_v51  ;;  %v8556_v51 = vld [vmem:[%s15474_s3 + $0x12c8] sm:$0x3] }
 0xa74   :  { %11484 = vmatpush3.bf16.msra.mxu0 %v11483_v53  ;;  %10352 = vmatprep.mubr.msk.f32.mxu0 %vm12079_vm0, %v12080_v9  ;;  %v8559_v53 = vld [vmem:[%s15475_s4 + $0xd0] sm:$0xff] }
 0xa75   :  { %11485 = vmatprep.subr.bf16.mxu0 %v12078_v4 }
 0xa78   :  { %11487 = vmatpush3.bf16.msra.mxu0 %v11486_v25  ;;  %v8563_v25 = vld [vmem:[%s15474_s3 + $0x12d0] sm:$0xff] }
 0xa79   :  { %11488 = vmatprep.subr.bf16.mxu0 %v12078_v4 }
 0xa7c   :  { %11490 = vmatpush3.bf16.msra.mxu0 %v11489_v59  ;;  %v8581_v59 = vld [vmem:[%s15474_s3 + $0x1360] sm:$0xff] }
 0xa7d   :  { %11491 = vmatprep.subr.bf16.mxu0 %v12078_v4 }
 0xa80   :  { %11493 = vmatpush3.bf16.msra.mxu0 %v11492_v11 }
 0xa81   :  { %11494 = vmatprep.subr.bf16.mxu0 %v12078_v4 }
 0xa84   :  { %11496 = vmatpush3.bf16.msra.mxu0 %v11495_v5  ;;  %v11593_v5 = vpack.c.bf16 %v8564_v56, %v8563_v25  ;;  %v8646_v25 = vld [vmem:[%s15474_s3 + $0x1538] sm:$0xff]  ;;  %v8647_v56 = vld [vmem:[%s15474_s3 + $0x1540] sm:$0xff] }
 0xa85   :  { %10350 = vmatprep.subr.mxu0 %v12080_v9 }
 0xa88   :  { %10351 = vmatpush3.msk.msra.mxu0 %vm273_vm2, %v8458_v6  ;;  %v11595_v6 = vpack.c.bf16 %v8582_v60, %v8581_v59  ;;  %v8649_v59 = vld [vmem:[%s15474_s3 + $0x1550] sm:$0xff] }
 0xa89   :  { %10353 = vmatmul.mubr.msk.f32.vlgmr.msra.gmra.mrb[26].mxu0 %vm269_vm3, %v12391_v58 }
 0xa8a   :  { %10357 = vmatprep.mubr.msk.f32.mxu0 %vm609_vm7, %v8461_v35  ;;  %v8565_v35 = vld [vmem:[%s15474_s3 + $0x12e0] sm:$0xff] }
 0xb5c   :  { %v3412_v1 = vpop.f32.mrb[26].mxu0 }
 0xb5d   :  { %v3413_v52 = vadd.f32 %v13803_v38, %v3412_v1  ;;  %v10354_v17 = vpop.f32.mrb[27].mxu0  ;;  %v11533_v38 = vpack.c.bf16 %v8500_v15, %v8499_v14  ;;  %v11597_v1 = vpack.c.bf16 %v8566_v8, %v8565_v35  ;;  %v8586_v14 = vld [vmem:[%s15474_s3 + $0x1388] sm:$0xff]  ;;  %v8654_v35 = vld [vmem:[%s15474_s3 + $0x1578] sm:$0x3]  ;;  %v8657_v8 = vld [vmem:[%s15475_s4 + $0xf0] sm:$0xff] }
 0xb5e   :  { %v8567_v17 = vld [vmem:[%s15474_s3 + $0x12f0] sm:$0xff] }
 0xb5f   :  { %10355 = vmatprep.subr.mxu0 %v3413_v52 }
 0xb60   :  { %10356 = vmatpush3.msra.mxu0 %v3413_v52 }
 0xb61   :  { %11529 = vmatprep.subr.bf16.mxu0 %v12078_v4  ;;  %10358 = vmatmul.mubr.msk.f32.vlgmr.msra.gmra.mrb[6].mxu0 %vm609_vm7, %v8462_v12  ;;  %v8568_v12 = vld [vmem:[%s15474_s3 + $0x12f8] sm:$0xff] }
 0xb62   :  { %11531 = vmatpush3.bf16.msra.mxu0 %v11530_v13  ;;  %10382 = vmatprep.mubr.msk.f32.mxu0 %vm12079_vm0, %v12080_v9  ;;  %v8585_v13 = vld [vmem:[%s15474_s3 + $0x1380] sm:$0xff] }
 0xb63   :  { %11532 = vmatprep.subr.bf16.mxu0 %v12078_v4  ;;  %v11603_v15 = vpack.c.bf16 %v8586_v14, %v8585_v13  ;;  %v4597_v13 = vld [vmem:[%s15477_s6 + $0x8] sm:$0xff] }
 0xb66   :  { %11534 = vmatpush3.bf16.msra.mxu0 %v11533_v38  ;;  %v8569_v38 = vld [vmem:[%s15474_s3 + $0x1300] sm:$0xff] }
 0xb67   :  { %11535 = vmatprep.subr.bf16.mxu0 %v12078_v4  ;;  %v11605_v20 = vpack.c.bf16 %v8570_v16, %v8569_v38 }
 0xb6a   :  { %11537 = vmatpush3.bf16.msra.mxu0 %v11536_v19  ;;  %v8588_v19 = vld [vmem:[%s15474_s3 + $0x1398] sm:$0xff] }
 0xb6b   :  { %11538 = vmatprep.subr.bf16.mxu0 %v12078_v4  ;;  %v11607_v21 = vpack.c.bf16 %v8588_v19, %v8587_v18 }
 0xb6e   :  { %11540 = vmatpush3.bf16.msra.mxu0 %v11539_v62  ;;  %v8571_v62 = vld [vmem:[%s15474_s3 + $0x1310] sm:$0xff] }
 0xb6f   :  { %11541 = vmatprep.subr.bf16.mxu0 %v12078_v4 }
 0xb72   :  { %11543 = vmatpush3.bf16.msra.mxu0 %v11542_v26  ;;  %v8590_v26 = vld [vmem:[%s15474_s3 + $0x13a8] sm:$0xff] }
 0xb73   :  { %10380 = vmatprep.subr.mxu0 %v12080_v9 }
 0xb76   :  { %10381 = vmatpush3.msk.msra.mxu0 %vm273_vm2, %v8507_v27  ;;  %v11609_v27 = vpack.c.bf16 %v8572_v22, %v8571_v62  ;;  %v4596_v22 = vld [vmem:[%s15477_s6] sm:$0xff] }
 0xb77   :  { %10383 = vmatmul.mubr.msk.f32.vlgmr.msra.gmra.mrb[28].mxu0 %vm269_vm3, %v12391_v58 }
 0xb78   :  { %10387 = vmatprep.mubr.msk.f32.mxu0 %vm609_vm7, %v8510_v28  ;;  %v11611_v28 = vpack.c.bf16 %v8590_v26, %v8589_v24  ;;  %v8664_v24 = vld [vmem:[%s15478_s7 + $0x38] sm:$0xff]  ;;  %v8665_v26 = vld [vmem:[%s15478_s7 + $0x40] sm:$0xff] }
 0xc4a   :  { %v3685_v30 = vpop.f32.mrb[28].mxu0 }
 0xc4b   :  { %v3686_v31 = vadd.f32 %v13805_v41, %v3685_v30  ;;  %v10384_v32 = vpop.f32.mrb[29].mxu0  ;;  %v11580_v41 = vpack.c.bf16 %v8549_v36, %v8548_v34  ;;  %v8591_v30 = vld [vmem:[%s15474_s3 + $0x13b0] sm:$0xff]  ;;  %v8576_v34 = vld [vmem:[%s15474_s3 + $0x1338] sm:$0xff]  ;;  %v8593_v36 = vld [vmem:[%s15474_s3 + $0x13c0] sm:$0xff] }
 0xc4c   :  { %v11613_v32 = vpack.c.bf16 %v8574_v29, %v8573_v7  ;;  %v4657_v7 = vld [vmem:[%s15478_s7 + $0x8] sm:$0xff] }
 0xc4d   :  { %10385 = vmatprep.subr.mxu0 %v3686_v31 }
 0xc4e   :  { %10386 = vmatpush3.msra.mxu0 %v3686_v31  ;;  %v8592_v31 = vld [vmem:[%s15474_s3 + $0x13b8] sm:$0xff] }
 0xc4f   :  { %11576 = vmatprep.subr.bf16.mxu0 %v12078_v4  ;;  %10388 = vmatmul.mubr.msk.f32.vlgmr.msra.gmra.mrb[6].mxu0 %vm609_vm7, %v8511_v33  ;;  %v11615_v33 = vpack.c.bf16 %v8592_v31, %v8591_v30  ;;  %v8666_v30 = vld [vmem:[%s15478_s7 + $0x48] sm:$0xff]  ;;  %v8667_v31 = vld [vmem:[%s15478_s7 + $0x50] sm:$0xff] }
 0xc50   :  { %11578 = vmatpush3.bf16.msra.mxu0 %v11577_v23  ;;  %10412 = vmatprep.mubr.msk.f32.mxu0 %vm12079_vm0, %v12080_v9  ;;  %v8575_v23 = vld [vmem:[%s15474_s3 + $0x1330] sm:$0xff] }
 0xc51   :  { %11579 = vmatprep.subr.bf16.mxu0 %v12078_v4  ;;  %v11617_v37 = vpack.c.bf16 %v8576_v34, %v8575_v23  ;;  %v4659_v23 = vld [vmem:[%s15478_s7 + $0x18] sm:$0xff] }
 0xc54   :  { %11581 = vmatpush3.bf16.msra.mxu0 %v11580_v41  ;;  %v8594_v41 = vld [vmem:[%s15474_s3 + $0x13c8] sm:$0xff] }
 0xc55   :  { %11582 = vmatprep.subr.bf16.mxu0 %v12078_v4  ;;  %v11619_v39 = vpack.c.bf16 %v8594_v41, %v8593_v36  ;;  %v8668_v36 = vld [vmem:[%s15478_s7 + $0x58] sm:$0xff]  ;;  %v8669_v41 = vld [vmem:[%s15478_s7 + $0x60] sm:$0xff] }
 0xc58   :  { %11584 = vmatpush3.bf16.msra.mxu0 %v11583_v40  ;;  %v8577_v40 = vld [vmem:[%s15474_s3 + $0x1340] sm:$0xff] }
 0xc59   :  { %11585 = vmatprep.subr.bf16.mxu0 %v12078_v4  ;;  %v11621_v43 = vpack.c.bf16 %v8578_v42, %v8577_v40  ;;  %v4661_v40 = vld [vmem:[%s15478_s7 + $0x28] sm:$0xff] }
 0xc5c   :  { %11587 = vmatpush3.bf16.msra.mxu0 %v11586_v45  ;;  %v8608_v45 = vld [vmem:[%s15475_s4 + $0xe0] sm:$0xff] }
 0xc5d   :  { %11588 = vmatprep.subr.bf16.mxu0 %v12078_v4 }
 0xc60   :  { %11590 = vmatpush3.bf16.msra.mxu0 %v11589_v49 }
 0xc61   :  { %10410 = vmatprep.subr.mxu0 %v12080_v9 }
 0xc64   :  { %10411 = vmatpush3.msk.msra.mxu0 %vm273_vm2, %v8556_v51  ;;  %v8644_v51 = vld [vmem:[%s15474_s3 + $0x1528] sm:$0xff] }
 0xc65   :  { %10413 = vmatmul.mubr.msk.f32.vlgmr.msra.gmra.mrb[30].mxu0 %vm269_vm3, %v12391_v58 }
 0xc66   :  { %10417 = vmatprep.mubr.msk.f32.mxu0 %vm609_vm7, %v8559_v53  ;;  %v8645_v53 = vld [vmem:[%s15474_s3 + $0x1530] sm:$0xff] }
 0xc67   :  { %v11671_v55 = vpack.c.bf16 %v8645_v53, %v8644_v51 }
 0xd38   :  { %v3958_v57 = vpop.f32.mrb[30].mxu0 }
 0xd39   :  { %v3959_v61 = vadd.f32 %v13807_v44, %v3958_v57  ;;  %v10414_v11 = vpop.f32.mrb[31].mxu0  ;;  %v8583_v44 = vld [vmem:[%s15474_s3 + $0x1370] sm:$0xff]  ;;  %v8648_v57 = vld [vmem:[%s15474_s3 + $0x1548] sm:$0xff] }
 0xd3a   :  { %v11599_v52 = vpack.c.bf16 %v8584_v10, %v8583_v44  ;;  %v11677_v60 = vpack.c.bf16 %v8649_v59, %v8648_v57  ;;  %v8651_v11 = vld [vmem:[%s15474_s3 + $0x1560] sm:$0xff] }
 0xd3b   :  { %10415 = vmatprep.subr.mxu0 %v3959_v61 }
 0xd3c   :  { %10416 = vmatpush3.msra.mxu0 %v3959_v61  ;;  %v8650_v61 = vld [vmem:[%s15474_s3 + $0x1558] sm:$0xff] }
 0xd3d   :  { %10418 = vmatmul.mubr.msk.f32.vlgmr.msra.gmra.mrb[6].mxu0 %vm609_vm7, %v8560_v3  ;;  %11592 = vmatprep.subr.bf16.mxu0 %v11591_v0  ;;  %v11680_v0 = vpack.c.bf16 %v8651_v11, %v8650_v61  ;;  %v8652_v3 = vld [vmem:[%s15474_s3 + $0x1568] sm:$0xff] }
 0xd3e   :  { %11594 = vmatpush3.bf16.msra.mxu0 %v11593_v5  ;;  %4159 = vmatprep.mubr.f32.mxu0 %v12399_v63  ;;  %v11601_v63 = vpack.c.bf16 %v8568_v12, %v8567_v17  ;;  %v8653_v5 = vld [vmem:[%s15474_s3 + $0x1570] sm:$0xff]  ;;  %v4595_v12 = vld [vmem:[%s15476_s5 + $0x8] sm:$0xff] }
 0xd3f   :  { %11596 = vmatprep.subr.bf16.mxu0 %v11595_v6  ;;  %v11683_v6 = vpack.c.bf16 %v8653_v5, %v8652_v3 }
 0xd42   :  { %11598 = vmatpush3.bf16.msra.mxu0 %v11597_v1 }
 0xd43   :  { %11600 = vmatprep.subr.bf16.mxu0 %v11599_v52 }
 0xd46   :  { %11602 = vmatpush3.bf16.msra.mxu0 %v11601_v63 }
 0xd47   :  { %11604 = vmatprep.subr.bf16.mxu0 %v11603_v15 }
 0xd4a   :  { %11606 = vmatpush3.bf16.msra.mxu0 %v11605_v20 }
 0xd4b   :  { %11608 = vmatprep.subr.bf16.mxu0 %v11607_v21 }
 0xd4e   :  { %11610 = vmatpush3.bf16.msra.mxu0 %v11609_v27  ;;  %v11697_v27 = vpack.c.bf16 %v8665_v26, %v8664_v24  ;;  %v8742_v24 = vld [vmem:[%s15478_s7 + $0x128] sm:$0xff]  ;;  %v8743_v26 = vld [vmem:[%s15478_s7 + $0x130] sm:$0xff] }
 0xd4f   :  { %11612 = vmatprep.subr.bf16.mxu0 %v11611_v28  ;;  %v4656_v28 = vld [vmem:[%s15478_s7] sm:$0xff] }
 0xd50   :  { %v11685_v29 = vpack.c.bf16 %v4657_v7, %v4656_v28  ;;  %v11769_v28 = vpack.c.bf16 %v8743_v26, %v8742_v24  ;;  %v8744_v7 = vld [vmem:[%s15478_s7 + $0x138] sm:$0xff]  ;;  %v8887_v24 = vld [vmem:[%s15478_s7 + $0x2f0] sm:$0xff] }
 0xd52   :  { %11614 = vmatpush3.bf16.msra.mxu0 %v11613_v32  ;;  %11686 = vmatprep.subr.bf16.mxu1 %v11685_v29  ;;  %v11701_v32 = vpack.c.bf16 %v8667_v31, %v8666_v30  ;;  %v8746_v31 = vld [vmem:[%s15478_s7 + $0x148] sm:$0x3] }
 0xd53   :  { %11616 = vmatprep.subr.bf16.mxu0 %v11615_v33  ;;  %11688 = vmatpush3.bf16.msra.mxu1 %v11685_v29  ;;  %v4658_v33 = vld [vmem:[%s15478_s7 + $0x10] sm:$0xff]  ;;  %v8745_v29 = vld [vmem:[%s15478_s7 + $0x140] sm:$0xff] }
 0xd54   :  { %v11689_v34 = vpack.c.bf16 %v4659_v23, %v4658_v33  ;;  %v11773_v30 = vpack.c.bf16 %v8745_v29, %v8744_v7  ;;  %v8759_v33 = vld [vmem:[%s15478_s7 + $0x158] sm:$0xff]  ;;  %v8760_v23 = vld [vmem:[%s15478_s7 + $0x160] sm:$0xff] }
 0xd55   :  { %v8889_v7 = vld [vmem:[%s15478_s7 + $0x300] sm:$0xff] }
 0xd56   :  { %11618 = vmatpush3.bf16.msra.mxu0 %v11617_v37  ;;  %11690 = vmatprep.subr.bf16.mxu1 %v11689_v34  ;;  %v11705_v37 = vpack.c.bf16 %v8669_v41, %v8668_v36 }
 0xd57   :  { %11620 = vmatprep.subr.bf16.mxu0 %v11619_v39  ;;  %11692 = vmatpush3.bf16.msra.mxu1 %v11689_v34  ;;  %v4660_v39 = vld [vmem:[%s15478_s7 + $0x20] sm:$0xff]  ;;  %v8761_v34 = vld [vmem:[%s15478_s7 + $0x168] sm:$0xff] }
 0xd58   :  { %v11693_v42 = vpack.c.bf16 %v4661_v40, %v4660_v39  ;;  %v11785_v41 = vpack.c.bf16 %v8761_v34, %v8760_v23  ;;  %v8763_v39 = vld [vmem:[%s15478_s7 + $0x178] sm:$0xff]  ;;  %v8905_v23 = vld [vmem:[%s15478_s7 + $0x328] sm:$0xff] }
 0xd5a   :  { %11622 = vmatpush3.bf16.msra.mxu0 %v11621_v43  ;;  %11694 = vmatprep.subr.bf16.mxu1 %v11693_v42  ;;  %v8670_v43 = vld [vmem:[%s15478_s7 + $0x68] sm:$0x3] }
 0xd5b   :  { %11696 = vmatpush3.bf16.msra.mxu1 %v11693_v42  ;;  %v8764_v42 = vld [vmem:[%s15478_s7 + $0x180] sm:$0x3] }
 0xd5d   :  { %4160 = vmatmul.mubr.f32.vlgmr.msra.gmra.mrb[32].mxu0 %v12409_v2  ;;  %v8609_v2 = vld [vmem:[%s15475_s4 + $0xe8] sm:$0xff] }
 0xd5e   :  { %10447 = vmatprep.mubr.msk.f32.mxu0 %vm609_vm7, %v8608_v45  ;;  %v8686_v45 = vld [vmem:[%s15478_s7 + $0x70] sm:$0xff] }
 0xe30   :  { %v9677_v47 = vpop.f32.mrb[32].mxu0 }
 0xe31   :  { %v9678_v48 = vpop.f32.mrb[33].mxu0 }
 0xe32   :  { %v9679_v49 = vadd.f32 %v9678_v48, %v9677_v47  ;;  %v8687_v47 = vld [vmem:[%s15478_s7 + $0x78] sm:$0xff]  ;;  %v4662_v48 = vld [vmem:[%s15478_s7 + $0x30] sm:$0x3] }
 0xe33   :  { %10492 = vmatprep.subr.msk.mxu1 %vm273_vm2, %v4662_v48 }
 0xe34   :  { %v4232_v54 = vadd.f32 %v9679_v49, %v13813_v46  ;;  %v11674_v46 = vpack.c.bf16 %v8647_v56, %v8646_v25  ;;  %v11717_v49 = vpack.c.bf16 %v8687_v47, %v8686_v45  ;;  %10493 = vmatpush3.msk.msra.mxu1 %vm273_vm2, %v4662_v48  ;;  %v8777_v45 = vld [vmem:[%s15478_s7 + $0x190] sm:$0xff]  ;;  %v8778_v47 = vld [vmem:[%s15478_s7 + $0x198] sm:$0xff]  ;;  %v8779_v48 = vld [vmem:[%s15478_s7 + $0x1a0] sm:$0xff] }
 0xe36   :  { %10445 = vmatprep.subr.mxu0 %v4232_v54 }
 0xe37   :  { %10446 = vmatpush3.msra.mxu0 %v4232_v54 }
 0xe38   :  { %11670 = vmatprep.subr.bf16.mxu0 %v12078_v4  ;;  %10448 = vmatmul.mubr.msk.f32.vlgmr.msra.gmra.mrb[6].mxu0 %vm609_vm7, %v8609_v2 }
 0xe39   :  { %11672 = vmatpush3.bf16.msra.mxu0 %v11671_v55  ;;  %10472 = vmatprep.mubr.msk.f32.mxu0 %vm12079_vm0, %v12080_v9 }
 0xe3a   :  { %11673 = vmatprep.subr.bf16.mxu0 %v12078_v4 }
 0xe3d   :  { %11675 = vmatpush3.bf16.msra.mxu0 %v11674_v46 }
 0xe3e   :  { %11676 = vmatprep.subr.bf16.mxu0 %v12078_v4 }
 0xe41   :  { %11678 = vmatpush3.bf16.msra.mxu0 %v11677_v60 }
 0xe42   :  { %11679 = vmatprep.subr.bf16.mxu0 %v12078_v4 }
 0xe45   :  { %11681 = vmatpush3.bf16.msra.mxu0 %v11680_v0 }
 0xe46   :  { %11682 = vmatprep.subr.bf16.mxu0 %v12078_v4 }
 0xe49   :  { %11684 = vmatpush3.bf16.msra.mxu0 %v11683_v6 }
 0xe4a   :  { %10470 = vmatprep.subr.mxu0 %v12080_v9  ;;  %v8658_v9 = vld [vmem:[%s15475_s4 + $0xf8] sm:$0xff] }
 0xe4d   :  { %10471 = vmatpush3.msk.msra.mxu0 %vm273_vm2, %v8654_v35 }
 0xe4e   :  { %10473 = vmatmul.mubr.msk.f32.vlgmr.msra.gmra.mrb[34].mxu0 %vm269_vm3, %v12391_v58 }
 0xe4f   :  { %10477 = vmatprep.mubr.msk.f32.mxu0 %vm609_vm7, %v8657_v8 }
 0xf21   :  { %v4504_v44 = vpop.f32.mrb[34].mxu0 }
 0xf22   :  { %v4505_v4 = vadd.f32 %v13815_v50, %v4504_v44  ;;  %v10474_v10 = vpop.f32.mrb[35].mxu0  ;;  %v4594_v50 = vld [vmem:[%s15476_s5] sm:$0xff] }
 0xf23   :  { %v8688_v44 = vld [vmem:[%s15478_s7 + $0x80] sm:$0xff] }
 0xf24   :  { %10475 = vmatprep.subr.mxu0 %v4505_v4 }
 0xf25   :  { %10476 = vmatpush3.msra.mxu0 %v4505_v4  ;;  %v8689_v4 = vld [vmem:[%s15478_s7 + $0x88] sm:$0xff] }
 0xf26   :  { %10478 = vmatmul.mubr.msk.f32.vlgmr.msra.gmra.mrb[6].mxu0 %vm609_vm7, %v8658_v9  ;;  %11698 = vmatprep.subr.bf16.mxu0 %v11697_v27 }
 0xf27   :  { %11700 = vmatpush3.bf16.msra.mxu0 %v11697_v27 }
 0xf28   :  { %11702 = vmatprep.subr.bf16.mxu0 %v11701_v32 }
 0xf2b   :  { %11704 = vmatpush3.bf16.msra.mxu0 %v11701_v32  ;;  %v8758_v32 = vld [vmem:[%s15478_s7 + $0x150] sm:$0xff] }
 0xf2c   :  { %11706 = vmatprep.subr.bf16.mxu0 %v11705_v37  ;;  %v11781_v36 = vpack.c.bf16 %v8759_v33, %v8758_v32  ;;  %v8903_v32 = vld [vmem:[%s15478_s7 + $0x318] sm:$0xff]  ;;  %v8904_v33 = vld [vmem:[%s15478_s7 + $0x320] sm:$0xff] }
 0xf2f   :  { %11708 = vmatpush3.bf16.msra.mxu0 %v11705_v37  ;;  %v8762_v37 = vld [vmem:[%s15478_s7 + $0x170] sm:$0xff] }
 0xf30   :  { %10509 = vmatprep.subr.msk.mxu0 %vm273_vm2, %v8670_v43  ;;  %v11789_v40 = vpack.c.bf16 %v8763_v39, %v8762_v37  ;;  %v8907_v37 = vld [vmem:[%s15478_s7 + $0x338] sm:$0xff] }
 0xf33   :  { %10510 = vmatpush3.msk.msra.mxu0 %vm273_vm2, %v8670_v43  ;;  %v8776_v43 = vld [vmem:[%s15478_s7 + $0x188] sm:$0xff] }
 0xf34   :  { %11718 = vmatprep.subr.bf16.mxu0 %v11717_v49 }
 0xff9   :  { %v10479_v58 = vpop.f32.mrb[6].mxu0 }
 0xffa   :  { %v4583_v1 = vpop.f32.mrb[7].mxu0  ;;  %v4602_v52 = vsel %vm4598_vm8, %v10479_v58, 0.0 }
 0xffb   :  { %4603 = vadd.xlane.f32.xlu1 %v4602_v52  ;;  %v4599_v17 = vsel %vm4598_vm8, %v4583_v1, 0.0  ;;  %v8690_v52 = vld [vmem:[%s15478_s7 + $0x90] sm:$0xff] }
 0xffc   :  { %4600 = vadd.xlane.f32.xlu0 %v4599_v17  ;;  %v8691_v17 = vld [vmem:[%s15478_s7 + $0x98] sm:$0xff] }
0x100c   :  { %4628 = vperm.xlu1 %12037, %v4594_v50   ;;  %v11725_v50 = vpack.c.bf16 %v8691_v17, %v8690_v52  ;;  %v8674_v17 = vld [vmem:[%s15479_s8 + $0x20] sm:$0xff] }
0x1010   :  { %4633 = vperm.xlu1 %12037, %v4595_v12   ;;  %v8692_v12 = vld [vmem:[%s15478_s7 + $0xa0] sm:$0x3] }
0x1012   :  { %4645 = vperm.xlu0 %12036, %v4597_v13   ;;  %v8704_v13 = vld [vmem:[%s15478_s7 + $0xa8] sm:$0xff] }
0x1088   :  { %v4604_v14 = vpop.xlane.xlu1 %4603 }
0x1089   :  { %v4607_v63 = vmul.f32 0.02, %v4604_v14  ;;  %v4601_v15 = vpop.xlane.xlu0 %4600  ;;  %v8705_v14 = vld [vmem:[%s15478_s7 + $0xb0] sm:$0xff] }
0x108a   :  { %v4606_v38 = vmul.f32 0.02, %v4601_v15  ;;  %v8707_v15 = vld [vmem:[%s15478_s7 + $0xc0] sm:$0xff] }
0x108b   :  { %v4609_v16 = vsub.f32 %v10479_v58, %v4607_v63  ;;  %v11721_v58 = vpack.c.bf16 %v8689_v4, %v8688_v44  ;;  %v8706_v63 = vld [vmem:[%s15478_s7 + $0xb8] sm:$0xff] }
0x108c   :  { %v14685_v18 = vsub.f32 %v4583_v1, %v4606_v38  ;;  %v4629_v51 = vpop.permute.xlu1 %4628  ;;  %v11733_v38 = vpack.c.bf16 %v8705_v14, %v8704_v13  ;;  %v8849_v13 = vld [vmem:[%s15478_s7 + $0x270] sm:$0xff]  ;;  %v8850_v14 = vld [vmem:[%s15478_s7 + $0x278] sm:$0xff] }
0x108d   :  { %v4611_v19 = vmul.f32 %v4609_v16, %v4609_v16 }
0x108e   :  { %v4610_v21 = vmul.f32 %v14685_v18, %v14685_v18 }
0x108f   :  { %v4615_v20 = vsel %vm4598_vm8, %v4611_v19, 0.0  ;;  %v8709_v19 = vld [vmem:[%s15478_s7 + $0xd0] sm:$0xff] }
0x1090   :  { %4616 = vadd.xlane.f32.xlu1 %v4615_v20  ;;  %v4612_v62 = vsel %vm4598_vm8, %v4610_v21, 0.0  ;;  %v4634_v53 = vpop.permute.xlu1 %4633  ;;  %v8710_v21 = vld [vmem:[%s15478_s7 + $0xd8] sm:$0x3] }
0x1091   :  { %v4646_v11 = vpop.permute.xlu0 %4645 }
0x1094   :  { %4613 = vadd.xlane.f32.xlu1 %v4612_v62  ;;  %v8740_v62 = vld [vmem:[%s15478_s7 + $0x118] sm:$0xff] }
0x10a5   :  { %4640 = vperm.xlu1 %12037, %v4596_v22   ;;  %v8741_v22 = vld [vmem:[%s15478_s7 + $0x120] sm:$0xff] }
0x10a6   :  { %v11765_v27 = vpack.c.bf16 %v8741_v22, %v8740_v62  ;;  %v8885_v62 = vld [vmem:[%s15478_s7 + $0x2e0] sm:$0xff]  ;;  %v8886_v22 = vld [vmem:[%s15478_s7 + $0x2e8] sm:$0xff] }
0x111d   :  { %v4617_v54 = vpop.xlane.xlu1 %4616 }
0x111e   :  { %v4619_v2 = vmul.f32 0.02, %v4617_v54  ;;  %v8781_v54 = vld [vmem:[%s15478_s7 + $0x1b0] sm:$0xff] }
0x1120   :  { %v4621_v55 = vadd.f32 1e-05, %v4619_v2 }
0x1121   :  { %v4614_v25 = vpop.xlane.xlu1 %4613 }
0x1122   :  { %12038 = vrsqrt.f32 %v4621_v55  ;;  %v4618_v56 = vmul.f32 0.02, %v4614_v25  ;;  %v8782_v55 = vld [vmem:[%s15478_s7 + $0x1b8] sm:$0x3] }
0x1123   :  { %v8812_v25 = vld [vmem:[%s15478_s7 + $0x1f8] sm:$0xff] }
0x1124   :  { %v4620_v46 = vadd.f32 1e-05, %v4618_v56  ;;  %v8813_v56 = vld [vmem:[%s15478_s7 + $0x200] sm:$0xff] }
0x1125   :  { %v4641_v6 = vpop.permute.xlu1 %4640 }
0x1126   :  { %12040 = vrsqrt.f32 %v4620_v46  ;;  %v8814_v46 = vld [vmem:[%s15478_s7 + $0x208] sm:$0xff] }
0x112c   :  { %v12039_v57 = vpop.eup %12038 }
0x112d   :  { %v4625_v59 = vmul.f32 %v12039_v57, %v4609_v16  ;;  %v11737_v16 = vpack.c.bf16 %v8707_v15, %v8706_v63  ;;  %v8815_v57 = vld [vmem:[%s15478_s7 + $0x210] sm:$0xff]  ;;  %v8851_v63 = vld [vmem:[%s15478_s7 + $0x280] sm:$0xff] }
0x112f   :  { %v4637_v60 = vmul.f32 %v4634_v53, %v4625_v59  ;;  %v8780_v53 = vld [vmem:[%s15478_s7 + $0x1a8] sm:$0xff]  ;;  %v11829_v59 = vpack.c.bf16 %v8813_v56, %v8812_v25 }
0x1130   :  { %v12041_v61 = vpop.eup %12040  ;;  %v11805_v2 = vpack.c.bf16 %v8781_v54, %v8780_v53  ;;  %v8925_v53 = vld [vmem:[%s15478_s7 + $0x370] sm:$0xff] }
0x1131   :  { %v4624_v0 = vmul.f32 %v12041_v61, %v14685_v18  ;;  %v4649_v3 = vadd.f32 %v4646_v11, %v4637_v60  ;;  %v8708_v18 = vld [vmem:[%s15478_s7 + $0xc8] sm:$0xff]  ;;  %v11833_v60 = vpack.c.bf16 %v8815_v57, %v8814_v46  ;;  %v8816_v61 = vld [vmem:[%s15478_s7 + $0x218] sm:$0xff]  ;;  %v8817_v11 = vld [vmem:[%s15478_s7 + $0x220] sm:$0xff] }
0x1132   :  { %v11741_v20 = vpack.c.bf16 %v8709_v19, %v8708_v18  ;;  %v8853_v18 = vld [vmem:[%s15478_s7 + $0x290] sm:$0xff] }
0x1133   :  { %v4636_v5 = vmul.f32 %v4629_v51, %v4624_v0  ;;  %v4653_v8 = vmul.f32 0.2, %v4649_v3  ;;  %vm4651_vm9 = vcmp.ge.f32.partialorder %v4649_v3, 0.0  ;;  %v11801_v51 = vpack.c.bf16 %v8779_v48, %v8778_v47  ;;  %v8923_v47 = vld [vmem:[%s15478_s7 + $0x360] sm:$0xff] }
0x1134   :  { %v11837_v0 = vpack.c.bf16 %v8817_v11, %v8816_v61  ;;  %v8676_v61 = vld [vmem:[%s15479_s8 + $0x30] sm:$0xff]  ;;  %v8677_v11 = vld [vmem:[%s15479_s8 + $0x38] sm:$0xff] }
0x1135   :  { %v4648_v35 = vadd.f32 %v4641_v6, %v4636_v5  ;;  %v14755_v1 = vsel %vm4651_vm9, %v4649_v3, %v4653_v8  ;;  %v8818_v3 = vld [vmem:[%s15478_s7 + $0x228] sm:$0x3]  ;;  %v8830_v5 = vld [vmem:[%s15478_s7 + $0x230] sm:$0xff]  ;;  %v8831_v6 = vld [vmem:[%s15478_s7 + $0x238] sm:$0xff] }
0x1136   :  { %v8833_v8 = vld [vmem:[%s15478_s7 + $0x248] sm:$0xff]  ;;  %v11845_v44 = vpack.c.bf16 %v8831_v6, %v8830_v5  ;;  %v4749_v6 = vld [vmem:[%s15479_s8 + $0x10] sm:$0xff] }
0x1137   :  { %vm4650_vm10 = vcmp.ge.f32.partialorder %v4648_v35, 0.0  ;;  %v4652_v10 = vmul.f32 0.2, %v4648_v35 }
0x1139   :  { %v14753_v9 = vsel %vm4650_vm10, %v4648_v35, %v4652_v10  ;;  %v8832_v35 = vld [vmem:[%s15478_s7 + $0x240] sm:$0xff]  ;;  %v8834_v10 = vld [vmem:[%s15478_s7 + $0x250] sm:$0xff] }
0x113a   :  { %10494 = vmatprep.mubr.msk.f32.mxu1 %vm4598_vm8, %v14753_v9  ;;  %10511 = vmatprep.mubr.msk.f32.mxu0 %vm4598_vm8, %v14753_v9  ;;  %v11849_v4 = vpack.c.bf16 %v8833_v8, %v8832_v35 }
0x113b   :  { %10495 = vmatmul.mubr.msk.f32.vlgmr.msra.gmra.mrb[34].mxu1 %vm4598_vm8, %v14755_v1  ;;  %10512 = vmatmul.mubr.msk.f32.vlgmr.msra.gmra.mrb[36].mxu0 %vm4598_vm8, %v14755_v1 }
0x113c   :  { %11720 = vmatpush3.bf16.msra.mxu0 %v11717_v49  ;;  %10548 = vmatprep.mubr.msk.f32.mxu0 %vm4598_vm8, %v14753_v9  ;;  %v11797_v49 = vpack.c.bf16 %v8777_v45, %v8776_v43  ;;  %v8921_v43 = vld [vmem:[%s15478_s7 + $0x350] sm:$0xff]  ;;  %v8922_v45 = vld [vmem:[%s15478_s7 + $0x358] sm:$0xff] }
0x113d   :  { %11722 = vmatprep.subr.bf16.mxu0 %v11721_v58  ;;  %10518 = vmatprep.mubr.msk.f32.mxu1 %vm4842_vm11, %v8674_v17  ;;  %v8714_v17 = vld [vmem:[%s15479_s8 + $0x60] sm:$0xff] }
0x1140   :  { %11724 = vmatpush3.bf16.msra.mxu0 %v11721_v58  ;;  %v8835_v58 = vld [vmem:[%s15478_s7 + $0x258] sm:$0xff] }
0x1141   :  { %11726 = vmatprep.subr.bf16.mxu0 %v11725_v50  ;;  %v11853_v52 = vpack.c.bf16 %v8835_v58, %v8834_v10  ;;  %v8697_v10 = vld [vmem:[%s15479_s8 + $0x48] sm:$0xff]  ;;  %v8698_v58 = vld [vmem:[%s15479_s8 + $0x50] sm:$0xff] }
0x1144   :  { %11728 = vmatpush3.bf16.msra.mxu0 %v11725_v50  ;;  %v8836_v50 = vld [vmem:[%s15478_s7 + $0x260] sm:$0x3] }
0x1145   :  { %10546 = vmatprep.subr.msk.mxu0 %vm273_vm2, %v8692_v12 }
0x1148   :  { %10547 = vmatpush3.msk.msra.mxu0 %vm273_vm2, %v8692_v12  ;;  %v8848_v12 = vld [vmem:[%s15478_s7 + $0x268] sm:$0xff] }
0x1149   :  { %10549 = vmatmul.mubr.msk.f32.vlgmr.msra.gmra.mrb[38].mxu0 %vm4598_vm8, %v14755_v1  ;;  %11734 = vmatprep.subr.bf16.mxu0 %v11733_v38  ;;  %v11861_v15 = vpack.c.bf16 %v8849_v13, %v8848_v12  ;;  %v8723_v12 = vld [vmem:[%s15478_s7 + $0xe8] sm:$0xff] }
0x114a   :  { %11736 = vmatpush3.bf16.msra.mxu0 %v11733_v38  ;;  %10575 = vmatprep.mubr.msk.f32.mxu0 %vm4598_vm8, %v14753_v9  ;;  %v11865_v38 = vpack.c.bf16 %v8851_v63, %v8850_v14 }
0x114b   :  { %11738 = vmatprep.subr.bf16.mxu0 %v11737_v16 }
0x114e   :  { %11740 = vmatpush3.bf16.msra.mxu0 %v11737_v16  ;;  %v8852_v16 = vld [vmem:[%s15478_s7 + $0x288] sm:$0xff] }
0x114f   :  { %11742 = vmatprep.subr.bf16.mxu0 %v11741_v20  ;;  %v11869_v19 = vpack.c.bf16 %v8853_v18, %v8852_v16  ;;  %v8725_v16 = vld [vmem:[%s15478_s7 + $0xf8] sm:$0xff]  ;;  %v8715_v18 = vld [vmem:[%s15479_s8 + $0x68] sm:$0xff] }
0x1152   :  { %11744 = vmatpush3.bf16.msra.mxu0 %v11741_v20  ;;  %v8854_v20 = vld [vmem:[%s15478_s7 + $0x298] sm:$0x3] }
0x1153   :  { %10573 = vmatprep.subr.msk.mxu0 %vm273_vm2, %v8710_v21 }
0x1156   :  { %10574 = vmatpush3.msk.msra.mxu0 %vm273_vm2, %v8710_v21  ;;  %v8884_v21 = vld [vmem:[%s15478_s7 + $0x2d8] sm:$0xff] }
0x1157   :  { %10576 = vmatmul.mubr.msk.f32.vlgmr.msra.gmra.mrb[40].mxu0 %vm4598_vm8, %v14755_v1  ;;  %11766 = vmatprep.subr.bf16.mxu0 %v11765_v27  ;;  %v11893_v26 = vpack.c.bf16 %v8885_v62, %v8884_v21  ;;  %v8726_v21 = vld [vmem:[%s15478_s7 + $0x100] sm:$0xff]  ;;  %v8727_v62 = vld [vmem:[%s15478_s7 + $0x108] sm:$0xff] }
0x1158   :  { %11768 = vmatpush3.bf16.msra.mxu0 %v11765_v27  ;;  %10629 = vmatprep.mubr.msk.f32.mxu0 %vm4598_vm8, %v14753_v9  ;;  %v11897_v27 = vpack.c.bf16 %v8887_v24, %v8886_v22  ;;  %v8717_v22 = vld [vmem:[%s15479_s8 + $0x78] sm:$0xff]  ;;  %v11757_v24 = vpack.c.bf16 %v8727_v62, %v8726_v21 }
0x1159   :  { %11770 = vmatprep.subr.bf16.mxu0 %v11769_v28 }
0x115c   :  { %11772 = vmatpush3.bf16.msra.mxu0 %v11769_v28  ;;  %v8888_v28 = vld [vmem:[%s15478_s7 + $0x2f8] sm:$0xff] }
0x115d   :  { %11774 = vmatprep.subr.bf16.mxu0 %v11773_v30  ;;  %v11901_v29 = vpack.c.bf16 %v8889_v7, %v8888_v28  ;;  %v8728_v28 = vld [vmem:[%s15478_s7 + $0x110] sm:$0x3] }
0x1160   :  { %11776 = vmatpush3.bf16.msra.mxu0 %v11773_v30  ;;  %v8890_v30 = vld [vmem:[%s15478_s7 + $0x308] sm:$0x3] }
0x1161   :  { %10627 = vmatprep.subr.msk.mxu0 %vm273_vm2, %v8746_v31 }
0x1164   :  { %10628 = vmatpush3.msk.msra.mxu0 %vm273_vm2, %v8746_v31  ;;  %v8902_v31 = vld [vmem:[%s15478_s7 + $0x310] sm:$0xff] }
0x1165   :  { %10630 = vmatmul.mubr.msk.f32.vlgmr.msra.gmra.mrb[42].mxu0 %vm4598_vm8, %v14755_v1  ;;  %11782 = vmatprep.subr.bf16.mxu0 %v11781_v36  ;;  %v11909_v34 = vpack.c.bf16 %v8903_v32, %v8902_v31 }
0x1166   :  { %11784 = vmatpush3.bf16.msra.mxu0 %v11781_v36  ;;  %10656 = vmatprep.mubr.msk.f32.mxu0 %vm4598_vm8, %v14753_v9  ;;  %v11913_v36 = vpack.c.bf16 %v8905_v23, %v8904_v33 }
0x1167   :  { %11786 = vmatprep.subr.bf16.mxu0 %v11785_v41 }
0x116a   :  { %11788 = vmatpush3.bf16.msra.mxu0 %v11785_v41  ;;  %v8906_v41 = vld [vmem:[%s15478_s7 + $0x330] sm:$0xff] }
0x116b   :  { %11790 = vmatprep.subr.bf16.mxu0 %v11789_v40  ;;  %v11917_v39 = vpack.c.bf16 %v8907_v37, %v8906_v41 }
0x116e   :  { %11792 = vmatpush3.bf16.msra.mxu0 %v11789_v40  ;;  %v8908_v40 = vld [vmem:[%s15478_s7 + $0x340] sm:$0x3] }
0x116f   :  { %10654 = vmatprep.subr.msk.mxu0 %vm273_vm2, %v8764_v42 }
0x1172   :  { %10655 = vmatpush3.msk.msra.mxu0 %vm273_vm2, %v8764_v42  ;;  %v8920_v42 = vld [vmem:[%s15478_s7 + $0x348] sm:$0xff] }
0x1173   :  { %10657 = vmatmul.mubr.msk.f32.vlgmr.msra.gmra.mrb[44].mxu0 %vm4598_vm8, %v14755_v1  ;;  %11798 = vmatprep.subr.bf16.mxu0 %v11797_v49  ;;  %v11925_v48 = vpack.c.bf16 %v8921_v43, %v8920_v42 }
0x1174   :  { %11800 = vmatpush3.bf16.msra.mxu0 %v11797_v49  ;;  %10683 = vmatprep.mubr.msk.f32.mxu0 %vm4598_vm8, %v14753_v9  ;;  %v11929_v49 = vpack.c.bf16 %v8923_v47, %v8922_v45 }
0x1175   :  { %11802 = vmatprep.subr.bf16.mxu0 %v11801_v51 }
0x1178   :  { %11804 = vmatpush3.bf16.msra.mxu0 %v11801_v51  ;;  %v8924_v51 = vld [vmem:[%s15478_s7 + $0x368] sm:$0xff] }
0x1179   :  { %11806 = vmatprep.subr.bf16.mxu0 %v11805_v2  ;;  %v11933_v54 = vpack.c.bf16 %v8925_v53, %v8924_v51  ;;  %v8732_v51 = vld [vmem:[%s15479_s8 + $0x80] sm:$0xff] }
0x117c   :  { %11808 = vmatpush3.bf16.msra.mxu0 %v11805_v2  ;;  %v8926_v2 = vld [vmem:[%s15478_s7 + $0x378] sm:$0x3] }
0x117d   :  { %10681 = vmatprep.subr.msk.mxu0 %vm273_vm2, %v8782_v55 }
0x1180   :  { %10682 = vmatpush3.msk.msra.mxu0 %vm273_vm2, %v8782_v55 }
0x1181   :  { %10684 = vmatmul.mubr.msk.f32.vlgmr.msra.gmra.mrb[46].mxu0 %vm4598_vm8, %v14755_v1  ;;  %11830 = vmatprep.subr.bf16.mxu0 %v11829_v59 }
0x1182   :  { %11832 = vmatpush3.bf16.msra.mxu0 %v11829_v59  ;;  %10737 = vmatprep.mubr.msk.f32.mxu0 %vm4598_vm8, %v14753_v9 }
0x1183   :  { %11834 = vmatprep.subr.bf16.mxu0 %v11833_v60 }
0x1186   :  { %11836 = vmatpush3.bf16.msra.mxu0 %v11833_v60  ;;  %v8675_v60 = vld [vmem:[%s15479_s8 + $0x28] sm:$0xff] }
0x1187   :  { %11838 = vmatprep.subr.bf16.mxu0 %v11837_v0 }
0x118a   :  { %11840 = vmatpush3.bf16.msra.mxu0 %v11837_v0  ;;  %v4747_v0 = vld [vmem:[%s15479_s8] sm:$0xff] }
0x118b   :  { %10735 = vmatprep.subr.msk.mxu0 %vm273_vm2, %v8818_v3 }
0x118e   :  { %10736 = vmatpush3.msk.msra.mxu0 %vm273_vm2, %v8818_v3  ;;  %v4748_v3 = vld [vmem:[%s15479_s8 + $0x8] sm:$0xff] }
0x118f   :  { %10738 = vmatmul.mubr.msk.f32.vlgmr.msra.gmra.mrb[48].mxu0 %vm4598_vm8, %v14755_v1  ;;  %11846 = vmatprep.subr.bf16.mxu0 %v11845_v44 }
0x1190   :  { %11848 = vmatpush3.bf16.msra.mxu0 %v11845_v44  ;;  %10764 = vmatprep.mubr.msk.f32.mxu0 %vm4598_vm8, %v14753_v9  ;;  %v4750_v44 = vld [vmem:[%s15479_s8 + $0x18] sm:$0xff] }
0x1191   :  { %11850 = vmatprep.subr.bf16.mxu0 %v11849_v4 }
0x1194   :  { %11852 = vmatpush3.bf16.msra.mxu0 %v11849_v4  ;;  %v8696_v4 = vld [vmem:[%s15479_s8 + $0x40] sm:$0xff] }
0x1195   :  { %11854 = vmatprep.subr.bf16.mxu0 %v11853_v52 }
0x1198   :  { %11856 = vmatpush3.bf16.msra.mxu0 %v11853_v52  ;;  %v8699_v52 = vld [vmem:[%s15479_s8 + $0x58] sm:$0xff] }
0x1199   :  { %10762 = vmatprep.subr.msk.mxu0 %vm273_vm2, %v8836_v50 }
0x119c   :  { %10763 = vmatpush3.msk.msra.mxu0 %vm273_vm2, %v8836_v50  ;;  %v8722_v50 = vld [vmem:[%s15478_s7 + $0xe0] sm:$0xff] }
0x119d   :  { %10765 = vmatmul.mubr.msk.f32.vlgmr.msra.gmra.mrb[50].mxu0 %vm4598_vm8, %v14755_v1  ;;  %11862 = vmatprep.subr.bf16.mxu0 %v11861_v15 }
0x119e   :  { %11864 = vmatpush3.bf16.msra.mxu0 %v11861_v15  ;;  %10791 = vmatprep.mubr.msk.f32.mxu0 %vm4598_vm8, %v14753_v9  ;;  %v11749_v15 = vpack.c.bf16 %v8723_v12, %v8722_v50  ;;  %v8796_v50 = vld [vmem:[%s15478_s7 + $0x1d0] sm:$0xff]  ;;  %v8797_v12 = vld [vmem:[%s15478_s7 + $0x1d8] sm:$0xff] }
0x119f   :  { %11866 = vmatprep.subr.bf16.mxu0 %v11865_v38 }
0x11a2   :  { %11868 = vmatpush3.bf16.msra.mxu0 %v11865_v38  ;;  %v8724_v38 = vld [vmem:[%s15478_s7 + $0xf0] sm:$0xff] }
0x11a3   :  { %11870 = vmatprep.subr.bf16.mxu0 %v11869_v19 }
0x11a6   :  { %11872 = vmatpush3.bf16.msra.mxu0 %v11869_v19  ;;  %v8716_v19 = vld [vmem:[%s15479_s8 + $0x70] sm:$0xff] }
0x11a7   :  { %10789 = vmatprep.subr.msk.mxu0 %vm273_vm2, %v8854_v20 }
0x11aa   :  { %10790 = vmatpush3.msk.msra.mxu0 %vm273_vm2, %v8854_v20  ;;  %v11753_v20 = vpack.c.bf16 %v8725_v16, %v8724_v38  ;;  %v8799_v38 = vld [vmem:[%s15478_s7 + $0x1e8] sm:$0xff]  ;;  %v8789_v16 = vld [vmem:[%s15479_s8 + $0xf8] sm:$0xff] }
0x11ab   :  { %10792 = vmatmul.mubr.msk.f32.vlgmr.msra.gmra.mrb[52].mxu0 %vm4598_vm8, %v14755_v1  ;;  %11894 = vmatprep.subr.bf16.mxu0 %v11893_v26 }
0x11ac   :  { %11896 = vmatpush3.bf16.msra.mxu0 %v11893_v26  ;;  %10845 = vmatprep.mubr.msk.f32.mxu0 %vm4598_vm8, %v14753_v9 }
0x11ad   :  { %11898 = vmatprep.subr.bf16.mxu0 %v11897_v27 }
0x11b0   :  { %11900 = vmatpush3.bf16.msra.mxu0 %v11897_v27 }
0x11b1   :  { %11902 = vmatprep.subr.bf16.mxu0 %v11901_v29 }
0x11b4   :  { %11904 = vmatpush3.bf16.msra.mxu0 %v11901_v29 }
0x11b5   :  { %10843 = vmatprep.subr.msk.mxu0 %vm273_vm2, %v8890_v30 }
0x11b8   :  { %10844 = vmatpush3.msk.msra.mxu0 %vm273_vm2, %v8890_v30 }
0x11b9   :  { %10846 = vmatmul.mubr.msk.f32.vlgmr.msra.gmra.mrb[54].mxu0 %vm4598_vm8, %v14755_v1  ;;  %11910 = vmatprep.subr.bf16.mxu0 %v11909_v34 }
0x11ba   :  { %11912 = vmatpush3.bf16.msra.mxu0 %v11909_v34  ;;  %10872 = vmatprep.mubr.msk.f32.mxu0 %vm4598_vm8, %v14753_v9 }
0x11bb   :  { %11914 = vmatprep.subr.bf16.mxu0 %v11913_v36 }
0x11be   :  { %11916 = vmatpush3.bf16.msra.mxu0 %v11913_v36 }
0x11bf   :  { %11918 = vmatprep.subr.bf16.mxu0 %v11917_v39 }
0x11c2   :  { %11920 = vmatpush3.bf16.msra.mxu0 %v11917_v39 }
0x11c3   :  { %10870 = vmatprep.subr.msk.mxu0 %vm273_vm2, %v8908_v40 }
0x11c6   :  { %10871 = vmatpush3.msk.msra.mxu0 %vm273_vm2, %v8908_v40 }
0x11c7   :  { %10873 = vmatmul.mubr.msk.f32.vlgmr.msra.gmra.mrb[56].mxu0 %vm4598_vm8, %v14755_v1  ;;  %11926 = vmatprep.subr.bf16.mxu0 %v11925_v48 }
0x11c8   :  { %11928 = vmatpush3.bf16.msra.mxu0 %v11925_v48  ;;  %10899 = vmatprep.mubr.msk.f32.mxu0 %vm4598_vm8, %v14753_v9 }
0x11c9   :  { %11930 = vmatprep.subr.bf16.mxu0 %v11929_v49 }
0x11cc   :  { %11932 = vmatpush3.bf16.msra.mxu0 %v11929_v49 }
0x11cd   :  { %11934 = vmatprep.subr.bf16.mxu0 %v11933_v54 }
0x11d0   :  { %11936 = vmatpush3.bf16.msra.mxu0 %v11933_v54 }
0x11d1   :  { %10897 = vmatprep.subr.msk.mxu0 %vm273_vm2, %v8926_v2 }
0x11d4   :  { %10898 = vmatpush3.msk.msra.mxu0 %vm273_vm2, %v8926_v2 }
0x11d5   :  { %10900 = vmatmul.mubr.msk.f32.vlgmr.msra.gmra.mrb[58].mxu0 %vm4598_vm8, %v14755_v1 }
0x120e   :  { %v10496_v55 = vpop.f32.mrb[34].mxu1  ;;  %v10513_v25 = vpop.f32.mrb[36].mxu0 }
0x120f   :  { %v4738_v56 = vpop.f32.mrb[35].mxu1  ;;  %v4828_v46 = vpop.f32.mrb[37].mxu0 }
0x1210   :  { %v11713_v57 = vpack.c.bf16 %v10496_v55, %v4738_v56  ;;  %v11709_v59 = vpack.c.bf16 %v10513_v25, %v4828_v46 }
0x1212   :  { %11710 = vmatprep.subr.bf16.mxu1 %v11709_v59 }
0x1213   :  { %11712 = vmatpush3.bf16.msra.mxu1 %v11709_v59 }
0x1214   :  { %11714 = vmatprep.subr.bf16.mxu1 %v11713_v57 }
0x1216   :  { %10519 = vmatmul.mubr.msk.f32.vlgmr.msra.gmra.mrb[36].mxu1 %vm4842_vm11, %v8675_v60  ;;  %v8733_v60 = vld [vmem:[%s15479_s8 + $0x88] sm:$0xff] }
0x1217   :  { %11716 = vmatpush3.bf16.msra.mxu1 %v11713_v57  ;;  %10521 = vmatprep.mubr.msk.f32.mxu1 %vm4842_vm11, %v8676_v61  ;;  %v8734_v61 = vld [vmem:[%s15479_s8 + $0x90] sm:$0xff] }
0x121a   :  { %10522 = vmatmul.mubr.msk.f32.gmra.mrb[38].mxu1 %vm4842_vm11, %v8677_v11  ;;  %v8735_v11 = vld [vmem:[%s15479_s8 + $0x98] sm:$0xff] }
0x121b   :  { %10528 = vmatprep.mubr.msk.f32.mxu1 %vm4842_vm11, %v4747_v0  ;;  %v8750_v0 = vld [vmem:[%s15479_s8 + $0xa0] sm:$0xff] }
0x121c   :  { %v10550_v5 = vpop.f32.mrb[38].mxu0 }
0x121d   :  { %v5114_v35 = vpop.f32.mrb[39].mxu0 }
0x121e   :  { %v11729_v8 = vpack.c.bf16 %v10550_v5, %v5114_v35  ;;  %10529 = vmatmul.mubr.msk.f32.vlgmr.msra.gmra.mrb[36].mxu1 %vm4842_vm11, %v4748_v3  ;;  %v8751_v3 = vld [vmem:[%s15479_s8 + $0xa8] sm:$0xff]  ;;  %v8752_v5 = vld [vmem:[%s15479_s8 + $0xb0] sm:$0xff]  ;;  %v8768_v35 = vld [vmem:[%s15479_s8 + $0xc0] sm:$0xff] }
0x121f   :  { %10531 = vmatprep.mubr.msk.f32.mxu1 %vm4842_vm11, %v4749_v6  ;;  %v8753_v6 = vld [vmem:[%s15479_s8 + $0xb8] sm:$0xff] }
0x1220   :  { %11730 = vmatprep.subr.bf16.mxu1 %v11729_v8 }
0x1221   :  { %11732 = vmatpush3.bf16.msra.mxu1 %v11729_v8  ;;  %v8794_v8 = vld [vmem:[%s15478_s7 + $0x1c0] sm:$0xff] }
0x1222   :  { %10532 = vmatmul.mubr.msk.f32.gmra.mrb[38].mxu1 %vm4842_vm11, %v4750_v44  ;;  %v8795_v44 = vld [vmem:[%s15478_s7 + $0x1c8] sm:$0xff] }
0x1223   :  { %10555 = vmatprep.mubr.msk.f32.mxu1 %vm4842_vm11, %v8696_v4  ;;  %v8769_v4 = vld [vmem:[%s15479_s8 + $0xc8] sm:$0xff] }
0x1226   :  { %10556 = vmatmul.mubr.msk.f32.vlgmr.msra.gmra.mrb[36].mxu1 %vm4842_vm11, %v8697_v10  ;;  %v8770_v10 = vld [vmem:[%s15479_s8 + $0xd0] sm:$0xff] }
0x1227   :  { %10558 = vmatprep.mubr.msk.f32.mxu1 %vm4842_vm11, %v8698_v58  ;;  %v11813_v58 = vpack.c.bf16 %v8795_v44, %v8794_v8  ;;  %v8933_v8 = vld [vmem:[%s15479_s8 + $0x1f8] sm:$0xff] }
0x122a   :  { %v10577_v13 = vpop.f32.mrb[40].mxu0  ;;  %10559 = vmatmul.mubr.msk.f32.gmra.mrb[38].mxu1 %vm4842_vm11, %v8699_v52  ;;  %v8771_v52 = vld [vmem:[%s15479_s8 + $0xd8] sm:$0xff] }
0x122b   :  { %v5306_v14 = vpop.f32.mrb[41].mxu0  ;;  %10582 = vmatprep.mubr.msk.f32.mxu1 %vm4842_vm11, %v8714_v17  ;;  %v8786_v17 = vld [vmem:[%s15479_s8 + $0xe0] sm:$0xff] }
0x122c   :  { %v11745_v63 = vpack.c.bf16 %v10577_v13, %v5306_v14  ;;  %v8787_v13 = vld [vmem:[%s15479_s8 + $0xe8] sm:$0xff]  ;;  %v8788_v14 = vld [vmem:[%s15479_s8 + $0xf0] sm:$0xff] }
0x122e   :  { %11746 = vmatprep.subr.bf16.mxu1 %v11745_v63 }
0x122f   :  { %11748 = vmatpush3.bf16.msra.mxu1 %v11745_v63  ;;  %v11817_v63 = vpack.c.bf16 %v8797_v12, %v8796_v50 }
0x1230   :  { %11750 = vmatprep.subr.bf16.mxu1 %v11749_v15 }
0x1232   :  { %10583 = vmatmul.mubr.msk.f32.vlgmr.msra.gmra.mrb[36].mxu1 %vm4842_vm11, %v8715_v18 }
0x1233   :  { %11752 = vmatpush3.bf16.msra.mxu1 %v11749_v15  ;;  %10585 = vmatprep.mubr.msk.f32.mxu1 %vm4842_vm11, %v8716_v19  ;;  %v8798_v15 = vld [vmem:[%s15478_s7 + $0x1e0] sm:$0xff]  ;;  %v8800_v19 = vld [vmem:[%s15478_s7 + $0x1f0] sm:$0x3] }
0x1234   :  { %11754 = vmatprep.subr.bf16.mxu1 %v11753_v20  ;;  %v11821_v18 = vpack.c.bf16 %v8799_v38, %v8798_v15  ;;  %v7728_v15 = vld [vmem:[%s15480_s9 + $0x18] sm:$0xff]  ;;  %v7727_v38 = vld [vmem:[%s15480_s9 + $0x10] sm:$0xff] }
0x1236   :  { %10586 = vmatmul.mubr.msk.f32.gmra.mrb[38].mxu1 %vm4842_vm11, %v8717_v22 }
0x1237   :  { %11756 = vmatpush3.bf16.msra.mxu1 %v11753_v20  ;;  %10602 = vmatprep.mubr.msk.f32.mxu1 %vm4598_vm8, %v14753_v9  ;;  %v8804_v20 = vld [vmem:[%s15479_s8 + $0x100] sm:$0xff] }
0x1238   :  { %v10631_v26 = vpop.f32.mrb[42].mxu0  ;;  %11758 = vmatprep.subr.bf16.mxu1 %v11757_v24 }
0x1239   :  { %v5690_v27 = vpop.f32.mrb[43].mxu0 }
0x123a   :  { %v11777_v7 = vpack.c.bf16 %v10631_v26, %v5690_v27  ;;  %v8806_v26 = vld [vmem:[%s15479_s8 + $0x110] sm:$0xff]  ;;  %v8807_v27 = vld [vmem:[%s15479_s8 + $0x118] sm:$0xff] }
0x123b   :  { %11760 = vmatpush3.bf16.msra.mxu1 %v11757_v24  ;;  %v8805_v24 = vld [vmem:[%s15479_s8 + $0x108] sm:$0xff] }
0x123c   :  { %10600 = vmatprep.subr.msk.mxu1 %vm273_vm2, %v8728_v28 }
0x123f   :  { %10601 = vmatpush3.msk.msra.mxu1 %vm273_vm2, %v8728_v28  ;;  %v8822_v28 = vld [vmem:[%s15479_s8 + $0x120] sm:$0xff] }
0x1240   :  { %10603 = vmatmul.mubr.msk.f32.vlgmr.msra.gmra.mrb[40].mxu1 %vm4598_vm8, %v14755_v1 }
0x1241   :  { %10609 = vmatprep.mubr.msk.f32.mxu1 %vm4842_vm11, %v8732_v51  ;;  %v8861_v51 = vld [vmem:[%s15479_s8 + $0x178] sm:$0xff] }
0x1246   :  { %v10658_v29 = vpop.f32.mrb[44].mxu0 }
0x1247   :  { %v5882_v30 = vpop.f32.mrb[45].mxu0 }
0x1248   :  { %v11793_v31 = vpack.c.bf16 %v10658_v29, %v5882_v30  ;;  %v8824_v29 = vld [vmem:[%s15479_s8 + $0x130] sm:$0xff]  ;;  %v8825_v30 = vld [vmem:[%s15479_s8 + $0x138] sm:$0xff] }
0x1254   :  { %v10685_v32 = vpop.f32.mrb[46].mxu0 }
0x1255   :  { %v6074_v33 = vpop.f32.mrb[47].mxu0 }
0x1256   :  { %v11809_v23 = vpack.c.bf16 %v10685_v32, %v6074_v33  ;;  %v8866_v32 = vld [vmem:[%s15478_s7 + $0x2a0] sm:$0xff]  ;;  %v8867_v33 = vld [vmem:[%s15478_s7 + $0x2a8] sm:$0xff] }
0x1262   :  { %v10739_v34 = vpop.f32.mrb[48].mxu0 }
0x1263   :  { %v6458_v36 = vpop.f32.mrb[49].mxu0 }
0x1264   :  { %v15141_v41 = vpack.c.bf16 %v10739_v34, %v6458_v36  ;;  %v8842_v34 = vld [vmem:[%s15479_s8 + $0x150] sm:$0xff]  ;;  %v11877_v36 = vpack.c.bf16 %v8867_v33, %v8866_v32 }
0x1270   :  { %v10766_v37 = vpop.f32.mrb[50].mxu0 }
0x1271   :  { %v6650_v39 = vpop.f32.mrb[51].mxu0 }
0x1272   :  { %v15143_v40 = vpack.c.bf16 %v10766_v37, %v6650_v39  ;;  %v8858_v37 = vld [vmem:[%s15479_s8 + $0x160] sm:$0xff]  ;;  %v8868_v39 = vld [vmem:[%s15478_s7 + $0x2b0] sm:$0xff] }
0x127e   :  { %v10793_v42 = vpop.f32.mrb[52].mxu0 }
0x127f   :  { %v6842_v43 = vpop.f32.mrb[53].mxu0 }
0x1280   :  { %v15145_v45 = vpack.c.bf16 %v10793_v42, %v6842_v43  ;;  %v8859_v42 = vld [vmem:[%s15479_s8 + $0x168] sm:$0xff]  ;;  %v8860_v43 = vld [vmem:[%s15479_s8 + $0x170] sm:$0xff] }
0x128c   :  { %v10847_v47 = vpop.f32.mrb[54].mxu0 }
0x128d   :  { %v7226_v48 = vpop.f32.mrb[55].mxu0 }
0x128e   :  { %v15147_v49 = vpack.c.bf16 %v10847_v47, %v7226_v48  ;;  %v8870_v47 = vld [vmem:[%s15478_s7 + $0x2c0] sm:$0xff]  ;;  %v8871_v48 = vld [vmem:[%s15478_s7 + $0x2c8] sm:$0xff] }
0x129a   :  { %v10874_v53 = vpop.f32.mrb[56].mxu0 }
0x129b   :  { %v7418_v54 = vpop.f32.mrb[57].mxu0 }
0x129c   :  { %v15153_v2 = vpack.c.bf16 %v10874_v53, %v7418_v54  ;;  %v11885_v53 = vpack.c.bf16 %v8871_v48, %v8870_v47  ;;  %v8872_v54 = vld [vmem:[%s15478_s7 + $0x2d0] sm:$0x3]  ;;  %v7850_v47 = vld [vmem:[%s15482_s11 + $0x18] sm:$0xff] }
0x12a8   :  { %v10901_v55 = vpop.f32.mrb[58].mxu0 }
0x12a9   :  { %v7610_v25 = vpop.f32.mrb[59].mxu0 }
0x12aa   :  { %v15155_v56 = vpack.c.bf16 %v10901_v55, %v7610_v25  ;;  %v8876_v55 = vld [vmem:[%s15479_s8 + $0x180] sm:$0xff] }
0x1313   :  { %v10604_v46 = vpop.f32.mrb[40].mxu1 }
0x1314   :  { %v5498_v57 = vpop.f32.mrb[41].mxu1 }
0x1315   :  { %v11761_v59 = vpack.c.bf16 %v10604_v46, %v5498_v57  ;;  %v8877_v57 = vld [vmem:[%s15479_s8 + $0x188] sm:$0xff] }
0x1317   :  { %11762 = vmatprep.subr.bf16.mxu1 %v11761_v59 }
0x1318   :  { %11764 = vmatpush3.bf16.msra.mxu1 %v11761_v59  ;;  %v8879_v59 = vld [vmem:[%s15479_s8 + $0x198] sm:$0xff] }
0x1319   :  { %11778 = vmatprep.subr.bf16.mxu1 %v11777_v7 }
0x131b   :  { %10610 = vmatmul.mubr.msk.f32.vlgmr.msra.gmra.mrb[36].mxu1 %vm4842_vm11, %v8733_v60  ;;  %v8894_v60 = vld [vmem:[%s15479_s8 + $0x1a0] sm:$0xff] }
0x131c   :  { %11780 = vmatpush3.bf16.msra.mxu1 %v11777_v7  ;;  %10612 = vmatprep.mubr.msk.f32.mxu1 %vm4842_vm11, %v8734_v61  ;;  %v8823_v7 = vld [vmem:[%s15479_s8 + $0x128] sm:$0xff]  ;;  %v8896_v61 = vld [vmem:[%s15479_s8 + $0x1b0] sm:$0xff] }
0x131d   :  { %11794 = vmatprep.subr.bf16.mxu1 %v11793_v31 }
0x131f   :  { %10613 = vmatmul.mubr.msk.f32.gmra.mrb[38].mxu1 %vm4842_vm11, %v8735_v11  ;;  %v8897_v11 = vld [vmem:[%s15479_s8 + $0x1b8] sm:$0xff] }
0x1320   :  { %10636 = vmatprep.mubr.msk.f32.mxu1 %vm4842_vm11, %v8750_v0  ;;  %v8912_v0 = vld [vmem:[%s15479_s8 + $0x1c0] sm:$0xff] }
0x1323   :  { %10637 = vmatmul.mubr.msk.f32.vlgmr.msra.gmra.mrb[36].mxu1 %vm4842_vm11, %v8751_v3  ;;  %v8914_v3 = vld [vmem:[%s15479_s8 + $0x1d0] sm:$0xff] }
0x1324   :  { %11796 = vmatpush3.bf16.msra.mxu1 %v11793_v31  ;;  %10639 = vmatprep.mubr.msk.f32.mxu1 %vm4842_vm11, %v8752_v5  ;;  %v8840_v31 = vld [vmem:[%s15479_s8 + $0x140] sm:$0xff]  ;;  %v8915_v5 = vld [vmem:[%s15479_s8 + $0x1d8] sm:$0xff] }
0x1325   :  { %11810 = vmatprep.subr.bf16.mxu1 %v11809_v23 }
0x1327   :  { %10640 = vmatmul.mubr.msk.f32.gmra.mrb[38].mxu1 %vm4842_vm11, %v8753_v6  ;;  %v8930_v6 = vld [vmem:[%s15479_s8 + $0x1e0] sm:$0xff] }
0x1328   :  { %10663 = vmatprep.mubr.msk.f32.mxu1 %vm4842_vm11, %v8768_v35  ;;  %v8931_v35 = vld [vmem:[%s15479_s8 + $0x1e8] sm:$0xff] }
0x132b   :  { %10664 = vmatmul.mubr.msk.f32.vlgmr.msra.gmra.mrb[36].mxu1 %vm4842_vm11, %v8769_v4 }
0x132c   :  { %11812 = vmatpush3.bf16.msra.mxu1 %v11809_v23  ;;  %10666 = vmatprep.mubr.msk.f32.mxu1 %vm4842_vm11, %v8770_v10  ;;  %v8841_v23 = vld [vmem:[%s15479_s8 + $0x148] sm:$0xff] }
0x132d   :  { %11814 = vmatprep.subr.bf16.mxu1 %v11813_v58 }
0x132f   :  { %10667 = vmatmul.mubr.msk.f32.gmra.mrb[38].mxu1 %vm4842_vm11, %v8771_v52 }
0x1330   :  { %10690 = vmatprep.mubr.msk.f32.mxu1 %vm4842_vm11, %v8786_v17 }
0x1333   :  { %10691 = vmatmul.mubr.msk.f32.vlgmr.msra.gmra.mrb[36].mxu1 %vm4842_vm11, %v8787_v13  ;;  %v7725_v13 = vld [vmem:[%s15480_s9] sm:$0xff] }
0x1334   :  { %11816 = vmatpush3.bf16.msra.mxu1 %v11813_v58  ;;  %10693 = vmatprep.mubr.msk.f32.mxu1 %vm4842_vm11, %v8788_v14  ;;  %v7729_v14 = vld [vmem:[%s15481_s10] sm:$0xff] }
0x1335   :  { %11818 = vmatprep.subr.bf16.mxu1 %v11817_v63 }
0x1337   :  { %10694 = vmatmul.mubr.msk.f32.gmra.mrb[38].mxu1 %vm4842_vm11, %v8789_v16  ;;  %v7732_v16 = vld [vmem:[%s15481_s10 + $0x18] sm:$0xff] }
0x1338   :  { %11820 = vmatpush3.bf16.msra.mxu1 %v11817_v63  ;;  %10710 = vmatprep.mubr.msk.f32.mxu1 %vm4598_vm8, %v14753_v9  ;;  %v7726_v63 = vld [vmem:[%s15480_s9 + $0x8] sm:$0xff] }
0x1339   :  { %11822 = vmatprep.subr.bf16.mxu1 %v11821_v18 }
0x133c   :  { %11824 = vmatpush3.bf16.msra.mxu1 %v11821_v18  ;;  %v7730_v18 = vld [vmem:[%s15481_s10 + $0x8] sm:$0xff] }
0x133d   :  { %10708 = vmatprep.subr.msk.mxu1 %vm273_vm2, %v8800_v19 }
0x1340   :  { %10709 = vmatpush3.msk.msra.mxu1 %vm273_vm2, %v8800_v19  ;;  %v7731_v19 = vld [vmem:[%s15481_s10 + $0x10] sm:$0xff] }
0x1341   :  { %10711 = vmatmul.mubr.msk.f32.vlgmr.msra.gmra.mrb[42].mxu1 %vm4598_vm8, %v14755_v1 }
0x1342   :  { %10717 = vmatprep.mubr.msk.f32.mxu1 %vm4842_vm11, %v8804_v20  ;;  %v7847_v20 = vld [vmem:[%s15482_s11] sm:$0xff] }
0x1414   :  { %v10712_v21 = vpop.f32.mrb[42].mxu1 }
0x1415   :  { %v6266_v62 = vpop.f32.mrb[43].mxu1 }
0x1416   :  { %v11825_v22 = vpack.c.bf16 %v10712_v21, %v6266_v62 }
0x1418   :  { %11826 = vmatprep.subr.bf16.mxu1 %v11825_v22 }
0x1419   :  { %11828 = vmatpush3.bf16.msra.mxu1 %v11825_v22 }
0x141a   :  { %11842 = vmatprep.subr.bf16.mxu1 %v15141_v41 }
0x141c   :  { %10718 = vmatmul.mubr.msk.f32.vlgmr.msra.gmra.mrb[36].mxu1 %vm4842_vm11, %v8805_v24 }
0x141d   :  { %11844 = vmatpush3.bf16.msra.mxu1 %v15141_v41  ;;  %10720 = vmatprep.mubr.msk.f32.mxu1 %vm4842_vm11, %v8806_v26  ;;  %v8843_v41 = vld [vmem:[%s15479_s8 + $0x158] sm:$0xff] }
0x141e   :  { %11858 = vmatprep.subr.bf16.mxu1 %v15143_v40 }
0x1420   :  { %10721 = vmatmul.mubr.msk.f32.gmra.mrb[38].mxu1 %vm4842_vm11, %v8807_v27 }
0x1421   :  { %10744 = vmatprep.mubr.msk.f32.mxu1 %vm4842_vm11, %v8822_v28 }
0x1424   :  { %10745 = vmatmul.mubr.msk.f32.vlgmr.msra.gmra.mrb[36].mxu1 %vm4842_vm11, %v8823_v7 }
0x1425   :  { %11860 = vmatpush3.bf16.msra.mxu1 %v15143_v40  ;;  %10747 = vmatprep.mubr.msk.f32.mxu1 %vm4842_vm11, %v8824_v29  ;;  %v8869_v40 = vld [vmem:[%s15478_s7 + $0x2b8] sm:$0xff] }
0x1426   :  { %11874 = vmatprep.subr.bf16.mxu1 %v15145_v45 }
0x1428   :  { %10748 = vmatmul.mubr.msk.f32.gmra.mrb[38].mxu1 %vm4842_vm11, %v8825_v30 }
0x1429   :  { %10771 = vmatprep.mubr.msk.f32.mxu1 %vm4842_vm11, %v8840_v31 }
0x142c   :  { %10772 = vmatmul.mubr.msk.f32.vlgmr.msra.gmra.mrb[36].mxu1 %vm4842_vm11, %v8841_v23 }
0x142d   :  { %11876 = vmatpush3.bf16.msra.mxu1 %v15145_v45  ;;  %10774 = vmatprep.mubr.msk.f32.mxu1 %vm4842_vm11, %v8842_v34  ;;  %v11881_v45 = vpack.c.bf16 %v8869_v40, %v8868_v39 }
0x142e   :  { %11878 = vmatprep.subr.bf16.mxu1 %v11877_v36 }
0x1430   :  { %10775 = vmatmul.mubr.msk.f32.gmra.mrb[38].mxu1 %vm4842_vm11, %v8843_v41 }
0x1431   :  { %10798 = vmatprep.mubr.msk.f32.mxu1 %vm4842_vm11, %v8858_v37 }
0x1434   :  { %10799 = vmatmul.mubr.msk.f32.vlgmr.msra.gmra.mrb[36].mxu1 %vm4842_vm11, %v8859_v42  ;;  %v7849_v42 = vld [vmem:[%s15482_s11 + $0x10] sm:$0xff] }
0x1435   :  { %11880 = vmatpush3.bf16.msra.mxu1 %v11877_v36  ;;  %10801 = vmatprep.mubr.msk.f32.mxu1 %vm4842_vm11, %v8860_v43  ;;  %v7888_v43 = vld [vmem:[#allocation2] sm:$0x1] }
0x1436   :  { %11882 = vmatprep.subr.bf16.mxu1 %v11881_v45 }
0x1438   :  { %10802 = vmatmul.mubr.msk.f32.gmra.mrb[38].mxu1 %vm4842_vm11, %v8861_v51 }
0x1439   :  { %11884 = vmatpush3.bf16.msra.mxu1 %v11881_v45  ;;  %10818 = vmatprep.mubr.msk.f32.mxu1 %vm4598_vm8, %v14753_v9  ;;  %v7848_v45 = vld [vmem:[%s15482_s11 + $0x8] sm:$0xff]  ;;  %s12082_s11 = smov [#allocation3]  }
0x143a   :  { %11886 = vmatprep.subr.bf16.mxu1 %v11885_v53  ;;  %s7912_s25 = sshll.u32 %s12082_s11, 4  ;;  %s7913_s25 = int_to_ptr.vmem [resolvable:$true] %s7912_s25 }
0x143b   :  { %s12054_s7 = scalar_lea.vmem %s7913_s25, 16  ;;  %s12058_s26 = scalar_lea.vmem %s7913_s25, 32 }
0x143c   :  { %p12055_p0 = scmp.ne.s32.totalorder %s7913_s25, %s12054_s7  ;;  %p12059_p1 = scmp.lt.s32.totalorder %s7913_s25, %s7913_s25 }
0x143d   :  { %11888 = vmatpush3.bf16.msra.mxu1 %v11885_v53  ;;  %p12060_p2 = scmp.lt.s32.totalorder %s12058_s26, %s12054_s7 }
0x143e   :  { %10816 = vmatprep.subr.msk.mxu1 %vm273_vm2, %v8872_v54 }
0x143f   :  { %p12061_p3 = por %p12060_p2, %p12059_p1 }
0x1441   :  { %10817 = vmatpush3.msk.msra.mxu1 %vm273_vm2, %v8872_v54  ;;  %p12062_p4 = pnand %p12061_p3, %p12055_p0 }
0x1442   :  { %10819 = vmatmul.mubr.msk.f32.vlgmr.msra.gmra.mrb[44].mxu1 %vm4598_vm8, %v14755_v1  ;;  %v8878_v1 = vld [vmem:[%s15479_s8 + $0x190] sm:$0xff] }
0x1443   :  { %10825 = vmatprep.mubr.msk.f32.mxu1 %vm4842_vm11, %v8876_v55 }
0x1515   :  { %v10820_v9 = vpop.f32.mrb[44].mxu1 }
0x1516   :  { %v7034_v25 = vpop.f32.mrb[45].mxu1 }
0x1517   :  { %v11889_v46 = vpack.c.bf16 %v10820_v9, %v7034_v25 }
0x1519   :  { %11890 = vmatprep.subr.bf16.mxu1 %v11889_v46 }
0x151a   :  { %11892 = vmatpush3.bf16.msra.mxu1 %v11889_v46 }
0x151b   :  { %11906 = vmatprep.subr.bf16.mxu1 %v15147_v49 }
0x151d   :  { %10826 = vmatmul.mubr.msk.f32.vlgmr.msra.gmra.mrb[36].mxu1 %vm4842_vm11, %v8877_v57 }
0x151e   :  { %11908 = vmatpush3.bf16.msra.mxu1 %v15147_v49  ;;  %10828 = vmatprep.mubr.msk.f32.mxu1 %vm4842_vm11, %v8878_v1  ;;  %v8895_v49 = vld [vmem:[%s15479_s8 + $0x1a8] sm:$0xff] }
0x151f   :  { %11922 = vmatprep.subr.bf16.mxu1 %v15153_v2 }
0x1521   :  { %10829 = vmatmul.mubr.msk.f32.gmra.mrb[38].mxu1 %vm4842_vm11, %v8879_v59 }
0x1522   :  { %10852 = vmatprep.mubr.msk.f32.mxu1 %vm4842_vm11, %v8894_v60 }
0x1525   :  { %10853 = vmatmul.mubr.msk.f32.vlgmr.msra.gmra.mrb[36].mxu1 %vm4842_vm11, %v8895_v49 }
0x1526   :  { %11924 = vmatpush3.bf16.msra.mxu1 %v15153_v2  ;;  %10855 = vmatprep.mubr.msk.f32.mxu1 %vm4842_vm11, %v8896_v61  ;;  %v8913_v2 = vld [vmem:[%s15479_s8 + $0x1c8] sm:$0xff] }
0x1527   :  { %11938 = vmatprep.subr.bf16.mxu1 %v15155_v56 }
0x1529   :  { %10856 = vmatmul.mubr.msk.f32.gmra.mrb[38].mxu1 %vm4842_vm11, %v8897_v11 }
0x152a   :  { %10879 = vmatprep.mubr.msk.f32.mxu1 %vm4842_vm11, %v8912_v0 }
0x152d   :  { %10880 = vmatmul.mubr.msk.f32.vlgmr.msra.gmra.mrb[36].mxu1 %vm4842_vm11, %v8913_v2 }
0x152e   :  { %11940 = vmatpush3.bf16.msra.mxu1 %v15155_v56  ;;  %10882 = vmatprep.mubr.msk.f32.mxu1 %vm4842_vm11, %v8914_v3  ;;  %v8932_v56 = vld [vmem:[%s15479_s8 + $0x1f0] sm:$0xff] }
0x1531   :  { %10883 = vmatmul.mubr.msk.f32.gmra.mrb[38].mxu1 %vm4842_vm11, %v8915_v5 }
0x1532   :  { %10906 = vmatprep.mubr.msk.f32.mxu1 %vm4842_vm11, %v8930_v6 }
0x1535   :  { %10907 = vmatmul.mubr.msk.f32.vlgmr.msra.gmra.mrb[36].mxu1 %vm4842_vm11, %v8931_v35 }
0x1536   :  { %10909 = vmatprep.mubr.msk.f32.mxu1 %vm4842_vm11, %v8932_v56 }
0x1539   :  { %10910 = vmatmul.mubr.msk.f32.gmra.mrb[38].mxu1 %vm4842_vm11, %v8933_v8 }
0x1608   :  { %v10908_v44 = vpop.f32.mrb[36].mxu1 }
0x1609   :  { %v7702_v4 = vpop.f32.mrb[37].mxu1  ;;  %v7737_v10 = vsel %vm7733_vm12, %v10908_v44, 0.0 }
0x160a   :  { %7738 = vadd.xlane.f32.xlu0 %v7737_v10  ;;  %v7734_v58 = vsel %vm7733_vm12, %v7702_v4, 0.0 }
0x160b   :  { %7735 = vadd.xlane.f32.xlu1 %v7734_v58 }
0x160c   :  { %v10911_v52 = vpop.f32.mrb[38].mxu1 }
0x160d   :  { %v7712_v17 = vpop.f32.mrb[39].mxu1  ;;  %v7743_v50 = vsel %vm7733_vm12, %v10911_v52, 0.0 }
0x160e   :  { %v7740_v12 = vsel %vm7733_vm12, %v7712_v17, 0.0 }
0x160f   :  { %7744 = vadd.xlane.f32.xlu1 %v7743_v50 }
0x1613   :  { %7741 = vadd.xlane.f32.xlu1 %v7740_v12 }
0x1620   :  { %7789 = vperm.xlu0 %12036, %v7725_v13  }
0x1624   :  { %7813 = vperm.xlu0 %12036, %v7729_v14   ;;  %7794 = vperm.xlu1 %12037, %v7726_v63  }
0x1628   :  { %7804 = vperm.xlu0 %12036, %v7728_v15   ;;  %7799 = vperm.xlu1 %12037, %v7727_v38  }
0x162c   :  { %7828 = vperm.xlu0 %12036, %v7732_v16   ;;  %7818 = vperm.xlu1 %12037, %v7730_v18  }
0x1630   :  { %7823 = vperm.xlu1 %12037, %v7731_v19  }
0x1634   :  { %7853 = vperm.xlu1 %12037, %v7847_v20  }
0x1697   :  { %v7739_v21 = vpop.xlane.xlu0 %7738 }
0x1698   :  { %v7748_v62 = vmul.f32 0.5, %v7739_v21  ;;  %v7736_v22 = vpop.xlane.xlu1 %7735 }
0x1699   :  { %v7747_v24 = vmul.f32 0.5, %v7736_v22 }
0x169a   :  { %v7752_v26 = vsub.f32 %v10908_v44, %v7748_v62 }
0x169b   :  { %v7751_v27 = vsub.f32 %v7702_v4, %v7747_v24 }
0x169c   :  { %v7745_v28 = vpop.xlane.xlu1 %7744  ;;  %v7756_v7 = vmul.f32 %v7752_v26, %v7752_v26 }
0x169d   :  { %v7750_v29 = vmul.f32 0.5, %v7745_v28  ;;  %v7755_v31 = vmul.f32 %v7751_v27, %v7751_v27 }
0x169e   :  { %v7762_v30 = vsel %vm7733_vm12, %v7756_v7, 0.0 }
0x169f   :  { %v7754_v32 = vsub.f32 %v10911_v52, %v7750_v29  ;;  %7763 = vadd.xlane.f32.xlu1 %v7762_v30  ;;  %v7759_v34 = vsel %vm7733_vm12, %v7755_v31, 0.0  ;;  %v7790_v54 = vpop.permute.xlu0 %7789 }
0x16a0   :  { %v7742_v33 = vpop.xlane.xlu1 %7741 }
0x16a1   :  { %v7749_v23 = vmul.f32 0.5, %v7742_v33  ;;  %v7758_v36 = vmul.f32 %v7754_v32, %v7754_v32 }
0x16a3   :  { %v7753_v41 = vsub.f32 %v7712_v17, %v7749_v23  ;;  %7760 = vadd.xlane.f32.xlu1 %v7759_v34  ;;  %v7768_v39 = vsel %vm7733_vm12, %v7758_v36, 0.0  ;;  %v7814_v9 = vpop.permute.xlu0 %7813 }
0x16a4   :  { %v7795_v48 = vpop.permute.xlu1 %7794 }
0x16a5   :  { %v7757_v37 = vmul.f32 %v7753_v41, %v7753_v41 }
0x16a7   :  { %7769 = vadd.xlane.f32.xlu1 %v7768_v39  ;;  %v7765_v40 = vsel %vm7733_vm12, %v7757_v37, 0.0  ;;  %v7805_v46 = vpop.permute.xlu0 %7804  ;;  %v7894_v39 = vlaneseq }
0x16a8   :  { %7766 = vadd.xlane.f32.xlu0 %v7765_v40  ;;  %v7800_v51 = vpop.permute.xlu1 %7799 }
0x16ab   :  { %v7829_v49 = vpop.permute.xlu0 %7828 }
0x16ac   :  { %v7819_v53 = vpop.permute.xlu1 %7818 }
0x16b0   :  { %v7824_v55 = vpop.permute.xlu1 %7823 }
0x16b4   :  { %v7854_v25 = vpop.permute.xlu1 %7853 }
0x16b8   :  { %7863 = vperm.xlu1 %12037, %v7849_v42  }
0x16bc   :  { %7891 = vperm.xlu1 %12037, %v7888_v43   ;;  %v7895_v43 = vshrl.u32 %v7894_v39, 7 }
0x16be   :  { %7858 = vperm.xlu0 %12036, %v7848_v45  }
0x16c2   :  { %7868 = vperm.xlu0 %12036, %v7850_v47  }
0x172c   :  { %v7764_v57 = vpop.xlane.xlu1 %7763 }
0x172d   :  { %v7772_v1 = vmul.f32 0.5, %v7764_v57 }
0x172f   :  { %v7776_v59 = vadd.f32 1e-05, %v7772_v1 }
0x1730   :  { %v7761_v60 = vpop.xlane.xlu1 %7760 }
0x1731   :  { %12042 = vrsqrt.f32 %v7776_v59  ;;  %v7771_v61 = vmul.f32 0.5, %v7761_v60 }
0x1733   :  { %v7775_v11 = vadd.f32 1e-05, %v7771_v61 }
0x1734   :  { %v7770_v0 = vpop.xlane.xlu1 %7769 }
0x1735   :  { %12044 = vrsqrt.f32 %v7775_v11  ;;  %v7774_v2 = vmul.f32 0.5, %v7770_v0  ;;  %v7767_v3 = vpop.xlane.xlu0 %7766 }
0x1736   :  { %v7773_v5 = vmul.f32 0.5, %v7767_v3 }
0x1737   :  { %v7778_v6 = vadd.f32 1e-05, %v7774_v2 }
0x1738   :  { %v7777_v35 = vadd.f32 1e-05, %v7773_v5  ;;  %v7864_v30 = vpop.permute.xlu1 %7863 }
0x1739   :  { %12046 = vrsqrt.f32 %v7778_v6 }
0x173a   :  { %12048 = vrsqrt.f32 %v7777_v35 }
0x173b   :  { %v12043_v56 = vpop.eup %12042 }
0x173c   :  { %v7784_v8 = vmul.f32 %v12043_v56, %v7752_v26 }
0x173d   :  { %v7859_v18 = vpop.permute.xlu0 %7858 }
0x173e   :  { %v7808_v44 = vmul.f32 %v7795_v48, %v7784_v8  ;;  %v7896_v48 = vsub.s32 0, %v7895_v43 }
0x173f   :  { %v12045_v4 = vpop.eup %12044 }
0x1740   :  { %v7783_v10 = vmul.f32 %v12045_v4, %v7751_v27  ;;  %v7832_v58 = vadd.f32 %v7819_v53, %v7808_v44  ;;  %v7892_v53 = vpop.permute.xlu1 %7891 }
0x1741   :  { %v7869_v31 = vpop.permute.xlu0 %7868 }
0x1742   :  { %v7807_v52 = vmul.f32 %v7790_v54, %v7783_v10  ;;  %v7840_v50 = vmul.f32 0.2, %v7832_v58  ;;  %vm7836_vm13 = vcmp.ge.f32.partialorder %v7832_v58, 0.0 }
0x1743   :  { %v12047_v17 = vpop.eup %12046 }
0x1744   :  { %v12049_v12 = vpop.eup %12048  ;;  %v7831_v13 = vadd.f32 %v7814_v9, %v7807_v52  ;;  %v7786_v14 = vmul.f32 %v12047_v17, %v7754_v32  ;;  %v7844_v19 = vsel %vm7836_vm13, %v7832_v58, %v7840_v50 }
0x1745   :  { %v7785_v63 = vmul.f32 %v12049_v12, %v7753_v41  ;;  %v7872_v24 = vmul.f32 %v7859_v18, %v7844_v19 }
0x1746   :  { %vm7835_vm14 = vcmp.ge.f32.partialorder %v7831_v13, 0.0  ;;  %v7839_v15 = vmul.f32 0.2, %v7831_v13  ;;  %v7810_v38 = vmul.f32 %v7805_v46, %v7786_v14 }
0x1747   :  { %v7809_v16 = vmul.f32 %v7800_v51, %v7785_v63  ;;  %v7876_v33 = vsel %vm7733_vm12, %v7872_v24, 0.0 }
0x1748   :  { %v7843_v20 = vsel %vm7835_vm14, %v7831_v13, %v7839_v15  ;;  %v7834_v21 = vadd.f32 %v7829_v49, %v7810_v38 }
0x1749   :  { %v7833_v62 = vadd.f32 %v7824_v55, %v7809_v16  ;;  %v7871_v22 = vmul.f32 %v7854_v25, %v7843_v20  ;;  %v7897_v55 = vrot.slane %v7892_v53, %v7896_v48 }
0x174a   :  { %vm7838_vm15 = vcmp.ge.f32.partialorder %v7834_v21, 0.0  ;;  %v7842_v26 = vmul.f32 0.2, %v7834_v21 }
0x174b   :  { %vm7837_vm0 = vcmp.ge.f32.partialorder %v7833_v62, 0.0  ;;  %v7841_v27 = vmul.f32 0.2, %v7833_v62  ;;  %v7875_v28 = vsel %vm7733_vm12, %v7871_v22, 0.0 }
0x174c   :  { %v7846_v7 = vsel %vm7838_vm15, %v7834_v21, %v7842_v26  ;;  %v7877_v34 = vadd.f32 %v7876_v33, %v7875_v28 }
0x174d   :  { %v7845_v29 = vsel %vm7837_vm0, %v7833_v62, %v7841_v27  ;;  %v7874_v23 = vmul.f32 %v7869_v31, %v7846_v7 }
0x174e   :  { %v7873_v32 = vmul.f32 %v7864_v30, %v7845_v29 }
0x174f   :  { %v7880_v37 = vsel %vm7733_vm12, %v7874_v23, 0.0 }
0x1750   :  { %v7878_v36 = vsel %vm7733_vm12, %v7873_v32, 0.0 }
0x1751   :  { %v7879_v41 = vadd.f32 %v7878_v36, %v7877_v34 }
0x1753   :  { %v7881_v40 = vadd.f32 %v7880_v37, %v7879_v41 }
0x1755   :  { %v7882_v42 = vrot.slane %v7881_v40, 4 }
0x1757   :  { %v7883_v45 = vadd.f32 %v7882_v42, %v7881_v40 }
0x1759   :  { %v7884_v47 = vrot.slane %v7883_v45, 2 }
0x175b   :  { %v7885_v51 = vadd.f32 %v7884_v47, %v7883_v45 }
0x175d   :  { %v7886_v54 = vrot.slane %v7885_v51, 1 }
0x175f   :  { %v7887_v9 = vadd.f32 %v7886_v54, %v7885_v51 }
0x1761   :  { %v7898_v25 = vadd.f32 %v7897_v55, %v7887_v9 }
0x1763   :  { %v7899_v46 = vsub.f32 0.0, %v7898_v25 }
0x1765   :  { %v7900_v57 = vmul.f32 1.442695, %v7899_v46 }
0x1767   :  { %12050 = vpow2.f32 %v7900_v57 }
0x1771   :  { %v12051_v1 = vpop.eup %12050 }
0x1772   :  { %v7902_v59 = vadd.f32 1.0, %v12051_v1 }
0x1774   :  { %12052 = vrcp.f32 %v7902_v59 }
0x177e   :  { %v12053_v60 = vpop.eup %12052 }
0x177f   :  { %7905 = vst.msk [vmem:[#allocation3] sm:$0x1] %vm7904_vm1, %v12053_v60 }
0x1780   :  { %12065 = shalt.err (!%p12062_p4)
}
0x1781   :  { %s12066_s8 = scalar_lea.hbm %s15484_s13, 16 }
0x1782   :  { %p12067_p5 = scmp.ne.s32.totalorder %s15484_s13, %s12066_s8  ;;  %p12070_p6 = scmp.lt.u32.totalorder %s12066_s8, %s15484_s13 }
0x1784   :  { %p12072_p7 = pnand %p12070_p6, %p12067_p5 }
0x1786   :  { %12075 = shalt.err (!%p12072_p7)
}
0x1787   :  { %7915 = dma.vmem_to_hbm [thread:$0]  %s7913_s25, 16, %s15484_s13, [#allocation4]  }
0x1788   :  { %12076 = dma.done.wait [#allocation4], 16  }
0x1789   :  { %12077 = vsyncadd [#allocation4], 4294967280 }
0x178a   :  { %7919 = vsyncpa [#allocation4], 1 }

</bundles_post_ra>
